<compile_context>
chip_gen: v7x
topology: tpu7x:2x2x1
jax: 0.10.0
libtpu: 0.0.40
codegen_flags: <defaults>
</compile_context>

<pallas_src>
import functools

import jax
import jax.numpy as jnp
import numpy as np
from jax.experimental import pallas as pl
from jax.experimental.pallas import tpu as pltpu


# ----------------------------------------------------------------------------
# Fused Pallas kernel: whole bVAE forward
# ----------------------------------------------------------------------------
def _bvae_kernel(x2_ref, eps_ref,
                 bw1_ref, cb1_ref, bw2_ref, cb2_ref,
                 efc1w_ref, efc1b_ref, efc2w_ref, efc2b_ref,
                 mulvw_ref, mulvb_ref,
                 d1w_ref, d1b_ref, d2w_ref, d2b_ref, d3w_ref, d3b_ref,
                 out_ref, mulv_ref,
                 c1_ref, c2_ref,
                 *, B, H1, H2, latent):
    f32 = jnp.float32

    # ---- conv1 (3x3 VALID) as 3 banded-Toeplitz matmuls over kernel rows ----
    # x2 layout: (H*B, W*Cin); row (h*B + b), col (w*Cin + c).
    acc1 = jnp.dot(x2_ref[0:H1 * B, :], bw1_ref[0], preferred_element_type=f32)
    for kh in range(1, 3):
        acc1 = acc1 + jnp.dot(x2_ref[kh * B:(kh + H1) * B, :], bw1_ref[kh],
                              preferred_element_type=f32)
    c1_ref[...] = jnp.maximum(acc1 + cb1_ref[...], 0.0)   # (H1*B, W1*40)

    # ---- conv2 (3x3 VALID), same trick on the conv1 output layout ----
    acc2 = jnp.dot(c1_ref[0:H2 * B, :], bw2_ref[0], preferred_element_type=f32)
    for kh in range(1, 3):
        acc2 = acc2 + jnp.dot(c1_ref[kh * B:(kh + H2) * B, :], bw2_ref[kh],
                              preferred_element_type=f32)
    c2_ref[...] = jnp.maximum(acc2 + cb2_ref[...], 0.0)   # (H2*B, W2*10)

    # ---- encoder fc1: NCHW flatten folded into pre-permuted weights,
    #      consume one (B, W2*C2) row group of c2 per output image row h ----
    acc = jnp.dot(c2_ref[0:B, :], efc1w_ref[0], preferred_element_type=f32)
    for h in range(1, H2):
        acc = acc + jnp.dot(c2_ref[h * B:(h + 1) * B, :], efc1w_ref[h],
                            preferred_element_type=f32)
    f1 = jnp.maximum(acc + efc1b_ref[...], 0.0)            # (B, 128)

    # ---- encoder fc2 ----
    enc = jnp.maximum(
        jnp.dot(f1, efc2w_ref[...], preferred_element_type=f32) + efc2b_ref[...],
        0.0)                                                # (B, enc_latent)

    # ---- fused mu / log_var heads + reparameterization sample ----
    mulv = jnp.dot(enc, mulvw_ref[...], preferred_element_type=f32) + mulvb_ref[...]
    mulv_ref[...] = mulv                                    # (B, 2*latent)
    mu = mulv[:, :latent]
    log_var = mulv[:, latent:]
    z = mu + eps_ref[...] * jnp.exp(log_var * 0.5)

    # ---- decoder MLP ----
    d1 = jnp.maximum(
        jnp.dot(z, d1w_ref[...], preferred_element_type=f32) + d1b_ref[...], 0.0)
    d2 = jnp.maximum(
        jnp.dot(d1, d2w_ref[...], preferred_element_type=f32) + d2b_ref[...], 0.0)
    out_ref[...] = jax.nn.sigmoid(
        jnp.dot(d2, d3w_ref[...], preferred_element_type=f32) + d3b_ref[...])


# ----------------------------------------------------------------------------
# Forward wrapper (layout plumbing only; all compute is inside the kernel)
# ----------------------------------------------------------------------------
@jax.jit
def bvae_forward(prep, x_nchw, eps):
    B, C, H, W = x_nchw.shape
    L = eps.shape[1]
    H1, W1 = H - 2, W - 2
    H2, W2 = H1 - 2, W1 - 2
    out_dim = C * H * W
    C1 = prep["cb1"].shape[1] // W1          # 40
    C2 = prep["cb2"].shape[1] // W2          # 10

    # NCHW -> (H, B, W, C) -> (H*B, W*C) 2-D activation layout for the conv path.
    x2 = jnp.transpose(x_nchw.astype(jnp.float32), (2, 0, 3, 1)).reshape(H * B, W * C)

    vmem = pl.BlockSpec(memory_space=pltpu.MemorySpace.VMEM)
    kernel = functools.partial(_bvae_kernel, B=B, H1=H1, H2=H2, latent=L)

    out_flat, mulv = pl.pallas_call(
        kernel,
        out_shape=(jax.ShapeDtypeStruct((B, out_dim), jnp.float32),
                   jax.ShapeDtypeStruct((B, 2 * L), jnp.float32)),
        in_specs=[vmem] * 18,
        out_specs=(vmem, vmem),
        scratch_shapes=[pltpu.VMEM((H1 * B, W1 * C1), jnp.float32),
                        pltpu.VMEM((H2 * B, W2 * C2), jnp.float32)],
    )(x2, eps,
      prep["bw1"], prep["cb1"], prep["bw2"], prep["cb2"],
      prep["efc1_w"], prep["efc1_b"], prep["efc2_w"], prep["efc2_b"],
      prep["mulv_w"], prep["mulv_b"],
      prep["dfc1_w"], prep["dfc1_b"], prep["dfc2_w"], prep["dfc2_b"],
      prep["dfc3_w"], prep["dfc3_b"])

    out = out_flat.reshape(B, C, H, W)
    return out, (mulv[:, :L], mulv[:, L:])


# ----------------------------------------------------------------------------
# Parameter construction
# ----------------------------------------------------------------------------
def init_params(key, in_shape=(1, 16, 16), enc_latent=20, latent_dim=20):
    """'Natural' parameters (Conv2d-equivalent layouts)."""
    C, H, W = in_shape
    H1, W1 = H - 2, W - 2
    H2, W2 = H1 - 2, W1 - 2
    fc1_in = 10 * H2 * W2                 # flatten of conv2 output (NCHW order)
    out_dim = C * H * W
    keys = jax.random.split(key, 18)

    def nrm(k_, shape, scale=0.1):
        return scale * jax.random.normal(k_, shape, dtype=jnp.float32)

    return {
        "conv1_w": nrm(keys[0], (3, 3, C, 40)),   # (kh, kw, cin, cout)
        "conv1_b": nrm(keys[1], (40,)),
        "conv2_w": nrm(keys[2], (3, 3, 40, 10)),
        "conv2_b": nrm(keys[3], (10,)),
        "efc1_w": nrm(keys[4], (fc1_in, 128)),    # rows in NCHW-flatten order
        "efc1_b": nrm(keys[5], (128,)),
        "efc2_w": nrm(keys[6], (128, enc_latent)),
        "efc2_b": nrm(keys[7], (enc_latent,)),
        "mu_w": nrm(keys[8], (enc_latent, latent_dim)),
        "mu_b": nrm(keys[9], (latent_dim,)),
        "lv_w": nrm(keys[10], (enc_latent, latent_dim)),
        "lv_b": nrm(keys[11], (latent_dim,)),
        "dfc1_w": nrm(keys[12], (latent_dim, 128)),
        "dfc1_b": nrm(keys[13], (128,)),
        "dfc2_w": nrm(keys[14], (128, 512)),
        "dfc2_b": nrm(keys[15], (512,)),
        "dfc3_w": nrm(keys[16], (512, out_dim)),
        "dfc3_b": nrm(keys[17], (out_dim,)),
    }


def prepare_params(nat, in_shape=(1, 16, 16)):
    """Host-side (one-time) rearrangement of the natural weights for the kernel."""
    C, H, W = in_shape
    k = 3
    H1, W1 = H - 2, W - 2
    H2, W2 = H1 - 2, W1 - 2
    C1, C2 = 40, 10

    def banded(conv_w, w_in, c_in, w_out, c_out):
        # (k, k, c_in, c_out) -> (k, w_in*c_in, w_out*c_out) block-banded Toeplitz
        bw = np.zeros((k, w_in * c_in, w_out * c_out), dtype=np.float32)
        cw = np.asarray(conv_w, dtype=np.float32)
        for kh in range(k):
            for kw in range(k):
                for wo in range(w_out):
                    r = (wo + kw) * c_in
                    cc = wo * c_out
                    bw[kh, r:r + c_in, cc:cc + c_out] = cw[kh, kw]
        return jnp.asarray(bw)

    # encoder fc1 rows permuted: NCHW-flatten index (c*H2*W2 + h*W2 + w)
    #   -> per-h blocks of (w*C2 + c) so the kernel consumes the conv2 layout directly.
    efc1 = np.asarray(nat["efc1_w"], dtype=np.float32)
    efc1_r = efc1.reshape(C2, H2, W2, 128).transpose(1, 2, 0, 3).reshape(H2, W2 * C2, 128)

    return {
        "bw1": banded(nat["conv1_w"], W, C, W1, C1),
        "cb1": jnp.asarray(np.tile(np.asarray(nat["conv1_b"]), W1)[None, :], jnp.float32),
        "bw2": banded(nat["conv2_w"], W1, C1, W2, C2),
        "cb2": jnp.asarray(np.tile(np.asarray(nat["conv2_b"]), W2)[None, :], jnp.float32),
        "efc1_w": jnp.asarray(efc1_r),
        "efc1_b": nat["efc1_b"].reshape(1, -1),
        "efc2_w": nat["efc2_w"],
        "efc2_b": nat["efc2_b"].reshape(1, -1),
        "mulv_w": jnp.concatenate([nat["mu_w"], nat["lv_w"]], axis=1),
        "mulv_b": jnp.concatenate([nat["mu_b"], nat["lv_b"]])[None, :],
        "dfc1_w": nat["dfc1_w"], "dfc1_b": nat["dfc1_b"].reshape(1, -1),
        "dfc2_w": nat["dfc2_w"], "dfc2_b": nat["dfc2_b"].reshape(1, -1),
        "dfc3_w": nat["dfc3_w"], "dfc3_b": nat["dfc3_b"].reshape(1, -1),
    }


# ----------------------------------------------------------------------------
# Pure-JAX reference (uses the NATURAL params: validates both the host-side
# weight rearrangement and the kernel itself)
# ----------------------------------------------------------------------------
def _im2col(x_nhwc, k=3):
    B, H, W, C = x_nhwc.shape
    HO, WO = H - k + 1, W - k + 1
    cols = []
    for kh in range(k):
        for kw in range(k):
            cols.append(x_nhwc[:, kh:kh + HO, kw:kw + WO, :])
    patches = jnp.concatenate(cols, axis=-1)
    return patches.reshape(B * HO * WO, k * k * C), (B, HO, WO)


def ref_forward(nat, x_nchw, eps):
    B, C, H, W = x_nchw.shape
    x = jnp.transpose(x_nchw, (0, 2, 3, 1)).astype(jnp.float32)  # NHWC
    cols1, (_, H1, W1) = _im2col(x, 3)
    c1 = jnp.maximum(cols1 @ nat["conv1_w"].reshape(-1, 40) + nat["conv1_b"], 0.0)
    c1 = c1.reshape(B, H1, W1, 40)
    cols2, (_, H2, W2) = _im2col(c1, 3)
    c2 = jnp.maximum(cols2 @ nat["conv2_w"].reshape(-1, 10) + nat["conv2_b"], 0.0)
    c2 = c2.reshape(B, H2, W2, 10)
    f = jnp.transpose(c2, (0, 3, 1, 2)).reshape(B, -1)           # NCHW flatten
    f1 = jnp.maximum(f @ nat["efc1_w"] + nat["efc1_b"], 0.0)
    enc = jnp.maximum(f1 @ nat["efc2_w"] + nat["efc2_b"], 0.0)
    mu = enc @ nat["mu_w"] + nat["mu_b"]
    lv = enc @ nat["lv_w"] + nat["lv_b"]
    z = mu + eps * jnp.exp(lv * 0.5)
    d1 = jnp.maximum(z @ nat["dfc1_w"] + nat["dfc1_b"], 0.0)
    d2 = jnp.maximum(d1 @ nat["dfc2_w"] + nat["dfc2_b"], 0.0)
    d3 = jax.nn.sigmoid(d2 @ nat["dfc3_w"] + nat["dfc3_b"])
    return d3.reshape(B, C, H, W), (mu, lv)


# ----------------------------------------------------------------------------
if __name__ == "__main__":
    in_shape = (1, 16, 16)     # (C, H, W): conv1 -> 14x14x40, conv2 -> 12x12x10
    batch = 2
    latent_dim = 20

    key = jax.random.PRNGKey(0)
    k_x, k_eps, k_params = jax.random.split(key, 3)

    x = jax.random.normal(k_x, (batch,) + in_shape, dtype=jnp.float32)   # NCHW
    eps = jax.random.normal(k_eps, (batch, latent_dim), dtype=jnp.float32)

    nat = init_params(k_params, in_shape=in_shape, enc_latent=20, latent_dim=latent_dim)
    prep = prepare_params(nat, in_shape=in_shape)

    out, (mu, log_var) = bvae_forward(prep, x, eps)
    jax.block_until_ready(out)

    # sanity check against pure-JAX reference (natural weights / plain im2col)
    ref_out, (ref_mu, ref_lv) = ref_forward(nat, x, eps)
    np.testing.assert_allclose(np.asarray(out), np.asarray(ref_out),
                               rtol=2e-3, atol=2e-3)
    np.testing.assert_allclose(np.asarray(mu), np.asarray(ref_mu),
                               rtol=2e-3, atol=2e-3)
    np.testing.assert_allclose(np.asarray(log_var), np.asarray(ref_lv),
                               rtol=2e-3, atol=2e-3)

    assert out.shape == (batch,) + in_shape
    assert mu.shape == (batch, latent_dim) and log_var.shape == (batch, latent_dim)
    print("KERNEL_OK")
</pallas_src>

<mosaic_0001>
module attributes {stable_mosaic.version = 11 : i64} {
  func.func @_bvae_kernel(%arg0: memref<32x16xf32, #tpu.memory_space<vmem>>, %arg1: memref<2x20xf32, #tpu.memory_space<vmem>>, %arg2: memref<3x16x560xf32, #tpu.memory_space<vmem>>, %arg3: memref<1x560xf32, #tpu.memory_space<vmem>>, %arg4: memref<3x560x120xf32, #tpu.memory_space<vmem>>, %arg5: memref<1x120xf32, #tpu.memory_space<vmem>>, %arg6: memref<12x120x128xf32, #tpu.memory_space<vmem>>, %arg7: memref<1x128xf32, #tpu.memory_space<vmem>>, %arg8: memref<128x20xf32, #tpu.memory_space<vmem>>, %arg9: memref<1x20xf32, #tpu.memory_space<vmem>>, %arg10: memref<20x40xf32, #tpu.memory_space<vmem>>, %arg11: memref<1x40xf32, #tpu.memory_space<vmem>>, %arg12: memref<20x128xf32, #tpu.memory_space<vmem>>, %arg13: memref<1x128xf32, #tpu.memory_space<vmem>>, %arg14: memref<128x512xf32, #tpu.memory_space<vmem>>, %arg15: memref<1x512xf32, #tpu.memory_space<vmem>>, %arg16: memref<512x256xf32, #tpu.memory_space<vmem>>, %arg17: memref<1x256xf32, #tpu.memory_space<vmem>>, %arg18: memref<2x256xf32, #tpu.memory_space<vmem>>, %arg19: memref<2x40xf32, #tpu.memory_space<vmem>>, %arg20: memref<28x560xf32, #tpu.memory_space<vmem>>, %arg21: memref<24x120xf32, #tpu.memory_space<vmem>>) attributes {dimension_semantics = [], scalar_prefetch = 0 : i64, scratch_operands = 2 : i64, tpu.core_type = #tpu.core_type<tc>} {
    %c0 = arith.constant 0 : index
    %c0_0 = arith.constant 0 : index
    %0 = vector.load %arg0[%c0, %c0_0] : memref<32x16xf32, #tpu.memory_space<vmem>>, vector<28x16xf32>
    %c0_1 = arith.constant 0 : index
    %c0_2 = arith.constant 0 : index
    %c0_3 = arith.constant 0 : index
    %1 = vector.load %arg2[%c0_1, %c0_2, %c0_3] : memref<3x16x560xf32, #tpu.memory_space<vmem>>, vector<1x16x560xf32>
    %2 = vector.shape_cast %1 : vector<1x16x560xf32> to vector<16x560xf32>
    %cst = arith.constant dense<0.000000e+00> : vector<28x560xf32>
    %3 = tpu.matmul %0, %2, %cst {dimension_numbers = #tpu.dot_dimension_numbers<[1], [0], [0], [1], [0, 0, 1, 1], [], []>} : vector<28x16xf32>, vector<16x560xf32>, vector<28x560xf32> -> vector<28x560xf32>
    %c2 = arith.constant 2 : index
    %c0_4 = arith.constant 0 : index
    %4 = vector.load %arg0[%c2, %c0_4] : memref<32x16xf32, #tpu.memory_space<vmem>>, vector<28x16xf32>
    %c1 = arith.constant 1 : index
    %c0_5 = arith.constant 0 : index
    %c0_6 = arith.constant 0 : index
    %5 = vector.load %arg2[%c1, %c0_5, %c0_6] : memref<3x16x560xf32, #tpu.memory_space<vmem>>, vector<1x16x560xf32>
    %6 = vector.shape_cast %5 : vector<1x16x560xf32> to vector<16x560xf32>
    %cst_7 = arith.constant dense<0.000000e+00> : vector<28x560xf32>
    %7 = tpu.matmul %4, %6, %cst_7 {dimension_numbers = #tpu.dot_dimension_numbers<[1], [0], [0], [1], [0, 0, 1, 1], [], []>} : vector<28x16xf32>, vector<16x560xf32>, vector<28x560xf32> -> vector<28x560xf32>
    %8 = arith.addf %3, %7 : vector<28x560xf32>
    %c4 = arith.constant 4 : index
    %c0_8 = arith.constant 0 : index
    %9 = vector.load %arg0[%c4, %c0_8] : memref<32x16xf32, #tpu.memory_space<vmem>>, vector<28x16xf32>
    %c2_9 = arith.constant 2 : index
    %c0_10 = arith.constant 0 : index
    %c0_11 = arith.constant 0 : index
    %10 = vector.load %arg2[%c2_9, %c0_10, %c0_11] : memref<3x16x560xf32, #tpu.memory_space<vmem>>, vector<1x16x560xf32>
    %11 = vector.shape_cast %10 : vector<1x16x560xf32> to vector<16x560xf32>
    %cst_12 = arith.constant dense<0.000000e+00> : vector<28x560xf32>
    %12 = tpu.matmul %9, %11, %cst_12 {dimension_numbers = #tpu.dot_dimension_numbers<[1], [0], [0], [1], [0, 0, 1, 1], [], []>} : vector<28x16xf32>, vector<16x560xf32>, vector<28x560xf32> -> vector<28x560xf32>
    %13 = arith.addf %8, %12 : vector<28x560xf32>
    %c0_13 = arith.constant 0 : index
    %c0_14 = arith.constant 0 : index
    %14 = vector.load %arg3[%c0_13, %c0_14] : memref<1x560xf32, #tpu.memory_space<vmem>>, vector<1x560xf32>
    %15 = vector.broadcast %14 : vector<1x560xf32> to vector<28x560xf32>
    %16 = arith.addf %13, %15 : vector<28x560xf32>
    %cst_15 = arith.constant 0.000000e+00 : f32
    %17 = vector.broadcast %cst_15 : f32 to vector<28x560xf32>
    %18 = arith.maximumf %16, %17 : vector<28x560xf32>
    %c0_16 = arith.constant 0 : index
    %c0_17 = arith.constant 0 : index
    %19 = vector.load %arg20[%c0_16, %c0_17] : memref<28x560xf32, #tpu.memory_space<vmem>>, vector<28x560xf32>
    tpu.vector_store %arg20[%c0_16, %c0_17], %18 {strides = array<i32>} : memref<28x560xf32, #tpu.memory_space<vmem>>, vector<28x560xf32>,
    %c0_18 = arith.constant 0 : index
    %c0_19 = arith.constant 0 : index
    %20 = vector.load %arg20[%c0_18, %c0_19] : memref<28x560xf32, #tpu.memory_space<vmem>>, vector<24x560xf32>
    %c0_20 = arith.constant 0 : index
    %c0_21 = arith.constant 0 : index
    %c0_22 = arith.constant 0 : index
    %21 = vector.load %arg4[%c0_20, %c0_21, %c0_22] : memref<3x560x120xf32, #tpu.memory_space<vmem>>, vector<1x560x120xf32>
    %22 = vector.shape_cast %21 : vector<1x560x120xf32> to vector<560x120xf32>
    %cst_23 = arith.constant dense<0.000000e+00> : vector<24x120xf32>
    %23 = tpu.matmul %20, %22, %cst_23 {dimension_numbers = #tpu.dot_dimension_numbers<[1], [0], [0], [1], [0, 0, 1, 1], [], []>} : vector<24x560xf32>, vector<560x120xf32>, vector<24x120xf32> -> vector<24x120xf32>
    %c2_24 = arith.constant 2 : index
    %c0_25 = arith.constant 0 : index
    %24 = vector.load %arg20[%c2_24, %c0_25] : memref<28x560xf32, #tpu.memory_space<vmem>>, vector<24x560xf32>
    %c1_26 = arith.constant 1 : index
    %c0_27 = arith.constant 0 : index
    %c0_28 = arith.constant 0 : index
    %25 = vector.load %arg4[%c1_26, %c0_27, %c0_28] : memref<3x560x120xf32, #tpu.memory_space<vmem>>, vector<1x560x120xf32>
    %26 = vector.shape_cast %25 : vector<1x560x120xf32> to vector<560x120xf32>
    %cst_29 = arith.constant dense<0.000000e+00> : vector<24x120xf32>
    %27 = tpu.matmul %24, %26, %cst_29 {dimension_numbers = #tpu.dot_dimension_numbers<[1], [0], [0], [1], [0, 0, 1, 1], [], []>} : vector<24x560xf32>, vector<560x120xf32>, vector<24x120xf32> -> vector<24x120xf32>
    %28 = arith.addf %23, %27 : vector<24x120xf32>
    %c4_30 = arith.constant 4 : index
    %c0_31 = arith.constant 0 : index
    %29 = vector.load %arg20[%c4_30, %c0_31] : memref<28x560xf32, #tpu.memory_space<vmem>>, vector<24x560xf32>
    %c2_32 = arith.constant 2 : index
    %c0_33 = arith.constant 0 : index
    %c0_34 = arith.constant 0 : index
    %30 = vector.load %arg4[%c2_32, %c0_33, %c0_34] : memref<3x560x120xf32, #tpu.memory_space<vmem>>, vector<1x560x120xf32>
    %31 = vector.shape_cast %30 : vector<1x560x120xf32> to vector<560x120xf32>
    %cst_35 = arith.constant dense<0.000000e+00> : vector<24x120xf32>
    %32 = tpu.matmul %29, %31, %cst_35 {dimension_numbers = #tpu.dot_dimension_numbers<[1], [0], [0], [1], [0, 0, 1, 1], [], []>} : vector<24x560xf32>, vector<560x120xf32>, vector<24x120xf32> -> vector<24x120xf32>
    %33 = arith.addf %28, %32 : vector<24x120xf32>
    %c0_36 = arith.constant 0 : index
    %c0_37 = arith.constant 0 : index
    %34 = vector.load %arg5[%c0_36, %c0_37] : memref<1x120xf32, #tpu.memory_space<vmem>>, vector<1x120xf32>
    %35 = vector.broadcast %34 : vector<1x120xf32> to vector<24x120xf32>
    %36 = arith.addf %33, %35 : vector<24x120xf32>
    %cst_38 = arith.constant 0.000000e+00 : f32
    %37 = vector.broadcast %cst_38 : f32 to vector<24x120xf32>
    %38 = arith.maximumf %36, %37 : vector<24x120xf32>
    %c0_39 = arith.constant 0 : index
    %c0_40 = arith.constant 0 : index
    %39 = vector.load %arg21[%c0_39, %c0_40] : memref<24x120xf32, #tpu.memory_space<vmem>>, vector<24x120xf32>
    tpu.vector_store %arg21[%c0_39, %c0_40], %38 {strides = array<i32>} : memref<24x120xf32, #tpu.memory_space<vmem>>, vector<24x120xf32>,
    %c0_41 = arith.constant 0 : index
    %c0_42 = arith.constant 0 : index
    %40 = vector.load %arg21[%c0_41, %c0_42] : memref<24x120xf32, #tpu.memory_space<vmem>>, vector<2x120xf32>
    %c0_43 = arith.constant 0 : index
    %c0_44 = arith.constant 0 : index
    %c0_45 = arith.constant 0 : index
    %41 = vector.load %arg6[%c0_43, %c0_44, %c0_45] : memref<12x120x128xf32, #tpu.memory_space<vmem>>, vector<1x120x128xf32>
    %42 = vector.shape_cast %41 : vector<1x120x128xf32> to vector<120x128xf32>
    %cst_46 = arith.constant dense<0.000000e+00> : vector<2x128xf32>
    %43 = tpu.matmul %40, %42, %cst_46 {dimension_numbers = #tpu.dot_dimension_numbers<[1], [0], [0], [1], [0, 0, 1, 1], [], []>} : vector<2x120xf32>, vector<120x128xf32>, vector<2x128xf32> -> vector<2x128xf32>
    %c2_47 = arith.constant 2 : index
    %c0_48 = arith.constant 0 : index
    %44 = vector.load %arg21[%c2_47, %c0_48] : memref<24x120xf32, #tpu.memory_space<vmem>>, vector<2x120xf32>
    %c1_49 = arith.constant 1 : index
    %c0_50 = arith.constant 0 : index
    %c0_51 = arith.constant 0 : index
    %45 = vector.load %arg6[%c1_49, %c0_50, %c0_51] : memref<12x120x128xf32, #tpu.memory_space<vmem>>, vector<1x120x128xf32>
    %46 = vector.shape_cast %45 : vector<1x120x128xf32> to vector<120x128xf32>
    %cst_52 = arith.constant dense<0.000000e+00> : vector<2x128xf32>
    %47 = tpu.matmul %44, %46, %cst_52 {dimension_numbers = #tpu.dot_dimension_numbers<[1], [0], [0], [1], [0, 0, 1, 1], [], []>} : vector<2x120xf32>, vector<120x128xf32>, vector<2x128xf32> -> vector<2x128xf32>
    %48 = arith.addf %43, %47 : vector<2x128xf32>
    %c4_53 = arith.constant 4 : index
    %c0_54 = arith.constant 0 : index
    %49 = vector.load %arg21[%c4_53, %c0_54] : memref<24x120xf32, #tpu.memory_space<vmem>>, vector<2x120xf32>
    %c2_55 = arith.constant 2 : index
    %c0_56 = arith.constant 0 : index
    %c0_57 = arith.constant 0 : index
    %50 = vector.load %arg6[%c2_55, %c0_56, %c0_57] : memref<12x120x128xf32, #tpu.memory_space<vmem>>, vector<1x120x128xf32>
    %51 = vector.shape_cast %50 : vector<1x120x128xf32> to vector<120x128xf32>
    %cst_58 = arith.constant dense<0.000000e+00> : vector<2x128xf32>
    %52 = tpu.matmul %49, %51, %cst_58 {dimension_numbers = #tpu.dot_dimension_numbers<[1], [0], [0], [1], [0, 0, 1, 1], [], []>} : vector<2x120xf32>, vector<120x128xf32>, vector<2x128xf32> -> vector<2x128xf32>
    %53 = arith.addf %48, %52 : vector<2x128xf32>
    %c6 = arith.constant 6 : index
    %c0_59 = arith.constant 0 : index
    %54 = vector.load %arg21[%c6, %c0_59] : memref<24x120xf32, #tpu.memory_space<vmem>>, vector<2x120xf32>
    %c3 = arith.constant 3 : index
    %c0_60 = arith.constant 0 : index
    %c0_61 = arith.constant 0 : index
    %55 = vector.load %arg6[%c3, %c0_60, %c0_61] : memref<12x120x128xf32, #tpu.memory_space<vmem>>, vector<1x120x128xf32>
    %56 = vector.shape_cast %55 : vector<1x120x128xf32> to vector<120x128xf32>
    %cst_62 = arith.constant dense<0.000000e+00> : vector<2x128xf32>
    %57 = tpu.matmul %54, %56, %cst_62 {dimension_numbers = #tpu.dot_dimension_numbers<[1], [0], [0], [1], [0, 0, 1, 1], [], []>} : vector<2x120xf32>, vector<120x128xf32>, vector<2x128xf32> -> vector<2x128xf32>
    %58 = arith.addf %53, %57 : vector<2x128xf32>
    %c8 = arith.constant 8 : index
    %c0_63 = arith.constant 0 : index
    %59 = vector.load %arg21[%c8, %c0_63] : memref<24x120xf32, #tpu.memory_space<vmem>>, vector<2x120xf32>
    %c4_64 = arith.constant 4 : index
    %c0_65 = arith.constant 0 : index
    %c0_66 = arith.constant 0 : index
    %60 = vector.load %arg6[%c4_64, %c0_65, %c0_66] : memref<12x120x128xf32, #tpu.memory_space<vmem>>, vector<1x120x128xf32>
    %61 = vector.shape_cast %60 : vector<1x120x128xf32> to vector<120x128xf32>
    %cst_67 = arith.constant dense<0.000000e+00> : vector<2x128xf32>
    %62 = tpu.matmul %59, %61, %cst_67 {dimension_numbers = #tpu.dot_dimension_numbers<[1], [0], [0], [1], [0, 0, 1, 1], [], []>} : vector<2x120xf32>, vector<120x128xf32>, vector<2x128xf32> -> vector<2x128xf32>
    %63 = arith.addf %58, %62 : vector<2x128xf32>
    %c10 = arith.constant 10 : index
    %c0_68 = arith.constant 0 : index
    %64 = vector.load %arg21[%c10, %c0_68] : memref<24x120xf32, #tpu.memory_space<vmem>>, vector<2x120xf32>
    %c5 = arith.constant 5 : index
    %c0_69 = arith.constant 0 : index
    %c0_70 = arith.constant 0 : index
    %65 = vector.load %arg6[%c5, %c0_69, %c0_70] : memref<12x120x128xf32, #tpu.memory_space<vmem>>, vector<1x120x128xf32>
    %66 = vector.shape_cast %65 : vector<1x120x128xf32> to vector<120x128xf32>
    %cst_71 = arith.constant dense<0.000000e+00> : vector<2x128xf32>
    %67 = tpu.matmul %64, %66, %cst_71 {dimension_numbers = #tpu.dot_dimension_numbers<[1], [0], [0], [1], [0, 0, 1, 1], [], []>} : vector<2x120xf32>, vector<120x128xf32>, vector<2x128xf32> -> vector<2x128xf32>
    %68 = arith.addf %63, %67 : vector<2x128xf32>
    %c12 = arith.constant 12 : index
    %c0_72 = arith.constant 0 : index
    %69 = vector.load %arg21[%c12, %c0_72] : memref<24x120xf32, #tpu.memory_space<vmem>>, vector<2x120xf32>
    %c6_73 = arith.constant 6 : index
    %c0_74 = arith.constant 0 : index
    %c0_75 = arith.constant 0 : index
    %70 = vector.load %arg6[%c6_73, %c0_74, %c0_75] : memref<12x120x128xf32, #tpu.memory_space<vmem>>, vector<1x120x128xf32>
    %71 = vector.shape_cast %70 : vector<1x120x128xf32> to vector<120x128xf32>
    %cst_76 = arith.constant dense<0.000000e+00> : vector<2x128xf32>
    %72 = tpu.matmul %69, %71, %cst_76 {dimension_numbers = #tpu.dot_dimension_numbers<[1], [0], [0], [1], [0, 0, 1, 1], [], []>} : vector<2x120xf32>, vector<120x128xf32>, vector<2x128xf32> -> vector<2x128xf32>
    %73 = arith.addf %68, %72 : vector<2x128xf32>
    %c14 = arith.constant 14 : index
    %c0_77 = arith.constant 0 : index
    %74 = vector.load %arg21[%c14, %c0_77] : memref<24x120xf32, #tpu.memory_space<vmem>>, vector<2x120xf32>
    %c7 = arith.constant 7 : index
    %c0_78 = arith.constant 0 : index
    %c0_79 = arith.constant 0 : index
    %75 = vector.load %arg6[%c7, %c0_78, %c0_79] : memref<12x120x128xf32, #tpu.memory_space<vmem>>, vector<1x120x128xf32>
    %76 = vector.shape_cast %75 : vector<1x120x128xf32> to vector<120x128xf32>
    %cst_80 = arith.constant dense<0.000000e+00> : vector<2x128xf32>
    %77 = tpu.matmul %74, %76, %cst_80 {dimension_numbers = #tpu.dot_dimension_numbers<[1], [0], [0], [1], [0, 0, 1, 1], [], []>} : vector<2x120xf32>, vector<120x128xf32>, vector<2x128xf32> -> vector<2x128xf32>
    %78 = arith.addf %73, %77 : vector<2x128xf32>
    %c16 = arith.constant 16 : index
    %c0_81 = arith.constant 0 : index
    %79 = vector.load %arg21[%c16, %c0_81] : memref<24x120xf32, #tpu.memory_space<vmem>>, vector<2x120xf32>
    %c8_82 = arith.constant 8 : index
    %c0_83 = arith.constant 0 : index
    %c0_84 = arith.constant 0 : index
    %80 = vector.load %arg6[%c8_82, %c0_83, %c0_84] : memref<12x120x128xf32, #tpu.memory_space<vmem>>, vector<1x120x128xf32>
    %81 = vector.shape_cast %80 : vector<1x120x128xf32> to vector<120x128xf32>
    %cst_85 = arith.constant dense<0.000000e+00> : vector<2x128xf32>
    %82 = tpu.matmul %79, %81, %cst_85 {dimension_numbers = #tpu.dot_dimension_numbers<[1], [0], [0], [1], [0, 0, 1, 1], [], []>} : vector<2x120xf32>, vector<120x128xf32>, vector<2x128xf32> -> vector<2x128xf32>
    %83 = arith.addf %78, %82 : vector<2x128xf32>
    %c18 = arith.constant 18 : index
    %c0_86 = arith.constant 0 : index
    %84 = vector.load %arg21[%c18, %c0_86] : memref<24x120xf32, #tpu.memory_space<vmem>>, vector<2x120xf32>
    %c9 = arith.constant 9 : index
    %c0_87 = arith.constant 0 : index
    %c0_88 = arith.constant 0 : index
    %85 = vector.load %arg6[%c9, %c0_87, %c0_88] : memref<12x120x128xf32, #tpu.memory_space<vmem>>, vector<1x120x128xf32>
    %86 = vector.shape_cast %85 : vector<1x120x128xf32> to vector<120x128xf32>
    %cst_89 = arith.constant dense<0.000000e+00> : vector<2x128xf32>
    %87 = tpu.matmul %84, %86, %cst_89 {dimension_numbers = #tpu.dot_dimension_numbers<[1], [0], [0], [1], [0, 0, 1, 1], [], []>} : vector<2x120xf32>, vector<120x128xf32>, vector<2x128xf32> -> vector<2x128xf32>
    %88 = arith.addf %83, %87 : vector<2x128xf32>
    %c20 = arith.constant 20 : index
    %c0_90 = arith.constant 0 : index
    %89 = vector.load %arg21[%c20, %c0_90] : memref<24x120xf32, #tpu.memory_space<vmem>>, vector<2x120xf32>
    %c10_91 = arith.constant 10 : index
    %c0_92 = arith.constant 0 : index
    %c0_93 = arith.constant 0 : index
    %90 = vector.load %arg6[%c10_91, %c0_92, %c0_93] : memref<12x120x128xf32, #tpu.memory_space<vmem>>, vector<1x120x128xf32>
    %91 = vector.shape_cast %90 : vector<1x120x128xf32> to vector<120x128xf32>
    %cst_94 = arith.constant dense<0.000000e+00> : vector<2x128xf32>
    %92 = tpu.matmul %89, %91, %cst_94 {dimension_numbers = #tpu.dot_dimension_numbers<[1], [0], [0], [1], [0, 0, 1, 1], [], []>} : vector<2x120xf32>, vector<120x128xf32>, vector<2x128xf32> -> vector<2x128xf32>
    %93 = arith.addf %88, %92 : vector<2x128xf32>
    %c22 = arith.constant 22 : index
    %c0_95 = arith.constant 0 : index
    %94 = vector.load %arg21[%c22, %c0_95] : memref<24x120xf32, #tpu.memory_space<vmem>>, vector<2x120xf32>
    %c11 = arith.constant 11 : index
    %c0_96 = arith.constant 0 : index
    %c0_97 = arith.constant 0 : index
    %95 = vector.load %arg6[%c11, %c0_96, %c0_97] : memref<12x120x128xf32, #tpu.memory_space<vmem>>, vector<1x120x128xf32>
    %96 = vector.shape_cast %95 : vector<1x120x128xf32> to vector<120x128xf32>
    %cst_98 = arith.constant dense<0.000000e+00> : vector<2x128xf32>
    %97 = tpu.matmul %94, %96, %cst_98 {dimension_numbers = #tpu.dot_dimension_numbers<[1], [0], [0], [1], [0, 0, 1, 1], [], []>} : vector<2x120xf32>, vector<120x128xf32>, vector<2x128xf32> -> vector<2x128xf32>
    %98 = arith.addf %93, %97 : vector<2x128xf32>
    %c0_99 = arith.constant 0 : index
    %c0_100 = arith.constant 0 : index
    %99 = vector.load %arg7[%c0_99, %c0_100] : memref<1x128xf32, #tpu.memory_space<vmem>>, vector<1x128xf32>
    %100 = vector.broadcast %99 : vector<1x128xf32> to vector<2x128xf32>
    %101 = arith.addf %98, %100 : vector<2x128xf32>
    %cst_101 = arith.constant 0.000000e+00 : f32
    %102 = vector.broadcast %cst_101 : f32 to vector<2x128xf32>
    %103 = arith.maximumf %101, %102 : vector<2x128xf32>
    %c0_102 = arith.constant 0 : index
    %c0_103 = arith.constant 0 : index
    %104 = vector.load %arg8[%c0_102, %c0_103] : memref<128x20xf32, #tpu.memory_space<vmem>>, vector<128x20xf32>
    %cst_104 = arith.constant dense<0.000000e+00> : vector<2x20xf32>
    %105 = tpu.matmul %103, %104, %cst_104 {dimension_numbers = #tpu.dot_dimension_numbers<[1], [0], [0], [1], [0, 0, 1, 1], [], []>} : vector<2x128xf32>, vector<128x20xf32>, vector<2x20xf32> -> vector<2x20xf32>
    %c0_105 = arith.constant 0 : index
    %c0_106 = arith.constant 0 : index
    %106 = vector.load %arg9[%c0_105, %c0_106] : memref<1x20xf32, #tpu.memory_space<vmem>>, vector<1x20xf32>
    %107 = vector.broadcast %106 : vector<1x20xf32> to vector<2x20xf32>
    %108 = arith.addf %105, %107 : vector<2x20xf32>
    %cst_107 = arith.constant 0.000000e+00 : f32
    %109 = vector.broadcast %cst_107 : f32 to vector<2x20xf32>
    %110 = arith.maximumf %108, %109 : vector<2x20xf32>
    %c0_108 = arith.constant 0 : index
    %c0_109 = arith.constant 0 : index
    %111 = vector.load %arg10[%c0_108, %c0_109] : memref<20x40xf32, #tpu.memory_space<vmem>>, vector<20x40xf32>
    %cst_110 = arith.constant dense<0.000000e+00> : vector<2x40xf32>
    %112 = tpu.matmul %110, %111, %cst_110 {dimension_numbers = #tpu.dot_dimension_numbers<[1], [0], [0], [1], [0, 0, 1, 1], [], []>} : vector<2x20xf32>, vector<20x40xf32>, vector<2x40xf32> -> vector<2x40xf32>
    %c0_111 = arith.constant 0 : index
    %c0_112 = arith.constant 0 : index
    %113 = vector.load %arg11[%c0_111, %c0_112] : memref<1x40xf32, #tpu.memory_space<vmem>>, vector<1x40xf32>
    %114 = vector.broadcast %113 : vector<1x40xf32> to vector<2x40xf32>
    %115 = arith.addf %112, %114 : vector<2x40xf32>
    %c0_113 = arith.constant 0 : index
    %c0_114 = arith.constant 0 : index
    %116 = vector.load %arg19[%c0_113, %c0_114] : memref<2x40xf32, #tpu.memory_space<vmem>>, vector<2x40xf32>
    tpu.vector_store %arg19[%c0_113, %c0_114], %115 {strides = array<i32>} : memref<2x40xf32, #tpu.memory_space<vmem>>, vector<2x40xf32>,
    %117 = vector.extract_strided_slice %115 {offsets = [0, 0], sizes = [2, 20], strides = [1, 1]} : vector<2x40xf32> to vector<2x20xf32>
    %118 = vector.extract_strided_slice %115 {offsets = [0, 20], sizes = [2, 20], strides = [1, 1]} : vector<2x40xf32> to vector<2x20xf32>
    %c0_115 = arith.constant 0 : index
    %c0_116 = arith.constant 0 : index
    %119 = vector.load %arg1[%c0_115, %c0_116] : memref<2x20xf32, #tpu.memory_space<vmem>>, vector<2x20xf32>
    %cst_117 = arith.constant 5.000000e-01 : f32
    %120 = vector.broadcast %cst_117 : f32 to vector<2x20xf32>
    %121 = arith.mulf %118, %120 : vector<2x20xf32>
    %122 = math.exp %121 : vector<2x20xf32>
    %123 = arith.mulf %119, %122 : vector<2x20xf32>
    %124 = arith.addf %117, %123 : vector<2x20xf32>
    %c0_118 = arith.constant 0 : index
    %c0_119 = arith.constant 0 : index
    %125 = vector.load %arg12[%c0_118, %c0_119] : memref<20x128xf32, #tpu.memory_space<vmem>>, vector<20x128xf32>
    %cst_120 = arith.constant dense<0.000000e+00> : vector<2x128xf32>
    %126 = tpu.matmul %124, %125, %cst_120 {dimension_numbers = #tpu.dot_dimension_numbers<[1], [0], [0], [1], [0, 0, 1, 1], [], []>} : vector<2x20xf32>, vector<20x128xf32>, vector<2x128xf32> -> vector<2x128xf32>
    %c0_121 = arith.constant 0 : index
    %c0_122 = arith.constant 0 : index
    %127 = vector.load %arg13[%c0_121, %c0_122] : memref<1x128xf32, #tpu.memory_space<vmem>>, vector<1x128xf32>
    %128 = vector.broadcast %127 : vector<1x128xf32> to vector<2x128xf32>
    %129 = arith.addf %126, %128 : vector<2x128xf32>
    %cst_123 = arith.constant 0.000000e+00 : f32
    %130 = vector.broadcast %cst_123 : f32 to vector<2x128xf32>
    %131 = arith.maximumf %129, %130 : vector<2x128xf32>
    %c0_124 = arith.constant 0 : index
    %c0_125 = arith.constant 0 : index
    %132 = vector.load %arg14[%c0_124, %c0_125] : memref<128x512xf32, #tpu.memory_space<vmem>>, vector<128x512xf32>
    %cst_126 = arith.constant dense<0.000000e+00> : vector<2x512xf32>
    %133 = tpu.matmul %131, %132, %cst_126 {dimension_numbers = #tpu.dot_dimension_numbers<[1], [0], [0], [1], [0, 0, 1, 1], [], []>} : vector<2x128xf32>, vector<128x512xf32>, vector<2x512xf32> -> vector<2x512xf32>
    %c0_127 = arith.constant 0 : index
    %c0_128 = arith.constant 0 : index
    %134 = vector.load %arg15[%c0_127, %c0_128] : memref<1x512xf32, #tpu.memory_space<vmem>>, vector<1x512xf32>
    %135 = vector.broadcast %134 : vector<1x512xf32> to vector<2x512xf32>
    %136 = arith.addf %133, %135 : vector<2x512xf32>
    %cst_129 = arith.constant 0.000000e+00 : f32
    %137 = vector.broadcast %cst_129 : f32 to vector<2x512xf32>
    %138 = arith.maximumf %136, %137 : vector<2x512xf32>
    %c0_130 = arith.constant 0 : index
    %c0_131 = arith.constant 0 : index
    %139 = vector.load %arg16[%c0_130, %c0_131] : memref<512x256xf32, #tpu.memory_space<vmem>>, vector<512x256xf32>
    %cst_132 = arith.constant dense<0.000000e+00> : vector<2x256xf32>
    %140 = tpu.matmul %138, %139, %cst_132 {dimension_numbers = #tpu.dot_dimension_numbers<[1], [0], [0], [1], [0, 0, 1, 1], [], []>} : vector<2x512xf32>, vector<512x256xf32>, vector<2x256xf32> -> vector<2x256xf32>
    %c0_133 = arith.constant 0 : index
    %c0_134 = arith.constant 0 : index
    %141 = vector.load %arg17[%c0_133, %c0_134] : memref<1x256xf32, #tpu.memory_space<vmem>>, vector<1x256xf32>
    %142 = vector.broadcast %141 : vector<1x256xf32> to vector<2x256xf32>
    %143 = arith.addf %140, %142 : vector<2x256xf32>
    %144 = arith.negf %143 : vector<2x256xf32>
    %145 = math.exp %144 : vector<2x256xf32>
    %cst_135 = arith.constant 1.000000e+00 : f32
    %146 = vector.broadcast %cst_135 : f32 to vector<2x256xf32>
    %147 = arith.addf %146, %145 : vector<2x256xf32>
    %148 = arith.divf %146, %147 : vector<2x256xf32>
    %c0_136 = arith.constant 0 : index
    %c0_137 = arith.constant 0 : index
    %149 = vector.load %arg18[%c0_136, %c0_137] : memref<2x256xf32, #tpu.memory_space<vmem>>, vector<2x256xf32>
    tpu.vector_store %arg18[%c0_136, %c0_137], %148 {strides = array<i32>} : memref<2x256xf32, #tpu.memory_space<vmem>>, vector<2x256xf32>,
    return
  }
}

</mosaic_0001>

<bundles_post_ra>
// kernel: bvae_forward.1
= control target key start
LH: loop header
LB: loop body
LE: loop exit
PB: predicated region body
PF: predicated region fallthrough
CT: control target
= control target key end

     0   :  { %s7083_s0 = inlined_call_operand.vmem [shape: f32[32,16], index: 0, kind: input, shape index: {}]   ;;  %s7084_s1 = inlined_call_operand.vmem [shape: f32[2,20], index: 1, kind: input, shape index: {}]   ;;  %s7085_s2 = inlined_call_operand.hbm [shape: f32[3,16,560], index: 2, kind: input, shape index: {}]   ;;  %s7086_s3 = inlined_call_operand.vmem [shape: f32[1,560], index: 3, kind: input, shape index: {}]   ;;  %s7087_s4 = inlined_call_operand.hbm [shape: f32[3,560,120], index: 4, kind: input, shape index: {}]   ;;  %s7088_s5 = inlined_call_operand.vmem [shape: f32[1,120], index: 5, kind: input, shape index: {}]   ;;  %s7089_s6 = inlined_call_operand.hbm [shape: f32[12,120,128], index: 6, kind: input, shape index: {}]   ;;  %s7090_s7 = inlined_call_operand.vmem [shape: f32[1,128], index: 7, kind: input, shape index: {}]   ;;  %s7091_s8 = inlined_call_operand.vmem [shape: f32[128,20], index: 8, kind: input, shape index: {}]   ;;  %s7092_s9 = inlined_call_operand.vmem [shape: f32[1,20], index: 9, kind: input, shape index: {}]   ;;  %s7093_s10 = inlined_call_operand.vmem [shape: f32[20,40], index: 10, kind: input, shape index: {}]   ;;  %s7094_s11 = inlined_call_operand.vmem [shape: f32[1,40], index: 11, kind: input, shape index: {}]   ;;  %s7095_s12 = inlined_call_operand.vmem [shape: f32[20,128], index: 12, kind: input, shape index: {}]   ;;  %s7096_s13 = inlined_call_operand.vmem [shape: f32[1,128], index: 13, kind: input, shape index: {}]   ;;  %s7097_s14 = inlined_call_operand.hbm [shape: f32[128,512], index: 14, kind: input, shape index: {}]   ;;  %s7098_s15 = inlined_call_operand.vmem [shape: f32[1,512], index: 15, kind: input, shape index: {}]   ;;  %s7099_s16 = inlined_call_operand.hbm [shape: f32[512,256], index: 16, kind: input, shape index: {}]   ;;  %s7100_s17 = inlined_call_operand.vmem [shape: f32[1,256], index: 17, kind: input, shape index: {}]   ;;  %s7101_s18 = inlined_call_operand.vmem [shape: f32[2,256], index: 18, kind: output, shape index: {0}]   ;;  %s7102_s19 = inlined_call_operand.vmem [shape: f32[2,40], index: 19, kind: output, shape index: {1}]  }
   0x1   :  { %7109 = sst [smem:[#allocation15_spill]] %s7083_s0 }
   0x2   :  { %7110 = sst [smem:[#allocation16_spill]] %s7084_s1 }
   0x3   :  { %7111 = sst [smem:[#allocation17_spill]] %s7085_s2 }
   0x4   :  { %7112 = sst [smem:[#allocation18_spill]] %s7086_s3 }
   0x5   :  { %25 = vsyncpa [#allocation5], 0 }
   0x6   :  { %26 = vsyncpa [#allocation7], 0 }
   0x7   :  { %27 = vsyncpa [#allocation10], 0  ;;  %s6204_s0 = smov [#allocation6]   ;;  %s6088_s1 = scalar_lea.hbm %s7087_s4, 26880 }
   0x8   :  { %s51_s30 = sshll.u32 %s6204_s0, 4  ;;  %p6089_p0 = scmp.ne.s32.totalorder %s7087_s4, %s6088_s1  ;;  %s52_s30 = int_to_ptr.vmem [resolvable:$true] %s51_s30 }
   0x9   :  { %p6092_p1 = scmp.lt.u32.totalorder %s6088_s1, %s7087_s4 }
   0xb   :  { %p6094_p2 = pnand %p6092_p1, %p6089_p0 }
   0xd   :  { %6097 = shalt.err (!%p6094_p2)
}
   0xe   :  { %s6098_s25 = scalar_lea.vmem %s52_s30, 26880  ;;  %p6103_p4 = scmp.lt.s32.totalorder %s52_s30, %s52_s30 }
   0xf   :  { %p6099_p3 = scmp.ne.s32.totalorder %s52_s30, %s6098_s25  ;;  %p6104_p5 = scmp.lt.s32.totalorder %s6098_s25, %s6098_s25 }
  0x11   :  { %p6105_p6 = por %p6104_p5, %p6103_p4 }
  0x13   :  { %p6106_p7 = pnand %p6105_p6, %p6099_p3 }
  0x15   :  { %6109 = shalt.err (!%p6106_p7)
}
  0x16   :  { %s7105_s3 = smov 128   ;;  %s7106_s26 = smov 8  }
  0x17   :  { %57 = dma.hbm_to_vmem [thread:$0]  %s7087_s4, 26880, %s52_s30, [#allocation7], %s7105_s3, %s7105_s3, %s7106_s26  }
  0x18   :  { %s6207_s29 = smov [#allocation9]   ;;  %s6110_s1 = scalar_lea.hbm %s7097_s14, 8192 }
  0x19   :  { %s91_s0 = sshll.u32 %s6207_s29, 4  ;;  %p6111_p8 = scmp.ne.s32.totalorder %s7097_s14, %s6110_s1  ;;  %s92_s0 = int_to_ptr.vmem [resolvable:$true] %s91_s0 }
  0x1a   :  { %p6114_p9 = scmp.lt.u32.totalorder %s6110_s1, %s7097_s14 }
  0x1c   :  { %p6116_p10 = pnand %p6114_p9, %p6111_p8 }
  0x1e   :  { %6119 = shalt.err (!%p6116_p10)
}
  0x1f   :  { %s6120_s25 = scalar_lea.vmem %s92_s0, 8192  ;;  %p6125_p12 = scmp.lt.s32.totalorder %s92_s0, %s92_s0 }
  0x20   :  { %p6121_p11 = scmp.ne.s32.totalorder %s92_s0, %s6120_s25  ;;  %p6126_p13 = scmp.lt.s32.totalorder %s6120_s25, %s6120_s25 }
  0x22   :  { %p6127_p0 = por %p6126_p13, %p6125_p12 }
  0x24   :  { %p6128_p1 = pnand %p6127_p0, %p6121_p11 }
  0x26   :  { %6131 = shalt.err (!%p6128_p1)
}
  0x27   :  { %s6208_s4 = smov 512   ;;  %s6209_s30 = smov 32  }
  0x28   :  { %97 = dma.hbm_to_vmem [thread:$0]  %s7097_s14, 8192, %s92_s0, [#allocation10], %s6208_s4, %s6208_s4, %s6209_s30  }
  0x29   :  { %s6210_s29 = smov [#allocation4]   ;;  %s7113_s22 = sld [smem:[#allocation17_spill]] }
  0x2a   :  { %s37_s20 = sshll.u32 %s6210_s29, 4  ;;  %s38_s20 = int_to_ptr.vmem [resolvable:$true] %s37_s20 }
  0x2f   :  { %s6132_s2 = scalar_lea.hbm %s7113_s22, 3840 }
  0x30   :  { %p6133_p2 = scmp.ne.s32.totalorder %s7113_s22, %s6132_s2  ;;  %p6136_p3 = scmp.lt.u32.totalorder %s6132_s2, %s7113_s22 }
  0x32   :  { %p6138_p4 = pnand %p6136_p3, %p6133_p2 }
  0x34   :  { %6141 = shalt.err (!%p6138_p4)
}
  0x35   :  { %s6142_s26 = scalar_lea.vmem %s38_s20, 3840  ;;  %p6147_p6 = scmp.lt.s32.totalorder %s38_s20, %s38_s20 }
  0x36   :  { %p6143_p5 = scmp.ne.s32.totalorder %s38_s20, %s6142_s26  ;;  %p6148_p7 = scmp.lt.s32.totalorder %s6142_s26, %s6142_s26 }
  0x38   :  { %p6149_p8 = por %p6148_p7, %p6147_p6 }
  0x3a   :  { %p6150_p9 = pnand %p6149_p8, %p6143_p5 }
  0x3c   :  { %6153 = shalt.err (!%p6150_p9)
}
  0x3d   :  { %s6211_s14 = smov 640   ;;  %s6212_s0 = smov 40  }
  0x3e   :  { %43 = dma.hbm_to_vmem [thread:$0]  %s7113_s22, 3840, %s38_s20, [#allocation5], %s6211_s14, %s6211_s14, %s6212_s0  }
  0x3f   :  { %s6213_s27 = smov [#allocation8]   ;;  %s6214_s3 = smov [#allocation11]  }
  0x40   :  { %s65_s28 = sshll.u32 %s6213_s27, 4  ;;  %s105_s29 = sshll.u32 %s6214_s3, 4  ;;  %s66_s28 = int_to_ptr.vmem [resolvable:$true] %s65_s28  ;;  %s106_s29 = int_to_ptr.vmem [resolvable:$true] %s105_s29 }
  0x41   :  { %s6154_s2 = scalar_lea.hbm %s7089_s6, 23040 }
  0x42   :  { %p6155_p10 = scmp.ne.s32.totalorder %s7089_s6, %s6154_s2  ;;  %p6158_p11 = scmp.lt.u32.totalorder %s6154_s2, %s7089_s6 }
  0x44   :  { %p6160_p12 = pnand %p6158_p11, %p6155_p10 }
  0x46   :  { %6163 = shalt.err (!%p6160_p12)
}
  0x47   :  { %s6164_s20 = scalar_lea.vmem %s66_s28, 23040  ;;  %p6169_p0 = scmp.lt.s32.totalorder %s66_s28, %s66_s28 }
  0x48   :  { %p6165_p13 = scmp.ne.s32.totalorder %s66_s28, %s6164_s20  ;;  %p6170_p1 = scmp.lt.s32.totalorder %s6164_s20, %s6164_s20 }
  0x4a   :  { %p6171_p2 = por %p6170_p1, %p6169_p0 }
  0x4c   :  { %p6172_p3 = pnand %p6171_p2, %p6165_p13 }
  0x4e   :  { %6175 = shalt.err (!%p6172_p3)
}
  0x4f   :  { %s7114_s22 = smov 8   ;;  %s7115_s14 = smov 128  }
  0x50   :  { %71 = dma.hbm_to_vmem [thread:$0]  %s7089_s6, 23040, %s66_s28, [#allocation7], %s7115_s14, %s7115_s14, %s7114_s22  }
  0x51   :  { %s6176_s3 = scalar_lea.hbm %s7099_s16, 16384 }
  0x52   :  { %p6177_p4 = scmp.ne.s32.totalorder %s7099_s16, %s6176_s3  ;;  %p6180_p5 = scmp.lt.u32.totalorder %s6176_s3, %s7099_s16 }
  0x54   :  { %p6182_p6 = pnand %p6180_p5, %p6177_p4 }
  0x56   :  { %6185 = shalt.err (!%p6182_p6)
}
  0x57   :  { %s6186_s26 = scalar_lea.vmem %s106_s29, 16384  ;;  %p6191_p8 = scmp.lt.s32.totalorder %s106_s29, %s106_s29 }
  0x58   :  { %p6187_p7 = scmp.ne.s32.totalorder %s106_s29, %s6186_s26  ;;  %p6192_p9 = scmp.lt.s32.totalorder %s6186_s26, %s6186_s26 }
  0x5a   :  { %p6193_p10 = por %p6192_p9, %p6191_p8 }
  0x5c   :  { %p6194_p11 = pnand %p6193_p10, %p6187_p7 }
  0x5e   :  { %6197 = shalt.err (!%p6194_p11)
}
  0x5f   :  { %s6215_s6 = smov 256   ;;  %s6216_s28 = smov 16  }
  0x60   :  { %111 = dma.hbm_to_vmem [thread:$0]  %s7099_s16, 16384, %s106_s29, [#allocation10], %s6215_s6, %s6215_s6, %s6216_s28  }
  0x61   :  { %6198 = dma.done.wait [#allocation5], 3840  }
  0x62   :  { %6199 = vsyncadd [#allocation5], 4294963456 }
  0x63   :  { %6200 = dma.done.wait [#allocation7], 49920  }
  0x64   :  { %6201 = vsyncadd [#allocation7], 4294917376 }
  0x65   :  { %6202 = dma.done.wait [#allocation10], 24576  }
  0x66   :  { %6203 = vsyncadd [#allocation10], 4294942720  ;;  %v6217_v0 = vmov 0.0   ;;  %v149_v1 = vld [vmem:[#allocation4 + $0x58] sm:$0xff]  ;;  %v154_v2 = vld [vmem:[#allocation4 + $0x80] sm:$0xff]  ;;  %s7116_s16 = sld [smem:[#allocation15_spill]] }
  0x67   :  { %235 = vmatprep.mubr.f32.mxu0 %v6217_v0  ;;  %247 = vmatprep.mubr.f32.mxu1 %v6217_v0  ;;  %v148_v3 = vld [vmem:[#allocation4 + $0x50] sm:$0xff]  ;;  %v5286_v4 = vpack.c.bf16 %v154_v2, %v149_v1  ;;  %v153_v5 = vld [vmem:[#allocation4 + $0x78] sm:$0xff]  ;;  %v151_v12 = vld [vmem:[#allocation4 + $0x68] sm:$0xff]  ;;  %vm158_vm0 = vcmask 130048   ;;  %s7117_s27 = sld [smem:[#allocation18_spill]]  ;;  %vm1294_vm1 = vcmask 1045504  }
  0x68   :  { %v5288_v6 = vpack.c.bf16 %v153_v5, %v148_v3  ;;  %v152_v8 = vld [vmem:[#allocation4 + $0x70] sm:$0xff]  ;;  %v157_v9 = vld [vmem:[#allocation4 + $0x98] sm:$0xff]  ;;  %v150_v15 = vld [vmem:[#allocation4 + $0x60] sm:$0xff]  ;;  %vm1090_vm2 = vcmask 392192   ;;  %vm1926_vm3 = vcmask 1043456   ;;  %vm1106_vm4 = vcmask 388096  }
  0x69   :  { %5287 = vmatprep.subr.bf16.mxu0 %v5286_v4  ;;  %6015 = vmatprep.subr.bf16.mxu1 %v5286_v4  ;;  %v5294_v11 = vpack.c.bf16 %v157_v9, %v152_v8  ;;  %v156_v13 = vld [vmem:[#allocation4 + $0x90] sm:$0xff]  ;;  %v155_v16 = vld [vmem:[#allocation4 + $0x88] sm:$0xff]  ;;  %v136_v21 = vld [vmem:[#allocation4 + $0x18] sm:$0xff]  ;;  %vm6219_vm5 = vmmov 0   ;;  %vm2236_vm6 = vcmask 982016   ;;  %vm3442_vm7 = vcmask 162816  }
  0x6a   :  { %5289 = vmatpush1.bf16.msra.mxu0 %v5288_v6  ;;  %6016 = vmatpush1.bf16.msra.mxu1 %v5288_v6  ;;  %v5290_v14 = vpack.c.bf16 %v156_v13, %v151_v12  ;;  %v134_v17 = vld [vmem:[#allocation4 + $0x8] sm:$0xff]  ;;  %v5292_v18 = vpack.c.bf16 %v155_v16, %v150_v15  ;;  %v139_v19 = vld [vmem:[#allocation4 + $0x30] sm:$0xff]  ;;  %v141_v22 = vld [vmem:[#allocation4 + $0x40] sm:$0xff]  ;;  %vm3519_vm8 = vcmask 320512   ;;  %s7118_s25 = sld [smem:[#allocation16_spill]] }
  0x6b   :  { %5295 = vmatprep.subr.bf16.mxu0 %v5294_v11  ;;  %v5298_v20 = vpack.c.bf16 %v139_v19, %v134_v17  ;;  %v5302_v25 = vpack.c.bf16 %v141_v22, %v136_v21  ;;  %v133_v26 = vld [vmem:[#allocation4] sm:$0xff]  ;;  %v138_v27 = vld [vmem:[#allocation4 + $0x28] sm:$0xff]  ;;  %v135_v30 = vld [vmem:[#allocation4 + $0x10] sm:$0xff] }
  0x6c   :  { %v143_v7 = vld [vmem:[%s7116_s16 + $0x2] sm:$0xff]  ;;  %v145_v10 = vld [vmem:[%s7116_s16 + $0x12] sm:$0xff]  ;;  %5291 = vmatprep.subr.bf16.mxu1 %v5290_v14  ;;  %v144_v23 = vld [vmem:[%s7116_s16 + $0xa] sm:$0xff]  ;;  %v5300_v32 = vpack.c.bf16 %v138_v27, %v133_v26 }
  0x6d   :  { %4167 = vmatmul.mubr.msk.f32.vlgmr.msra.gmra.mrb[0].mxu0 %vm158_vm0, %v143_v7  ;;  %4169 = vmatmul.mubr.msk.f32.vlgmr.msra.gmra.mrb[0].mxu1 %vm158_vm0, %v145_v10  ;;  %v146_v24 = vld [vmem:[%s7116_s16 + $0x1a] sm:$0xf]  ;;  %v142_v29 = vld [vmem:[#allocation4 + $0x48] sm:$0xff]  ;;  %v140_v31 = vld [vmem:[#allocation4 + $0x38] sm:$0xff] }
  0x6e   :  { %5297 = vmatpush3.bf16.msra.mxu0 %v5294_v11  ;;  %241 = vmatprep.mubr.f32.mxu0 %v6217_v0  ;;  %v137_v28 = vld [vmem:[#allocation4 + $0x20] sm:$0xff]  ;;  %v5304_v34 = vpack.c.bf16 %v140_v31, %v135_v30  ;;  %v717_v35 = vld [vmem:[#allocation4 + $0xb8] sm:$0xff]  ;;  %v715_v38 = vld [vmem:[#allocation4 + $0xa8] sm:$0xff] }
  0x6f   :  { %253 = vmatprep.mubr.f32.mxu1 %v6217_v0  ;;  %5293 = vmatpush1.bf16.msra.mxu1 %v5292_v18  ;;  %v5306_v33 = vpack.c.bf16 %v142_v29, %v137_v28  ;;  %v722_v36 = vld [vmem:[#allocation4 + $0xe0] sm:$0xff]  ;;  %v720_v39 = vld [vmem:[#allocation4 + $0xd0] sm:$0xff]  ;;  %v129_v40 = vld [vmem:[%s7116_s16] sm:$0xff] }
  0x70   :  { %5299 = vmatprep.subr.bf16.mxu0 %v5298_v20  ;;  %5303 = vmatprep.subr.bf16.mxu1 %v5302_v25  ;;  %v5314_v37 = vpack.c.bf16 %v722_v36, %v717_v35  ;;  %v5310_v41 = vpack.c.bf16 %v720_v39, %v715_v38  ;;  %v130_v42 = vld [vmem:[%s7116_s16 + $0x8] sm:$0xff]  ;;  %v721_v44 = vld [vmem:[#allocation4 + $0xd8] sm:$0xff]  ;;  %v1220_v45 = vld [vmem:[#allocation6 + $0x2b0] sm:$0xff] }
  0x71   :  { %4168 = vmatmul.mubr.msk.f32.gmra.mrb[2].mxu0 %vm158_vm0, %v144_v23  ;;  %4170 = vmatmul.mubr.msk.f32.gmra.mrb[2].mxu1 %vm158_vm0, %v146_v24  ;;  %v716_v43 = vld [vmem:[#allocation4 + $0xb0] sm:$0xff]  ;;  %v1221_v46 = vld [vmem:[#allocation6 + $0x2b8] sm:$0xff]  ;;  %v131_v47 = vld [vmem:[%s7116_s16 + $0x10] sm:$0xff] }
  0x72   :  { %324 = vmatprep.mubr.f32.mxu1 %v6217_v0  ;;  %4748 = vmatprep.mubr.msk.f32.mxu0 %vm158_vm0, %v143_v7  ;;  %v5316_v48 = vpack.c.bf16 %v721_v44, %v716_v43  ;;  %v5322_v49 = vpack.c.bf16 %v1221_v46, %v1220_v45  ;;  %v132_v50 = vld [vmem:[%s7116_s16 + $0x18] sm:$0xf]  ;;  %v719_v52 = vld [vmem:[#allocation4 + $0xc8] sm:$0xff]  ;;  %v710_v1 = vld [vmem:[%s7116_s16 + $0xc] sm:$0xff] }
  0x73   :  { %v714_v51 = vld [vmem:[#allocation4 + $0xa0] sm:$0xff]  ;;  %v723_v54 = vld [vmem:[#allocation4 + $0xe8] sm:$0xff]  ;;  %v1255_v8 = vld [vmem:[#allocation6 + $0x3c8] sm:$0xff] }
  0x74   :  { %v718_v53 = vld [vmem:[#allocation4 + $0xc0] sm:$0xff]  ;;  %v5312_v55 = vpack.c.bf16 %v719_v52, %v714_v51  ;;  %v1205_v58 = vld [vmem:[#allocation6 + $0x238] sm:$0xff]  ;;  %v1223_v11 = vld [vmem:[#allocation6 + $0x2c8] sm:$0xff] }
  0x75   :  { %4171 = vmatmul.mubr.msk.f32.vlgmr.msra.gmra.mrb[4].mxu1 %vm158_vm0, %v143_v7  ;;  %4749 = vmatmul.mubr.msk.f32.vlgmr.msra.gmra.mrb[4].mxu0 %vm158_vm0, %v144_v23  ;;  %v5318_v56 = vpack.c.bf16 %v723_v54, %v718_v53  ;;  %v1204_v57 = vld [vmem:[#allocation6 + $0x230] sm:$0xff]  ;;  %v1253_v60 = vld [vmem:[#allocation6 + $0x3b8] sm:$0xff]  ;;  %v1254_v7 = vld [vmem:[#allocation6 + $0x3c0] sm:$0xff] }
  0x76   :  { %5301 = vmatpush1.bf16.msra.mxu0 %v5300_v32  ;;  %330 = vmatprep.mubr.f32.mxu1 %v6217_v0  ;;  %v1252_v59 = vld [vmem:[#allocation6 + $0x3b0] sm:$0xff]  ;;  %v709_v61 = vld [vmem:[%s7116_s16 + $0x4] sm:$0xff]  ;;  %v5324_v62 = vpack.c.bf16 %v1205_v58, %v1204_v57  ;;  %v5358_v9 = vpack.c.bf16 %v1255_v8, %v1254_v7  ;;  %v1239_v14 = vld [vmem:[#allocation6 + $0x348] sm:$0xff] }
  0x77   :  { %4751 = vmatprep.mubr.msk.f32.mxu0 %vm158_vm0, %v145_v10  ;;  %5307 = vmatprep.subr.bf16.mxu0 %v5306_v33  ;;  %v5354_v63 = vpack.c.bf16 %v1253_v60, %v1252_v59  ;;  %v711_v2 = vld [vmem:[%s7116_s16 + $0x14] sm:$0xff]  ;;  %v712_v3 = vld [vmem:[%s7116_s16 + $0x1c] sm:$0xf]  ;;  %v1237_v5 = vld [vmem:[#allocation6 + $0x338] sm:$0xff] }
  0x78   :  { %5305 = vmatpush1.bf16.msra.mxu1 %v5304_v34  ;;  %v1236_v4 = vld [vmem:[#allocation6 + $0x330] sm:$0xff]  ;;  %v1238_v12 = vld [vmem:[#allocation6 + $0x340] sm:$0xff]  ;;  %v1207_v16 = vld [vmem:[#allocation6 + $0x248] sm:$0xff] }
  0x79   :  { %4172 = vmatmul.mubr.msk.f32.gmra.mrb[6].mxu1 %vm158_vm0, %v144_v23  ;;  %4752 = vmatmul.mubr.msk.f32.gmra.mrb[6].mxu0 %vm158_vm0, %v146_v24  ;;  %v5356_v6 = vpack.c.bf16 %v1237_v5, %v1236_v4  ;;  %v1206_v15 = vld [vmem:[#allocation6 + $0x240] sm:$0xff]  ;;  %v5360_v17 = vpack.c.bf16 %v1239_v14, %v1238_v12  ;;  %v1256_v19 = vld [vmem:[#allocation6 + $0x3d0] sm:$0xff]  ;;  %v1257_v20 = vld [vmem:[#allocation6 + $0x3d8] sm:$0xff] }
  0x7a   :  { %336 = vmatprep.mubr.f32.mxu1 %v6217_v0  ;;  %510 = vmatprep.mubr.f32.mxu0 %v6217_v0  ;;  %v5328_v18 = vpack.c.bf16 %v1207_v16, %v1206_v15  ;;  %v5362_v21 = vpack.c.bf16 %v1257_v20, %v1256_v19  ;;  %v1224_v22 = vld [vmem:[#allocation6 + $0x2d0] sm:$0xff]  ;;  %v1225_v23 = vld [vmem:[#allocation6 + $0x2d8] sm:$0xff]  ;;  %v1258_v31 = vld [vmem:[#allocation6 + $0x3e0] sm:$0xff] }
  0x7b   :  { %5315 = vmatprep.subr.bf16.mxu1 %v5314_v37  ;;  %v5330_v25 = vpack.c.bf16 %v1225_v23, %v1224_v22  ;;  %v1241_v26 = vld [vmem:[#allocation6 + $0x358] sm:$0xff]  ;;  %v1208_v27 = vld [vmem:[#allocation6 + $0x250] sm:$0xff]  ;;  %v1259_v32 = vld [vmem:[#allocation6 + $0x3e8] sm:$0xff] }
  0x7c   :  { %v1209_v28 = vld [vmem:[#allocation6 + $0x258] sm:$0xff]  ;;  %v1226_v34 = vld [vmem:[#allocation6 + $0x2e0] sm:$0xff]  ;;  %v1227_v35 = vld [vmem:[#allocation6 + $0x2e8] sm:$0xff] }
  0x7d   :  { %4173 = vmatmul.mubr.msk.f32.gmra.mrb[8].mxu1 %vm158_vm0, %v145_v10  ;;  %4179 = vmatmul.mubr.msk.f32.vlgmr.msra.gmra.mrb[0].mxu0 %vm158_vm0, %v129_v40  ;;  %v1222_v10 = vld [vmem:[#allocation6 + $0x2c0] sm:$0xff]  ;;  %v5332_v30 = vpack.c.bf16 %v1209_v28, %v1208_v27  ;;  %v5334_v37 = vpack.c.bf16 %v1227_v35, %v1226_v34  ;;  %v1243_v38 = vld [vmem:[#allocation6 + $0x368] sm:$0xff]  ;;  %v1260_v43 = vld [vmem:[#allocation6 + $0x3f0] sm:$0xff] }
  0x7e   :  { %5309 = vmatpush3.bf16.msra.mxu0 %v5306_v33  ;;  %342 = vmatprep.mubr.f32.mxu1 %v6217_v0  ;;  %v5326_v13 = vpack.c.bf16 %v1223_v11, %v1222_v10  ;;  %v5366_v33 = vpack.c.bf16 %v1259_v32, %v1258_v31  ;;  %v1242_v36 = vld [vmem:[#allocation6 + $0x360] sm:$0xff]  ;;  %v1261_v44 = vld [vmem:[#allocation6 + $0x3f8] sm:$0xff]  ;;  %v1228_v45 = vld [vmem:[#allocation6 + $0x2f0] sm:$0xff]  ;;  %v6218_v31 = vmov 0.0|0.0  }
  0x7f   :  { %516 = vmatprep.mubr.f32.mxu0 %v6217_v0  ;;  %5311 = vmatprep.subr.bf16.mxu0 %v5310_v41  ;;  %v1210_v39 = vld [vmem:[#allocation6 + $0x260] sm:$0xff]  ;;  %v5368_v41 = vpack.c.bf16 %v1243_v38, %v1242_v36  ;;  %v1229_v46 = vld [vmem:[#allocation6 + $0x2f8] sm:$0xff]  ;;  %v1231_v59 = vld [vmem:[#allocation6 + $0x308] sm:$0xff]  ;;  %v1021_v36 = vlaneseq }
  0x80   :  { %v5338_v51 = vpack.c.bf16 %v1229_v46, %v1228_v45  ;;  %v1213_v53 = vld [vmem:[#allocation6 + $0x278] sm:$0xff]  ;;  %v1230_v58 = vld [vmem:[#allocation6 + $0x300] sm:$0xff]  ;;  %v1264_v4 = vld [vmem:[#allocation6 + $0x410] sm:$0xff] }
  0x81   :  { %4174 = vmatmul.mubr.msk.f32.gmra.mrb[10].mxu1 %vm158_vm0, %v146_v24  ;;  %4180 = vmatmul.mubr.msk.f32.gmra.mrb[2].mxu0 %vm158_vm0, %v130_v42  ;;  %v1240_v24 = vld [vmem:[#allocation6 + $0x350] sm:$0xff]  ;;  %v1246_v60 = vld [vmem:[#allocation6 + $0x380] sm:$0xff]  ;;  %v1265_v5 = vld [vmem:[#allocation6 + $0x418] sm:$0xff] }
  0x82   :  { %522 = vmatprep.mubr.f32.mxu0 %v6217_v0  ;;  %599 = vmatprep.mubr.f32.mxu1 %v6217_v0  ;;  %v5364_v29 = vpack.c.bf16 %v1241_v26, %v1240_v24  ;;  %v1232_v7 = vld [vmem:[#allocation6 + $0x310] sm:$0xff]  ;;  %v1233_v8 = vld [vmem:[#allocation6 + $0x318] sm:$0xff]  ;;  %v1266_v16 = vld [vmem:[#allocation6 + $0x420] sm:$0xff] }
  0x83   :  { %v5346_v10 = vpack.c.bf16 %v1233_v8, %v1232_v7  ;;  %v1249_v11 = vld [vmem:[#allocation6 + $0x398] sm:$0xff]  ;;  %v1216_v12 = vld [vmem:[#allocation6 + $0x290] sm:$0xff]  ;;  %v1234_v19 = vld [vmem:[#allocation6 + $0x320] sm:$0xff] }
  0x84   :  { %v1235_v20 = vld [vmem:[#allocation6 + $0x328] sm:$0xff]  ;;  %v1218_v24 = vld [vmem:[#allocation6 + $0x2a0] sm:$0xff]  ;;  %v6548_v7 = vld [vmem:[#allocation6 + $0x198] sm:$0xff] }
  0x85   :  { %4181 = vmatmul.mubr.msk.f32.gmra.mrb[8].mxu0 %vm158_vm0, %v131_v47  ;;  %4183 = vmatmul.mubr.msk.f32.vlgmr.msra.gmra.mrb[4].mxu1 %vm158_vm0, %v129_v40  ;;  %v5350_v22 = vpack.c.bf16 %v1235_v20, %v1234_v19  ;;  %v1251_v23 = vld [vmem:[#allocation6 + $0x3a8] sm:$0xff]  ;;  %v1171_v28 = vld [vmem:[#allocation6 + $0x180] sm:$0xff] }
  0x86   :  { %528 = vmatprep.mubr.f32.mxu0 %v6217_v0  ;;  %605 = vmatprep.mubr.f32.mxu1 %v6217_v0 }
  0x87   :  { %5317 = vmatpush1.bf16.msra.mxu1 %v5316_v48  ;;  %v1244_v48 = vld [vmem:[#allocation6 + $0x370] sm:$0xff] }
  0x88   :  { %5323 = vmatprep.subr.bf16.mxu1 %v5322_v49  ;;  %v1245_v49 = vld [vmem:[#allocation6 + $0x378] sm:$0xff] }
  0x89   :  { %4182 = vmatmul.mubr.msk.f32.gmra.mrb[10].mxu0 %vm158_vm0, %v132_v50  ;;  %4184 = vmatmul.mubr.msk.f32.gmra.mrb[6].mxu1 %vm158_vm0, %v130_v42  ;;  %v5372_v52 = vpack.c.bf16 %v1245_v49, %v1244_v48 }
  0x8a   :  { %611 = vmatprep.mubr.f32.mxu1 %v6217_v0  ;;  %4758 = vmatprep.mubr.msk.f32.mxu0 %vm158_vm0, %v129_v40  ;;  %v1211_v40 = vld [vmem:[#allocation6 + $0x268] sm:$0xff] }
  0x8d   :  { %4185 = vmatmul.mubr.msk.f32.gmra.mrb[8].mxu1 %vm158_vm0, %v131_v47  ;;  %4759 = vmatmul.mubr.msk.f32.vlgmr.msra.gmra.mrb[4].mxu0 %vm158_vm0, %v130_v42  ;;  %v5336_v42 = vpack.c.bf16 %v1211_v40, %v1210_v39  ;;  %v1019_v40 = vld [vmem:[%s7117_s27] sm:$0x1f] }
  0x8e   :  { %5313 = vmatpush1.bf16.msra.mxu0 %v5312_v55  ;;  %617 = vmatprep.mubr.f32.mxu1 %v6217_v0  ;;  %v1262_v55 = vld [vmem:[#allocation6 + $0x400] sm:$0xff] }
  0x8f   :  { %4761 = vmatprep.mubr.msk.f32.mxu0 %vm158_vm0, %v131_v47  ;;  %5319 = vmatprep.subr.bf16.mxu0 %v5318_v56  ;;  %v5370_v47 = vpack.c.bf16 %v1261_v44, %v1260_v43 }
  0x91   :  { %4186 = vmatmul.mubr.msk.f32.gmra.mrb[10].mxu1 %vm158_vm0, %v132_v50  ;;  %4762 = vmatmul.mubr.msk.f32.gmra.mrb[6].mxu0 %vm158_vm0, %v132_v50  ;;  %v1212_v50 = vld [vmem:[#allocation6 + $0x270] sm:$0xff] }
  0x92   :  { %800 = vmatprep.mubr.f32.mxu0 %v6217_v0  ;;  %889 = vmatprep.mubr.f32.mxu1 %v6217_v0  ;;  %v5340_v54 = vpack.c.bf16 %v1213_v53, %v1212_v50 }
  0x95   :  { %4191 = vmatmul.mubr.msk.f32.vlgmr.msra.gmra.mrb[0].mxu0 %vm158_vm0, %v709_v61  ;;  %4195 = vmatmul.mubr.msk.f32.vlgmr.msra.gmra.mrb[4].mxu1 %vm158_vm0, %v709_v61 }
  0x96   :  { %806 = vmatprep.mubr.f32.mxu0 %v6217_v0  ;;  %895 = vmatprep.mubr.f32.mxu1 %v6217_v0 }
  0x97   :  { %5321 = vmatpush3.bf16.msra.mxu0 %v5318_v56  ;;  %5325 = vmatpush3.bf16.msra.mxu1 %v5324_v62  ;;  %v1263_v56 = vld [vmem:[#allocation6 + $0x408] sm:$0xff] }
  0x98   :  { %5355 = vmatprep.subr.bf16.mxu0 %v5354_v63  ;;  %5327 = vmatprep.subr.bf16.mxu1 %v5326_v13  ;;  %v5374_v57 = vpack.c.bf16 %v1263_v56, %v1262_v55  ;;  %v1247_v62 = vld [vmem:[#allocation6 + $0x388] sm:$0xff]  ;;  %v1214_v63 = vld [vmem:[#allocation6 + $0x280] sm:$0xff]  ;;  %v1217_v13 = vld [vmem:[#allocation6 + $0x298] sm:$0xff] }
  0x99   :  { %4192 = vmatmul.mubr.msk.f32.gmra.mrb[2].mxu0 %vm158_vm0, %v710_v1  ;;  %4196 = vmatmul.mubr.msk.f32.gmra.mrb[6].mxu1 %vm158_vm0, %v710_v1  ;;  %v5348_v15 = vpack.c.bf16 %v1217_v13, %v1216_v12  ;;  %v6560_v12 = vld [vmem:[#allocation6 + $0x118] sm:$0xff] }
  0x9a   :  { %812 = vmatprep.mubr.f32.mxu0 %v6217_v0  ;;  %901 = vmatprep.mubr.f32.mxu1 %v6217_v0 }
  0x9b   :  { %5329 = vmatpush3.bf16.msra.mxu1 %v5328_v18 }
  0x9c   :  { %5331 = vmatprep.subr.bf16.mxu1 %v5330_v25  ;;  %v1219_v25 = vld [vmem:[#allocation6 + $0x2a8] sm:$0xff] }
  0x9d   :  { %4193 = vmatmul.mubr.msk.f32.gmra.mrb[8].mxu0 %vm158_vm0, %v711_v2  ;;  %4197 = vmatmul.mubr.msk.f32.gmra.mrb[8].mxu1 %vm158_vm0, %v711_v2  ;;  %v5352_v27 = vpack.c.bf16 %v1219_v25, %v1218_v24 }
  0x9e   :  { %818 = vmatprep.mubr.f32.mxu0 %v6217_v0  ;;  %907 = vmatprep.mubr.f32.mxu1 %v6217_v0 }
  0x9f   :  { %5333 = vmatpush3.bf16.msra.mxu1 %v5332_v30 }
  0xa0   :  { %5335 = vmatprep.subr.bf16.mxu1 %v5334_v37  ;;  %v6490_v37 = vshrl.u32 %v1021_v36, 7 }
  0xa1   :  { %4194 = vmatmul.mubr.msk.f32.gmra.mrb[10].mxu0 %vm158_vm0, %v712_v3  ;;  %4198 = vmatmul.mubr.msk.f32.gmra.mrb[10].mxu1 %vm158_vm0, %v712_v3 }
  0xa2   :  { %4768 = vmatprep.mubr.msk.f32.mxu0 %vm158_vm0, %v709_v61  ;;  %v5342_v61 = vpack.c.bf16 %v1231_v59, %v1230_v58  ;;  %v6493_v38 = vsub.s32 0, %v6490_v37  ;;  %v7108_v39 = vsub.s32 2, %v6490_v37 }
  0xa3   :  { %5337 = vmatpush3.bf16.msra.mxu1 %v5336_v42  ;;  %v7107_v42 = vsub.s32 3, %v6490_v37 }
  0xa4   :  { %5339 = vmatprep.subr.bf16.mxu1 %v5338_v51  ;;  %v6504_v43 = vrot.slane %v1019_v40, %v6493_v38  ;;  %v6508_v44 = vrot.slane %v1019_v40, %v7108_v39 }
  0xa5   :  { %4769 = vmatmul.mubr.msk.f32.vlgmr.msra.gmra.mrb[4].mxu0 %vm158_vm0, %v710_v1  ;;  %v1215_v1 = vld [vmem:[#allocation6 + $0x288] sm:$0xff]  ;;  %v6515_v46 = vrot.slane %v1019_v40, %v7107_v42 }
  0xa6   :  { %4771 = vmatprep.mubr.msk.f32.mxu0 %vm158_vm0, %v711_v2  ;;  %5357 = vmatpush3.bf16.msra.mxu0 %v5356_v6  ;;  %v5376_v2 = vpack.c.bf16 %v1247_v62, %v1246_v60  ;;  %v5378_v6 = vpack.c.bf16 %v1265_v5, %v1264_v4  ;;  %v6534_v62 = vld [vmem:[#allocation6 + $0x100] sm:$0xff]  ;;  %v6544_v5 = vld [vmem:[#allocation6 + $0x430] sm:$0xff] }
  0xa7   :  { %5359 = vmatprep.subr.bf16.mxu0 %v5358_v9  ;;  %5341 = vmatpush3.bf16.msra.mxu1 %v5340_v54  ;;  %v1248_v9 = vld [vmem:[#allocation6 + $0x390] sm:$0xff] }
  0xa8   :  { %5343 = vmatprep.subr.bf16.mxu1 %v5342_v61  ;;  %v5380_v14 = vpack.c.bf16 %v1249_v11, %v1248_v9  ;;  %v6558_v11 = vld [vmem:[#allocation6 + $0x110] sm:$0xff] }
  0xa9   :  { %4772 = vmatmul.mubr.msk.f32.gmra.mrb[6].mxu0 %vm158_vm0, %v712_v3  ;;  %v5344_v3 = vpack.c.bf16 %v1215_v1, %v1214_v63  ;;  %v6536_v63 = vld [vmem:[#allocation6 + $0x108] sm:$0xff] }
  0xaa   :  { %5361 = vmatpush3.bf16.msra.mxu0 %v5360_v17  ;;  %v1267_v17 = vld [vmem:[#allocation6 + $0x428] sm:$0xff]  ;;  %v5429_v20 = vpack.c.bf16 %v6536_v63, %v6534_v62 }
  0xab   :  { %5363 = vmatprep.subr.bf16.mxu0 %v5362_v21  ;;  %5345 = vmatpush3.bf16.msra.mxu1 %v5344_v3  ;;  %v5382_v18 = vpack.c.bf16 %v1267_v17, %v1266_v16  ;;  %v1250_v21 = vld [vmem:[#allocation6 + $0x3a0] sm:$0xff] }
  0xac   :  { %5347 = vmatprep.subr.bf16.mxu1 %v5346_v10  ;;  %v5384_v26 = vpack.c.bf16 %v1251_v23, %v1250_v21  ;;  %v6556_v10 = vld [vmem:[#allocation6 + $0x438] sm:$0xff] }
  0xae   :  { %5365 = vmatpush3.bf16.msra.mxu0 %v5364_v29  ;;  %v1172_v29 = vld [vmem:[#allocation6 + $0x188] sm:$0xff] }
  0xaf   :  { %5367 = vmatprep.subr.bf16.mxu0 %v5366_v33  ;;  %5349 = vmatpush3.bf16.msra.mxu1 %v5348_v15  ;;  %v5427_v30 = vpack.c.bf16 %v1172_v29, %v1171_v28  ;;  %v6581_v28 = vld [vmem:[#allocation6 + $0x440] sm:$0xff]  ;;  %v6583_v29 = vld [vmem:[#allocation6 + $0x448] sm:$0xff] }
  0xb0   :  { %5351 = vmatprep.subr.bf16.mxu1 %v5350_v22 }
  0xb2   :  { %5369 = vmatpush3.bf16.msra.mxu0 %v5368_v41  ;;  %v6500_v41 = vsub.s32 1, %v6490_v37 }
  0xb3   :  { %5371 = vmatprep.subr.bf16.mxu0 %v5370_v47  ;;  %5353 = vmatpush3.bf16.msra.mxu1 %v5352_v27  ;;  %v5433_v27 = vpack.c.bf16 %v6560_v12, %v6558_v11 }
  0xb4   :  { %5386 = vmatprep.subr.bf16.mxu1 %v6218_v31  ;;  %v6511_v45 = vrot.slane %v1019_v40, %v6500_v41 }
  0xb6   :  { %5373 = vmatpush3.bf16.msra.mxu0 %v5372_v52 }
  0xb7   :  { %5375 = vmatprep.subr.bf16.mxu0 %v5374_v57  ;;  %v1039_v57 = vsub.s32 4, %v6490_v37 }
  0xb9   :  { %v6566_v15 = vrot.slane %v1019_v40, %v1039_v57 }
  0xba   :  { %5377 = vmatpush3.bf16.msra.mxu0 %v5376_v2 }
  0xbb   :  { %5379 = vmatprep.subr.bf16.mxu0 %v5378_v6  ;;  %v6546_v6 = vld [vmem:[#allocation6 + $0x190] sm:$0xff] }
  0xbc   :  { %v5431_v21 = vpack.c.bf16 %v6548_v7, %v6546_v6 }
  0xbe   :  { %5381 = vmatpush3.bf16.msra.mxu0 %v5380_v14 }
  0xbf   :  { %5383 = vmatprep.subr.bf16.mxu0 %v5382_v18 }
  0xc2   :  { %5385 = vmatpush3.bf16.msra.mxu0 %v5384_v26  ;;  %v5387_v26 = vpack.c.bf16 %v6556_v10, %v6544_v5 }
  0xc3   :  { %5428 = vmatprep.subr.bf16.mxu0 %v5427_v30 }
 0x140   :  { %v249_v32 = vpop.f32.mrb[0].mxu1 }
 0x141   :  { %v6484_v33 = vpop.f32.mrb[1].mxu1 }
 0x144   :  { %v6486_v34 = vpop.f32.mrb[2].mxu1 }
 0x145   :  { %v6488_v35 = vpop.f32.mrb[3].mxu1 }
 0x168   :  { %v802_v47 = vpop.f32.mrb[0].mxu0  ;;  %v891_v48 = vpop.f32.mrb[4].mxu1 }
 0x169   :  { %v6518_v49 = vadd.f32 %v6504_v43, %v802_v47  ;;  %v804_v50 = vpop.f32.mrb[1].mxu0  ;;  %v6521_v51 = vadd.f32 %v6508_v44, %v891_v48  ;;  %v893_v52 = vpop.f32.mrb[5].mxu1 }
 0x16a   :  { %v6524_v53 = vadd.f32 %v6511_v45, %v804_v50  ;;  %v6527_v54 = vadd.f32 %v6515_v46, %v893_v52 }
 0x16b   :  { %v1066_v55 = vmax.f32 %v6518_v49, 0.0  ;;  %v1068_v56 = vmax.f32 %v6521_v51, 0.0  ;;  %v1901_v51 = vld [vmem:[#allocation6 + $0x618] sm:$0xff] }
 0x16c   :  { %v1067_v58 = vmax.f32 %v6524_v53, 0.0  ;;  %v1069_v59 = vmax.f32 %v6527_v54, 0.0  ;;  %v808_v60 = vpop.f32.mrb[2].mxu0  ;;  %v897_v61 = vpop.f32.mrb[6].mxu1  ;;  %v1133_v53 = vld [vmem:[#allocation6 + $0x50] sm:$0xff] }
 0x16d   :  { %1086 = vst [vmem:[#allocation2] sm:$0xff] %v1066_v55  ;;  %1088 = vst [vmem:[#allocation2 + $0x10] sm:$0xff] %v1068_v56  ;;  %v1051_v1 = vadd.f32 %v6504_v43, %v808_v60  ;;  %v1053_v2 = vadd.f32 %v6508_v44, %v897_v61  ;;  %v810_v3 = vpop.f32.mrb[3].mxu0  ;;  %v899_v4 = vpop.f32.mrb[7].mxu1 }
 0x16e   :  { %1087 = vst [vmem:[#allocation2 + $0x8] sm:$0xff] %v1067_v58  ;;  %1089 = vst [vmem:[#allocation2 + $0x18] sm:$0xff] %v1069_v59  ;;  %v1052_v8 = vadd.f32 %v6511_v45, %v810_v3  ;;  %v1054_v9 = vadd.f32 %v6515_v46, %v899_v4 }
 0x16f   :  { %v6562_v13 = vmax.f32 %v1051_v1, 0.0  ;;  %v6564_v14 = vmax.f32 %v1053_v2, 0.0  ;;  %v5390_v2 = vpack.c.bf16 %v6583_v29, %v6581_v28  ;;  %v1180_v29 = vld [vmem:[#allocation6 + $0x1c8] sm:$0xff] }
 0x170   :  { %v6568_v16 = vmax.f32 %v1052_v8, 0.0  ;;  %v6570_v17 = vmax.f32 %v1054_v9, 0.0  ;;  %v814_v18 = vpop.f32.mrb[8].mxu0  ;;  %v903_v19 = vpop.f32.mrb[8].mxu1 }
 0x171   :  { %v6017_v22 = vadd.f32 %v814_v18, %v249_v32  ;;  %v1058_v23 = vadd.f32 %v6508_v44, %v903_v19  ;;  %v816_v24 = vpop.f32.mrb[9].mxu0  ;;  %v905_v25 = vpop.f32.mrb[9].mxu1  ;;  %v1296_v32 = vrot.slane %v6562_v13, 2  ;;  %v1302_v40 = vrot.slane %v6564_v14, 2 }
 0x172   :  { %v6018_v30 = vadd.f32 %v816_v24, %v6484_v33  ;;  %v1059_v36 = vadd.f32 %v6515_v46, %v905_v25  ;;  %v1299_v50 = vrot.slane %v6568_v16, 2  ;;  %v1305_v52 = vrot.slane %v6570_v17, 2 }
 0x173   :  { %v1056_v47 = vadd.f32 %v6017_v22, %v6504_v43  ;;  %v6590_v48 = vmax.f32 %v1058_v23, 0.0  ;;  %v1937_v3 = vrot.slane %v6570_v17, 4 }
 0x174   :  { %v1057_v57 = vadd.f32 %v6018_v30, %v6511_v45  ;;  %v6595_v60 = vmax.f32 %v1059_v36, 0.0  ;;  %v820_v33 = vpop.f32.mrb[10].mxu0  ;;  %v909_v61 = vpop.f32.mrb[10].mxu1  ;;  %v1193_v1 = vld [vmem:[#allocation2] sm:$0xfc] }
 0x175   :  { %v6600_v4 = vmax.f32 %v1056_v47, 0.0  ;;  %v6019_v5 = vadd.f32 %v820_v33, %v6486_v34  ;;  %v1063_v8 = vadd.f32 %v6508_v44, %v909_v61  ;;  %v822_v9 = vpop.f32.mrb[11].mxu0  ;;  %v911_v10 = vpop.f32.mrb[11].mxu1  ;;  %v1194_v18 = vld [vmem:[#allocation2 + $0x8] sm:$0xfc]  ;;  %v1295_v19 = vrot.slane %v1193_v1, 2 }
 0x176   :  { %v6604_v22 = vmax.f32 %v1057_v57, 0.0  ;;  %v6020_v23 = vadd.f32 %v822_v9, %v6488_v35  ;;  %v1064_v24 = vadd.f32 %v6515_v46, %v911_v10  ;;  %v1298_v25 = vrot.slane %v1194_v18, 2  ;;  %v1196_v30 = vld [vmem:[#allocation2 + $0x18] sm:$0xfc]  ;;  %v1195_v36 = vld [vmem:[#allocation2 + $0x10] sm:$0xfc] }
 0x177   :  { %v1061_v47 = vadd.f32 %v6019_v5, %v6504_v43  ;;  %v1083_v42 = vmax.f32 %v1063_v8, 0.0  ;;  %v1304_v39 = vrot.slane %v1196_v30, 2  ;;  %v1297_v34 = vsel %vm1294_vm1, %v1295_v19, %v1296_v32  ;;  %v1175_v9 = vld [vmem:[#allocation6 + $0x1a0] sm:$0xff]  ;;  %v1176_v10 = vld [vmem:[#allocation6 + $0x1a8] sm:$0xff] }
 0x178   :  { %v1062_v44 = vadd.f32 %v6020_v23, %v6511_v45  ;;  %v1084_v33 = vmax.f32 %v1064_v24, 0.0  ;;  %v4770_v57 = vpop.f32.mrb[4].mxu0  ;;  %v1300_v35 = vsel %vm1294_vm1, %v1298_v25, %v1299_v50  ;;  %v1301_v46 = vrot.slane %v1195_v36, 2 }
 0x179   :  { %v1081_v61 = vmax.f32 %v1061_v47, 0.0  ;;  %1104 = vst [vmem:[#allocation2 + $0x88] sm:$0xf] %v1083_v42  ;;  %v1055_v1 = vadd.f32 %v4770_v57, %v6566_v15  ;;  %v980_v43 = vpop.f32.mrb[5].mxu0  ;;  %1412 = vmatprep.mubr.f32.mxu1 %v1300_v35  ;;  %v1306_v5 = vsel %vm1294_vm1, %v1304_v39, %v1305_v52  ;;  %v1316_v8 = vrot.slane %v6595_v60, 2  ;;  %v1273_v57 = vld [vmem:[#allocation6 + $0x458] sm:$0xff] }
 0x17a   :  { %v1082_v45 = vmax.f32 %v1062_v44, 0.0  ;;  %1105 = vst [vmem:[#allocation2 + $0x90] sm:$0xf] %v1084_v33  ;;  %v1050_v18 = vadd.f32 %v6566_v15, %v980_v43  ;;  %1492 = vmatprep.mubr.f32.mxu0 %v1306_v5  ;;  %1413 = vmatmul.mubr.f32.vlgmr.msra.gmra.mrb[12].mxu1 %v1297_v34  ;;  %v1303_v42 = vsel %vm1294_vm1, %v1301_v46, %v1302_v40  ;;  %v1314_v19 = vrot.slane %v6590_v48, 2  ;;  %v1139_v46 = vld [vmem:[#allocation6 + $0x80] sm:$0xff] }
 0x17b   :  { %1102 = vst [vmem:[#allocation2 + $0x78] sm:$0xf] %v1081_v61  ;;  %v1075_v23 = vmax.f32 %v1055_v1, 0.0  ;;  %1493 = vmatmul.mubr.f32.vlgmr.msra.gmra.mrb[12].mxu0 %v1303_v42  ;;  %5388 = vmatpush3.bf16.msra.mxu1 %v5387_v26  ;;  %v1317_v39 = vsel %vm1294_vm1, %v1305_v52, %v1316_v8  ;;  %v1312_v24 = vrot.slane %v6604_v22, 2  ;;  %v1310_v25 = vrot.slane %v6600_v4, 2  ;;  %v1159_v52 = vld [vmem:[#allocation6 + $0x120] sm:$0xff] }
 0x17c   :  { %1103 = vst [vmem:[#allocation2 + $0x80] sm:$0xf] %v1082_v45  ;;  %v1070_v30 = vmax.f32 %v1050_v18, 0.0  ;;  %v4773_v36 = vpop.f32.mrb[6].mxu0  ;;  %5430 = vmatpush3.bf16.msra.mxu0 %v5429_v20  ;;  %1497 = vmatprep.mubr.f32.mxu0 %v1317_v39  ;;  %v1315_v26 = vsel %vm1294_vm1, %v1302_v40, %v1314_v19  ;;  %v5435_v47 = vpack.c.bf16 %v1176_v10, %v1175_v9  ;;  %v1934_v34 = vrot.slane %v6564_v14, 4  ;;  %v1160_v20 = vld [vmem:[#allocation6 + $0x128] sm:$0xff] }
 0x17d   :  { %1096 = vst.msk [vmem:[#allocation2 + $0x48] sm:$0xff] %vm1090_vm2, %v1075_v23  ;;  %v1065_v44 = vadd.f32 %v4773_v36, %v6566_v15  ;;  %v990_v33 = vpop.f32.mrb[7].mxu0  ;;  %5432 = vmatprep.subr.bf16.mxu0 %v5431_v21  ;;  %v1313_v62 = vsel %vm1294_vm1, %v1299_v50, %v1312_v24  ;;  %5389 = vmatprep.subr.bf16.mxu1 %v6218_v31  ;;  %v1272_v40 = vld [vmem:[#allocation6 + $0x450] sm:$0xff]  ;;  %v1948_v6 = vrot.slane %v6595_v60, 4  ;;  %v1178_v50 = vld [vmem:[#allocation6 + $0x1b8] sm:$0xff]  ;;  %v1140_v61 = vld [vmem:[#allocation6 + $0x88] sm:$0xff] }
 0x17e   :  { %v1311_v63 = vsel %vm1294_vm1, %v1296_v32, %v1310_v25  ;;  %1091 = vst.msk [vmem:[#allocation2 + $0x20] sm:$0xff] %vm1090_vm2, %v1070_v30  ;;  %v1060_v7 = vadd.f32 %v6566_v15, %v990_v33  ;;  %1417 = vmatprep.mubr.f32.mxu1 %v1313_v62  ;;  %v1177_v21 = vld [vmem:[#allocation6 + $0x1b0] sm:$0xff]  ;;  %v1946_v1 = vrot.slane %v6590_v48, 4  ;;  %v5437_v5 = vpack.c.bf16 %v1160_v20, %v1159_v52  ;;  %v1162_v23 = vld [vmem:[#allocation6 + $0x138] sm:$0xff]  ;;  %v1179_v39 = vld [vmem:[#allocation6 + $0x1c0] sm:$0xff] }
 0x17f   :  { %v1085_v35 = vmax.f32 %v1065_v44, 0.0  ;;  %1498 = vmatmul.mubr.f32.gmra.mrb[14].mxu0 %v1315_v26  ;;  %1418 = vmatmul.mubr.f32.gmra.mrb[14].mxu1 %v1311_v63  ;;  %v6662_v32 = vsel %vm1926_vm3, %v1937_v3, %v1948_v6  ;;  %v5393_v9 = vpack.c.bf16 %v1273_v57, %v1272_v40  ;;  %v1161_v10 = vld [vmem:[#allocation6 + $0x130] sm:$0xff]  ;;  %v5439_v42 = vpack.c.bf16 %v1178_v50, %v1177_v21  ;;  %v1164_v21 = vld [vmem:[#allocation6 + $0x148] sm:$0xff] }
 0x180   :  { %v1080_v43 = vmax.f32 %v1060_v7, 0.0  ;;  %5434 = vmatpush3.bf16.msra.mxu0 %v5433_v27  ;;  %5391 = vmatpush3.bf16.msra.mxu1 %v5390_v2  ;;  %v1200_v15 = vld [vmem:[#allocation2 + $0x88] sm:$0x3]  ;;  %v6678_v11 = vsel %vm1926_vm3, %v1934_v34, %v1946_v1  ;;  %v5395_v28 = vpack.c.bf16 %v1140_v61, %v1139_v46  ;;  %v1931_v2 = vrot.slane %v6568_v16, 4  ;;  %v1141_v61 = vld [vmem:[#allocation6 + $0x90] sm:$0xff] }
 0x181   :  { %1107 = vst.msk [vmem:[#allocation2 + $0x98] sm:$0xf] %vm1106_vm4, %v1085_v35  ;;  %v1201_v45 = vld [vmem:[#allocation2 + $0x90] sm:$0x3]  ;;  %5436 = vmatprep.subr.bf16.mxu0 %v5435_v47  ;;  %v1324_v18 = vrot.slane %v1200_v15, 2  ;;  %5392 = vmatprep.subr.bf16.mxu1 %v6218_v31  ;;  %v1944_v30 = vrot.slane %v6604_v22, 4  ;;  %v5441_v62 = vpack.c.bf16 %v1162_v23, %v1161_v10  ;;  %v5443_v57 = vpack.c.bf16 %v1180_v29, %v1179_v39 }
 0x182   :  { %1101 = vst.msk [vmem:[#allocation2 + $0x70] sm:$0xff] %vm1090_vm2, %v1080_v43  ;;  %v1326_v12 = vrot.slane %v1201_v45, 2  ;;  %v1198_v27 = vld [vmem:[#allocation2 + $0x78] sm:$0x3]  ;;  %v1928_v47 = vrot.slane %v6562_v13, 4  ;;  %v1942_v52 = vrot.slane %v6600_v4, 4 }
 0x183   :  { %v1199_v36 = vld [vmem:[#allocation2 + $0x80] sm:$0x3]  ;;  %v1320_v26 = vrot.slane %v1198_v27, 2  ;;  %v6695_v20 = vsel %vm1926_vm3, %v1931_v2, %v1944_v30  ;;  %v1325_v40 = vsel %vm1294_vm1, %v1314_v19, %v1324_v18  ;;  %v1163_v7 = vld [vmem:[#allocation6 + $0x140] sm:$0xff]  ;;  %v1124_v19 = vld [vmem:[#allocation6 + $0x8] sm:$0xff] }
 0x184   :  { %v1327_v44 = vsel %vm1294_vm1, %v1316_v8, %v1326_v12  ;;  %5438 = vmatpush3.bf16.msra.mxu0 %v5437_v5  ;;  %v1322_v33 = vrot.slane %v1199_v36, 2  ;;  %5394 = vmatpush3.bf16.msra.mxu1 %v5393_v9  ;;  %v6688_v63 = vld [vmem:[#allocation2 + $0x48] sm:$0xff]  ;;  %v6705_v50 = vsel %vm1926_vm3, %v1928_v47, %v1942_v52  ;;  %v1142_v9 = vld [vmem:[#allocation6 + $0x98] sm:$0xff]  ;;  %v1181_v10 = vld [vmem:[#allocation6 + $0x1d0] sm:$0xff] }
 0x185   :  { %1502 = vmatprep.mubr.f32.mxu0 %v1327_v44  ;;  %5440 = vmatprep.subr.bf16.mxu0 %v5439_v42  ;;  %v1197_v8 = vld [vmem:[#allocation2 + $0x20] sm:$0xfc]  ;;  %v1123_v46 = vld [vmem:[#allocation6] sm:$0xff]  ;;  %v1321_v43 = vsel %vm1294_vm1, %v1310_v25, %v1320_v26  ;;  %v1308_v5 = vrot.slane %v6688_v63, 2  ;;  %v5399_v25 = vpack.c.bf16 %v1142_v9, %v1141_v61  ;;  %v1125_v23 = vld [vmem:[#allocation6 + $0x10] sm:$0xff] }
 0x186   :  { %1503 = vmatmul.mubr.f32.gmra.mrb[16].mxu0 %v1325_v40  ;;  %v1323_v35 = vsel %vm1294_vm1, %v1312_v24, %v1322_v33  ;;  %5396 = vmatprep.subr.bf16.mxu1 %v5395_v28  ;;  %v1307_v15 = vrot.slane %v1197_v8, 2  ;;  %v1182_v45 = vld [vmem:[#allocation6 + $0x1d8] sm:$0xff]  ;;  %v5445_v24 = vpack.c.bf16 %v1164_v21, %v1163_v7  ;;  %v5397_v18 = vpack.c.bf16 %v1124_v19, %v1123_v46  ;;  %v1143_v27 = vld [vmem:[#allocation6 + $0xa0] sm:$0xff]  ;;  %v1144_v44 = vld [vmem:[#allocation6 + $0xa8] sm:$0xff] }
 0x187   :  { %1422 = vmatprep.mubr.f32.mxu1 %v1323_v35  ;;  %1739 = vmatprep.mubr.f32.mxu0 %v1069_v59  ;;  %v1165_v59 = vld [vmem:[#allocation6 + $0x150] sm:$0xff]  ;;  %v1166_v42 = vld [vmem:[#allocation6 + $0x158] sm:$0xff]  ;;  %v5447_v12 = vpack.c.bf16 %v1182_v45, %v1181_v10  ;;  %v1940_v28 = vrot.slane %v6688_v63, 4  ;;  %v1183_v33 = vld [vmem:[#allocation6 + $0x1e0] sm:$0xff]  ;;  %v5403_v46 = vpack.c.bf16 %v1144_v44, %v1143_v27 }
 0x188   :  { %1423 = vmatmul.mubr.f32.gmra.mrb[16].mxu1 %v1321_v43  ;;  %5442 = vmatpush3.bf16.msra.mxu0 %v5441_v62  ;;  %v1126_v39 = vld [vmem:[#allocation6 + $0x18] sm:$0xff]  ;;  %v1309_v36 = vsel %vm1294_vm1, %v1307_v15, %v1308_v5  ;;  %v1184_v62 = vld [vmem:[#allocation6 + $0x1e8] sm:$0xff]  ;;  %v5449_v40 = vpack.c.bf16 %v1166_v42, %v1165_v59  ;;  %v1202_v8 = vld [vmem:[#allocation2 + $0x98] sm:$0x3] }
 0x189   :  { %4786 = vmatprep.mubr.msk.f32.mxu1 %vm6219_vm5, %v6217_v0  ;;  %5444 = vmatprep.subr.bf16.mxu0 %v5443_v57  ;;  %v6718_v54 = vld [vmem:[#allocation2 + $0x70] sm:$0xff]  ;;  %v5401_v7 = vpack.c.bf16 %v1126_v39, %v1125_v23  ;;  %v1167_v21 = vld [vmem:[#allocation6 + $0x160] sm:$0xff]  ;;  %v5451_v43 = vpack.c.bf16 %v1184_v62, %v1183_v33  ;;  %v1145_v15 = vld [vmem:[#allocation6 + $0xb0] sm:$0xff]  ;;  %v1328_v10 = vrot.slane %v1202_v8, 2 }
 0x18a   :  { %v1950_v29 = vrot.slane %v6718_v54, 4  ;;  %v1318_v26 = vrot.slane %v6718_v54, 2  ;;  %v1168_v35 = vld [vmem:[#allocation6 + $0x168] sm:$0xff]  ;;  %v1127_v19 = vld [vmem:[#allocation6 + $0x20] sm:$0xff]  ;;  %v1146_v45 = vld [vmem:[#allocation6 + $0xb8] sm:$0xff] }
 0x18b   :  { %v1128_v61 = vld [vmem:[#allocation6 + $0x28] sm:$0xff]  ;;  %v1186_v59 = vld [vmem:[#allocation6 + $0x1f8] sm:$0xff]  ;;  %v1169_v23 = vld [vmem:[#allocation6 + $0x170] sm:$0xff] }
 0x18c   :  { %4787 = vmatmul.mubr.msk.f32.vlgmr.msra.gmra.mrb[18].mxu1 %vm1090_vm2, %v1309_v36  ;;  %5446 = vmatpush3.bf16.msra.mxu0 %v5445_v24  ;;  %v6730_v57 = vsel %vm1926_vm3, %v1940_v28, %v1950_v29  ;;  %v1319_v9 = vsel %vm1294_vm1, %v1308_v5, %v1318_v26  ;;  %v1185_v24 = vld [vmem:[#allocation6 + $0x1f0] sm:$0xff]  ;;  %v5405_v42 = vpack.c.bf16 %v1128_v61, %v1127_v19  ;;  %v1170_v39 = vld [vmem:[#allocation6 + $0x178] sm:$0xff]  ;;  %v1894_v36 = vld [vmem:[#allocation6 + $0x5e0] sm:$0xff] }
 0x18d   :  { %5398 = vmatpush3.bf16.msra.mxu1 %v5397_v18  ;;  %4789 = vmatprep.mubr.msk.f32.mxu1 %vm6219_vm5, %v6217_v0  ;;  %v5453_v18 = vpack.c.bf16 %v1168_v35, %v1167_v21  ;;  %v1130_v5 = vld [vmem:[#allocation6 + $0x38] sm:$0xff]  ;;  %v5455_v27 = vpack.c.bf16 %v1186_v59, %v1185_v24  ;;  %v1895_v44 = vld [vmem:[#allocation6 + $0x5e8] sm:$0xff]  ;;  %v1329_v33 = vsel %vm1294_vm1, %v1318_v26, %v1328_v10  ;;  %v1147_v62 = vld [vmem:[#allocation6 + $0xc0] sm:$0xff] }
 0x18e   :  { %5400 = vmatprep.subr.bf16.mxu1 %v5399_v25  ;;  %5448 = vmatprep.subr.bf16.mxu0 %v5447_v12  ;;  %v1129_v25 = vld [vmem:[#allocation6 + $0x30] sm:$0xff]  ;;  %v5407_v12 = vpack.c.bf16 %v1146_v45, %v1145_v15  ;;  %v5457_v8 = vpack.c.bf16 %v1170_v39, %v1169_v23  ;;  %v1131_v21 = vld [vmem:[#allocation6 + $0x40] sm:$0xff]  ;;  %v5500_v35 = vpack.c.bf16 %v1895_v44, %v1894_v36  ;;  %v1879_v19 = vld [vmem:[#allocation6 + $0x568] sm:$0xff] }
 0x18f   :  { %v1896_v26 = vld [vmem:[#allocation6 + $0x5f0] sm:$0xff]  ;;  %v1897_v15 = vld [vmem:[#allocation6 + $0x5f8] sm:$0xff]  ;;  %v1898_v23 = vld [vmem:[#allocation6 + $0x600] sm:$0xff] }
 0x190   :  { %4790 = vmatmul.mubr.msk.f32.gmra.mrb[20].mxu1 %vm1090_vm2, %v1319_v9  ;;  %5450 = vmatpush3.bf16.msra.mxu0 %v5449_v40  ;;  %v1148_v40 = vld [vmem:[#allocation6 + $0xc8] sm:$0xff]  ;;  %v1149_v9 = vld [vmem:[#allocation6 + $0xd0] sm:$0xff]  ;;  %v1150_v10 = vld [vmem:[#allocation6 + $0xd8] sm:$0xff] }
 0x191   :  { %5402 = vmatpush3.bf16.msra.mxu1 %v5401_v7  ;;  %4792 = vmatprep.mubr.msk.f32.mxu1 %vm6219_vm5, %v6217_v0  ;;  %v5409_v7 = vpack.c.bf16 %v1130_v5, %v1129_v25  ;;  %v5411_v61 = vpack.c.bf16 %v1148_v40, %v1147_v62  ;;  %v1880_v59 = vld [vmem:[#allocation6 + $0x570] sm:$0xff]  ;;  %v1134_v25 = vld [vmem:[#allocation6 + $0x58] sm:$0xff]  ;;  %v1899_v39 = vld [vmem:[#allocation6 + $0x608] sm:$0xff] }
 0x192   :  { %5404 = vmatprep.subr.bf16.mxu1 %v5403_v46  ;;  %5452 = vmatprep.subr.bf16.mxu0 %v5451_v43  ;;  %v1878_v46 = vld [vmem:[#allocation6 + $0x560] sm:$0xff]  ;;  %v1132_v43 = vld [vmem:[#allocation6 + $0x48] sm:$0xff]  ;;  %v1838_v36 = vld [vmem:[#allocation2 + $0x18] sm:$0xf0]  ;;  %v5417_v44 = vpack.c.bf16 %v1134_v25, %v1133_v53  ;;  %v5508_v62 = vpack.c.bf16 %v1899_v39, %v1898_v23 }
 0x193   :  { %v5502_v45 = vpack.c.bf16 %v1879_v19, %v1878_v46  ;;  %v5413_v24 = vpack.c.bf16 %v1132_v43, %v1131_v21  ;;  %v1152_v5 = vld [vmem:[#allocation6 + $0xe8] sm:$0xff]  ;;  %v1882_v40 = vld [vmem:[#allocation6 + $0x580] sm:$0xff]  ;;  %v1153_v46 = vld [vmem:[#allocation6 + $0xf0] sm:$0xff] }
 0x194   :  { %4793 = vmatmul.mubr.msk.f32.gmra.mrb[22].mxu1 %vm1090_vm2, %v1329_v33  ;;  %5454 = vmatpush3.bf16.msra.mxu0 %v5453_v18  ;;  %v1881_v18 = vld [vmem:[#allocation6 + $0x578] sm:$0xff]  ;;  %v1135_v33 = vld [vmem:[#allocation6 + $0x60] sm:$0xff]  ;;  %v1136_v21 = vld [vmem:[#allocation6 + $0x68] sm:$0xff] }
 0x195   :  { %5406 = vmatpush3.bf16.msra.mxu1 %v5405_v42  ;;  %1659 = vmatprep.mubr.f32.mxu1 %v1067_v58  ;;  %v5504_v58 = vpack.c.bf16 %v1897_v15, %v1896_v26  ;;  %v5415_v42 = vpack.c.bf16 %v1150_v10, %v1149_v9  ;;  %v1154_v19 = vld [vmem:[#allocation6 + $0xf8] sm:$0xff]  ;;  %v5421_v43 = vpack.c.bf16 %v1136_v21, %v1135_v33  ;;  %v1137_v26 = vld [vmem:[#allocation6 + $0x70] sm:$0xff]  ;;  %v1902_v53 = vld [vmem:[#allocation6 + $0x620] sm:$0xff] }
 0x196   :  { %5408 = vmatprep.subr.bf16.mxu1 %v5407_v12  ;;  %5456 = vmatprep.subr.bf16.mxu0 %v5455_v27  ;;  %v1151_v12 = vld [vmem:[#allocation6 + $0xe0] sm:$0xff]  ;;  %v5506_v27 = vpack.c.bf16 %v1881_v18, %v1880_v59  ;;  %v1884_v9 = vld [vmem:[#allocation6 + $0x590] sm:$0xff]  ;;  %v1885_v10 = vld [vmem:[#allocation6 + $0x598] sm:$0xff] }
 0x197   :  { %v5514_v18 = vpack.c.bf16 %v1885_v10, %v1884_v9  ;;  %v1886_v23 = vld [vmem:[#allocation6 + $0x5a0] sm:$0xff]  ;;  %v1887_v39 = vld [vmem:[#allocation6 + $0x5a8] sm:$0xff]  ;;  %v1889_v33 = vld [vmem:[#allocation6 + $0x5b8] sm:$0xff] }
 0x198   :  { %5458 = vmatpush3.bf16.msra.mxu0 %v5457_v8  ;;  %v1883_v8 = vld [vmem:[#allocation6 + $0x588] sm:$0xff]  ;;  %v1908_v9 = vld [vmem:[#allocation6 + $0x650] sm:$0xff]  ;;  %v1909_v10 = vld [vmem:[#allocation6 + $0x658] sm:$0xff] }
 0x199   :  { %5410 = vmatpush3.bf16.msra.mxu1 %v5409_v7  ;;  %5501 = vmatprep.subr.bf16.mxu0 %v5500_v35  ;;  %v5419_v7 = vpack.c.bf16 %v1152_v5, %v1151_v12  ;;  %v1900_v35 = vld [vmem:[#allocation6 + $0x610] sm:$0xff]  ;;  %v1187_v12 = vld [vmem:[#allocation6 + $0x200] sm:$0xff]  ;;  %v1188_v5 = vld [vmem:[#allocation6 + $0x208] sm:$0xff] }
 0x19a   :  { %5412 = vmatprep.subr.bf16.mxu1 %v5411_v61  ;;  %v5510_v61 = vpack.c.bf16 %v1883_v8, %v1882_v40  ;;  %v5512_v15 = vpack.c.bf16 %v1901_v51, %v1900_v35  ;;  %v1190_v40 = vld [vmem:[#allocation6 + $0x218] sm:$0xff]  ;;  %v1907_v21 = vld [vmem:[#allocation6 + $0x648] sm:$0xff] }
 0x19b   :  { %1740 = vmatmul.mubr.f32.vlgmr.msra.gmra.mrb[18].mxu0 %v1068_v56  ;;  %v1936_v56 = vrot.slane %v1838_v36, 4  ;;  %v1905_v36 = vld [vmem:[#allocation6 + $0x638] sm:$0xff] }
 0x19c   :  { %1744 = vmatprep.mubr.f32.mxu0 %v6570_v17  ;;  %5503 = vmatpush3.bf16.msra.mxu0 %v5502_v45  ;;  %v5423_v45 = vpack.c.bf16 %v1154_v19, %v1153_v46  ;;  %v5460_v17 = vpack.c.bf16 %v1188_v5, %v1187_v12  ;;  %v1891_v46 = vld [vmem:[#allocation6 + $0x5c8] sm:$0xff]  ;;  %v1191_v19 = vld [vmem:[#allocation6 + $0x220] sm:$0xff] }
 0x19d   :  { %5414 = vmatpush3.bf16.msra.mxu1 %v5413_v24  ;;  %5505 = vmatprep.subr.bf16.mxu0 %v5504_v58  ;;  %v1138_v24 = vld [vmem:[#allocation6 + $0x78] sm:$0xff]  ;;  %v1903_v58 = vld [vmem:[#allocation6 + $0x628] sm:$0xff]  ;;  %v1938_v59 = vsel %vm1926_vm3, %v1936_v56, %v1937_v3  ;;  %v1888_v3 = vld [vmem:[#allocation6 + $0x5b0] sm:$0xff] }
 0x19e   :  { %5416 = vmatprep.subr.bf16.mxu1 %v5415_v42  ;;  %v5425_v42 = vpack.c.bf16 %v1138_v24, %v1137_v26  ;;  %v5516_v25 = vpack.c.bf16 %v1903_v58, %v1902_v53  ;;  %v5522_v35 = vpack.c.bf16 %v1889_v33, %v1888_v3  ;;  %v1890_v56 = vld [vmem:[#allocation6 + $0x5c0] sm:$0xff]  ;;  %v1893_v24 = vld [vmem:[#allocation6 + $0x5d8] sm:$0xff]  ;;  %v1867_v33 = vld [vmem:[#allocation6 + $0x508] sm:$0xff] }
 0x19f   :  { %1745 = vmatmul.mubr.f32.gmra.mrb[20].mxu0 %v6564_v14  ;;  %v1862_v26 = vld [vmem:[#allocation6 + $0x4e0] sm:$0xff]  ;;  %v5526_v49 = vpack.c.bf16 %v1891_v46, %v1890_v56  ;;  %v1868_v46 = vld [vmem:[#allocation6 + $0x510] sm:$0xff] }
 0x1a0   :  { %1749 = vmatprep.mubr.f32.mxu0 %v6595_v60  ;;  %5507 = vmatpush3.bf16.msra.mxu0 %v5506_v27  ;;  %v1904_v27 = vld [vmem:[#allocation6 + $0x630] sm:$0xff]  ;;  %v1846_v58 = vld [vmem:[#allocation6 + $0x460] sm:$0xff] }
 0x1a1   :  { %5418 = vmatpush3.bf16.msra.mxu1 %v5417_v44  ;;  %5509 = vmatprep.subr.bf16.mxu0 %v5508_v62  ;;  %v5518_v44 = vpack.c.bf16 %v1887_v39, %v1886_v23  ;;  %v1189_v62 = vld [vmem:[#allocation6 + $0x210] sm:$0xff]  ;;  %v5520_v8 = vpack.c.bf16 %v1905_v36, %v1904_v27  ;;  %v1837_v23 = vld [vmem:[#allocation2 + $0x10] sm:$0xf0]  ;;  %v1849_v36 = vld [vmem:[#allocation6 + $0x478] sm:$0xff] }
 0x1a2   :  { %5420 = vmatprep.subr.bf16.mxu1 %v5419_v7  ;;  %v1906_v7 = vld [vmem:[#allocation6 + $0x640] sm:$0xff]  ;;  %v5463_v51 = vpack.c.bf16 %v1190_v40, %v1189_v62  ;;  %v1848_v27 = vld [vmem:[#allocation6 + $0x470] sm:$0xff]  ;;  %v1843_v62 = vld [vmem:[#allocation2 + $0x90] sm:$0xf] }
 0x1a3   :  { %1750 = vmatmul.mubr.f32.gmra.mrb[22].mxu0 %v6590_v48  ;;  %v1866_v3 = vld [vmem:[#allocation6 + $0x500] sm:$0xff]  ;;  %v5474_v40 = vpack.c.bf16 %v1849_v36, %v1848_v27  ;;  %v1958_v56 = vrot.slane %v1843_v62, 4 }
 0x1a4   :  { %5511 = vmatpush3.bf16.msra.mxu0 %v5510_v61  ;;  %2124 = vmatprep.mubr.f32.mxu0 %v1938_v59  ;;  %v1192_v61 = vld [vmem:[#allocation6 + $0x228] sm:$0xff]  ;;  %v1910_v62 = vld [vmem:[#allocation6 + $0x660] sm:$0xff] }
 0x1a5   :  { %5422 = vmatpush3.bf16.msra.mxu1 %v5421_v43  ;;  %5513 = vmatprep.subr.bf16.mxu0 %v5512_v15  ;;  %v5524_v43 = vpack.c.bf16 %v1907_v21, %v1906_v7  ;;  %v1863_v15 = vld [vmem:[#allocation6 + $0x4e8] sm:$0xff]  ;;  %v5476_v21 = vpack.c.bf16 %v1867_v33, %v1866_v3  ;;  %v1835_v3 = vld [vmem:[#allocation2] sm:$0xf0] }
 0x1a6   :  { %5424 = vmatprep.subr.bf16.mxu1 %v5423_v45  ;;  %v1892_v45 = vld [vmem:[#allocation6 + $0x5d0] sm:$0xff]  ;;  %v5468_v53 = vpack.c.bf16 %v1863_v15, %v1862_v26  ;;  %v1847_v59 = vld [vmem:[#allocation6 + $0x468] sm:$0xff]  ;;  %v1853_v15 = vld [vmem:[#allocation6 + $0x498] sm:$0xff] }
 0x1a7   :  { %v5530_v39 = vpack.c.bf16 %v1893_v24, %v1892_v45  ;;  %v5470_v12 = vpack.c.bf16 %v1847_v59, %v1846_v58  ;;  %v1852_v26 = vld [vmem:[#allocation6 + $0x490] sm:$0xff]  ;;  %v1855_v24 = vld [vmem:[#allocation6 + $0x4a8] sm:$0xff]  ;;  %v1873_v58 = vld [vmem:[#allocation6 + $0x538] sm:$0xff] }
 0x1a8   :  { %5515 = vmatpush3.bf16.msra.mxu0 %v5514_v18  ;;  %v5528_v18 = vpack.c.bf16 %v1909_v10, %v1908_v9  ;;  %v1959_v10 = vsel %vm1926_vm3, %v1948_v6, %v1958_v56  ;;  %v5482_v45 = vpack.c.bf16 %v1853_v15, %v1852_v26  ;;  %v1854_v6 = vld [vmem:[#allocation6 + $0x4a0] sm:$0xff]  ;;  %v1856_v59 = vld [vmem:[#allocation6 + $0x4b0] sm:$0xff]  ;;  %v1839_v26 = vld [vmem:[#allocation2 + $0x20] sm:$0xf0] }
 0x1a9   :  { %5426 = vmatpush3.bf16.msra.mxu1 %v5425_v42  ;;  %5517 = vmatprep.subr.bf16.mxu0 %v5516_v25  ;;  %v1864_v42 = vld [vmem:[#allocation6 + $0x4f0] sm:$0xff]  ;;  %v1865_v25 = vld [vmem:[#allocation6 + $0x4f8] sm:$0xff]  ;;  %v1939_v15 = vrot.slane %v1839_v26, 4 }
 0x1aa   :  { %5459 = vmatprep.subr.bf16.mxu1 %v6218_v31  ;;  %v5472_v5 = vpack.c.bf16 %v1865_v25, %v1864_v42  ;;  %v1874_v42 = vld [vmem:[#allocation6 + $0x540] sm:$0xff]  ;;  %v1875_v25 = vld [vmem:[#allocation6 + $0x548] sm:$0xff] }
 0x1ac   :  { %1660 = vmatmul.mubr.f32.vlgmr.msra.gmra.mrb[24].mxu1 %v1066_v55  ;;  %5519 = vmatpush3.bf16.msra.mxu0 %v5518_v44  ;;  %v5466_v55 = vpack.c.bf16 %v1192_v61, %v1191_v19  ;;  %v1933_v44 = vrot.slane %v1837_v23, 4  ;;  %v1869_v19 = vld [vmem:[#allocation6 + $0x518] sm:$0xff]  ;;  %v1842_v61 = vld [vmem:[#allocation2 + $0x88] sm:$0xf] }
 0x1ad   :  { %1664 = vmatprep.mubr.f32.mxu1 %v6568_v16  ;;  %5461 = vmatpush3.bf16.msra.mxu1 %v5460_v17  ;;  %v1112_v17 = vld [vmem:[#allocation2 + $0x20] sm:$0xff]  ;;  %v1956_v9 = vrot.slane %v1842_v61, 4  ;;  %v5486_v16 = vpack.c.bf16 %v1855_v24, %v1854_v6  ;;  %v1858_v23 = vld [vmem:[#allocation6 + $0x4c0] sm:$0xff]  ;;  %v2245_v6 = vld [vmem:[#allocation8 + $0x20] sm:$0xff] }
 0x1ae   :  { %5462 = vmatprep.subr.bf16.mxu1 %v6218_v31  ;;  %5521 = vmatprep.subr.bf16.mxu0 %v5520_v8  ;;  %v1836_v8 = vld [vmem:[#allocation2 + $0x8] sm:$0xf0]  ;;  %v1935_v7 = vsel %vm1926_vm3, %v1933_v44, %v1934_v34  ;;  %v5480_v34 = vpack.c.bf16 %v1869_v19, %v1868_v46  ;;  %v1860_v44 = vld [vmem:[#allocation6 + $0x4d0] sm:$0xff] }
 0x1af   :  { %v1957_v60 = vsel %vm1926_vm3, %v1946_v1, %v1956_v9  ;;  %v5492_v1 = vpack.c.bf16 %v1875_v25, %v1874_v42  ;;  %v1840_v19 = vld [vmem:[#allocation2 + $0x78] sm:$0xf]  ;;  %v2248_v42 = vld [vmem:[#allocation8 + $0x38] sm:$0xff] }
 0x1b0   :  { %1665 = vmatmul.mubr.f32.gmra.mrb[26].mxu1 %v6562_v13  ;;  %5523 = vmatpush3.bf16.msra.mxu0 %v5522_v35  ;;  %v1850_v35 = vld [vmem:[#allocation6 + $0x480] sm:$0xff] }
 0x1b1   :  { %1669 = vmatprep.mubr.f32.mxu1 %v6604_v22  ;;  %5464 = vmatpush3.bf16.msra.mxu1 %v5463_v51  ;;  %v1851_v51 = vld [vmem:[#allocation6 + $0x488] sm:$0xff]  ;;  %v1941_v22 = vsel %vm1926_vm3, %v1939_v15, %v1940_v28  ;;  %v2241_v28 = vld [vmem:[#allocation8] sm:$0xff] }
 0x1b2   :  { %5465 = vmatprep.subr.bf16.mxu1 %v6218_v31  ;;  %5525 = vmatprep.subr.bf16.mxu0 %v5524_v43  ;;  %v1930_v43 = vrot.slane %v1836_v8, 4  ;;  %v5478_v14 = vpack.c.bf16 %v1851_v51, %v1850_v35  ;;  %v1927_v8 = vrot.slane %v1835_v3, 4  ;;  %v1912_v35 = vld [vmem:[#allocation6 + $0x670] sm:$0xff]  ;;  %v1913_v51 = vld [vmem:[#allocation6 + $0x678] sm:$0xff]  ;;  %v2252_v3 = vld [vmem:[#allocation8 + $0x58] sm:$0xff] }
 0x1b3   :  { %v5536_v61 = vpack.c.bf16 %v1913_v51, %v1912_v35  ;;  %v2272_v51 = vld [vmem:[#allocation8 + $0xe8] sm:$0xff] }
 0x1b4   :  { %1670 = vmatmul.mubr.f32.gmra.mrb[28].mxu1 %v6600_v4  ;;  %5527 = vmatpush3.bf16.msra.mxu0 %v5526_v49  ;;  %v1870_v49 = vld [vmem:[#allocation6 + $0x520] sm:$0xff]  ;;  %v1929_v56 = vsel %vm1926_vm3, %v1927_v8, %v1928_v47  ;;  %v2253_v8 = vld [vmem:[#allocation8 + $0x60] sm:$0xff] }
 0x1b5   :  { %5467 = vmatpush3.bf16.msra.mxu1 %v5466_v55  ;;  %4807 = vmatprep.mubr.msk.f32.mxu1 %vm6219_vm5, %v6217_v0  ;;  %v1871_v55 = vld [vmem:[#allocation6 + $0x528] sm:$0xff] }
 0x1b6   :  { %5469 = vmatprep.subr.bf16.mxu1 %v5468_v53  ;;  %5529 = vmatprep.subr.bf16.mxu0 %v5528_v18  ;;  %v1872_v53 = vld [vmem:[#allocation6 + $0x530] sm:$0xff]  ;;  %v1857_v18 = vld [vmem:[#allocation6 + $0x4b8] sm:$0xff] }
 0x1b7   :  { %v5490_v48 = vpack.c.bf16 %v1857_v18, %v1856_v59  ;;  %v2247_v59 = vld [vmem:[#allocation8 + $0x30] sm:$0xff] }
 0x1b8   :  { %4808 = vmatmul.mubr.msk.f32.vlgmr.msra.gmra.mrb[30].mxu1 %vm1090_vm2, %v1112_v17  ;;  %5531 = vmatpush3.bf16.msra.mxu0 %v5530_v39  ;;  %v1859_v39 = vld [vmem:[#allocation6 + $0x4c8] sm:$0xff]  ;;  %v1861_v17 = vld [vmem:[#allocation6 + $0x4d8] sm:$0xff]  ;;  %v5572_v25 = vpack.c.bf16 %v2248_v42, %v2247_v59 }
 0x1b9   :  { %5471 = vmatpush3.bf16.msra.mxu1 %v5470_v12  ;;  %4810 = vmatprep.mubr.msk.f32.mxu1 %vm6219_vm5, %v6217_v0  ;;  %v1876_v12 = vld [vmem:[#allocation6 + $0x550] sm:$0xff]  ;;  %v5494_v27 = vpack.c.bf16 %v1859_v39, %v1858_v23  ;;  %v5498_v33 = vpack.c.bf16 %v1861_v17, %v1860_v44  ;;  %v2251_v44 = vld [vmem:[#allocation8 + $0x50] sm:$0xff] }
 0x1ba   :  { %5473 = vmatprep.subr.bf16.mxu1 %v5472_v5  ;;  %5541 = vmatprep.subr.bf16.mxu0 %v6218_v31  ;;  %v1877_v5 = vld [vmem:[#allocation6 + $0x558] sm:$0xff]  ;;  %v2249_v23 = vld [vmem:[#allocation8 + $0x40] sm:$0xff] }
 0x1bb   :  { %2125 = vmatmul.mubr.f32.vlgmr.msra.gmra.mrb[24].mxu0 %v1935_v7  ;;  %v5496_v36 = vpack.c.bf16 %v1877_v5, %v1876_v12  ;;  %v2250_v12 = vld [vmem:[#allocation8 + $0x48] sm:$0xff] }
 0x1bc   :  { %4811 = vmatmul.mubr.msk.f32.gmra.mrb[32].mxu1 %vm1090_vm2, %v6688_v63  ;;  %2129 = vmatprep.mubr.f32.mxu0 %v6662_v32  ;;  %v1932_v32 = vsel %vm1926_vm3, %v1930_v43, %v1931_v2  ;;  %v5488_v2 = vpack.c.bf16 %v1873_v58, %v1872_v53  ;;  %v1914_v43 = vld [vmem:[#allocation6 + $0x680] sm:$0xff]  ;;  %v2258_v63 = vld [vmem:[#allocation8 + $0x78] sm:$0xff]  ;;  %v2246_v53 = vld [vmem:[#allocation8 + $0x28] sm:$0xff]  ;;  %v5575_v5 = vpack.c.bf16 %v2250_v12, %v2249_v23 }
 0x1bd   :  { %5475 = vmatpush3.bf16.msra.mxu1 %v5474_v40  ;;  %4813 = vmatprep.mubr.msk.f32.mxu1 %vm6219_vm5, %v6217_v0  ;;  %v1911_v40 = vld [vmem:[#allocation6 + $0x668] sm:$0xff]  ;;  %v5569_v58 = vpack.c.bf16 %v2246_v53, %v2245_v6 }
 0x1be   :  { %5477 = vmatprep.subr.bf16.mxu1 %v5476_v21  ;;  %v5533_v7 = vpack.c.bf16 %v1911_v40, %v1910_v62  ;;  %v1841_v21 = vld [vmem:[#allocation2 + $0x80] sm:$0xf]  ;;  %v2270_v62 = vld [vmem:[#allocation8 + $0xd8] sm:$0xff]  ;;  %v2271_v40 = vld [vmem:[#allocation8 + $0xe0] sm:$0xff] }
 0x1bf   :  { %2130 = vmatmul.mubr.f32.gmra.mrb[26].mxu0 %v6678_v11  ;;  %v5484_v11 = vpack.c.bf16 %v1871_v55, %v1870_v49  ;;  %v1954_v46 = vrot.slane %v1841_v21, 4  ;;  %v2254_v21 = vld [vmem:[#allocation8 + $0x68] sm:$0xff] }
 0x1c0   :  { %4814 = vmatmul.mubr.msk.f32.gmra.mrb[34].mxu1 %vm1090_vm2, %v6718_v54  ;;  %2134 = vmatprep.mubr.f32.mxu0 %v1959_v10  ;;  %v2242_v10 = vld [vmem:[#allocation8 + $0x8] sm:$0xff]  ;;  %v5581_v35 = vpack.c.bf16 %v2254_v21, %v2253_v8 }
 0x1c1   :  { %5479 = vmatpush3.bf16.msra.mxu1 %v5478_v14  ;;  %2044 = vmatprep.mubr.f32.mxu1 %v1932_v32  ;;  %v1915_v14 = vld [vmem:[#allocation6 + $0x688] sm:$0xff]  ;;  %v1955_v13 = vsel %vm1926_vm3, %v1944_v30, %v1954_v46  ;;  %v1844_v30 = vld [vmem:[#allocation2 + $0x98] sm:$0xf]  ;;  %v5563_v49 = vpack.c.bf16 %v2242_v10, %v2241_v28  ;;  %v2260_v54 = vld [vmem:[#allocation8 + $0x88] sm:$0xff] }
 0x1c2   :  { %5481 = vmatprep.subr.bf16.mxu1 %v5480_v34  ;;  %v1952_v34 = vrot.slane %v1840_v19, 4  ;;  %v5539_v47 = vpack.c.bf16 %v1915_v14, %v1914_v43  ;;  %v1960_v4 = vrot.slane %v1844_v30, 4  ;;  %v2244_v32 = vld [vmem:[#allocation8 + $0x18] sm:$0xff]  ;;  %v2255_v46 = vld [vmem:[#allocation8 + $0x70] sm:$0xff] }
 0x1c3   :  { %2135 = vmatmul.mubr.f32.gmra.mrb[28].mxu0 %v1957_v60  ;;  %v2262_v60 = vld [vmem:[#allocation8 + $0x98] sm:$0xff] }
 0x1c4   :  { %4867 = vmatprep.mubr.msk.f32.mxu0 %vm6219_vm5, %v6217_v0 }
 0x1c5   :  { %5483 = vmatpush3.bf16.msra.mxu1 %v5482_v45 }
 0x1c6   :  { %5485 = vmatprep.subr.bf16.mxu1 %v5484_v11  ;;  %v2263_v11 = vld [vmem:[#allocation8 + $0xa0] sm:$0xff] }
 0x1c7   :  { %v5548_v24 = vpack.c.bf16 %v2263_v11, %v2262_v60 }
 0x1c9   :  { %5487 = vmatpush3.bf16.msra.mxu1 %v5486_v16  ;;  %v2264_v16 = vld [vmem:[#allocation8 + $0xa8] sm:$0xff] }
 0x1ca   :  { %5489 = vmatprep.subr.bf16.mxu1 %v5488_v2  ;;  %v2265_v2 = vld [vmem:[#allocation8 + $0xb0] sm:$0xff] }
 0x1cb   :  { %v5551_v18 = vpack.c.bf16 %v2265_v2, %v2264_v16 }
 0x1cd   :  { %5491 = vmatpush3.bf16.msra.mxu1 %v5490_v48  ;;  %v2266_v48 = vld [vmem:[#allocation8 + $0xb8] sm:$0xff] }
 0x1ce   :  { %5493 = vmatprep.subr.bf16.mxu1 %v5492_v1  ;;  %v2267_v1 = vld [vmem:[#allocation8 + $0xc0] sm:$0xff] }
 0x1cf   :  { %v5554_v39 = vpack.c.bf16 %v2267_v1, %v2266_v48 }
 0x1d1   :  { %5495 = vmatpush3.bf16.msra.mxu1 %v5494_v27  ;;  %v2268_v27 = vld [vmem:[#allocation8 + $0xc8] sm:$0xff] }
 0x1d2   :  { %5497 = vmatprep.subr.bf16.mxu1 %v5496_v36  ;;  %v2269_v36 = vld [vmem:[#allocation8 + $0xd0] sm:$0xff] }
 0x1d3   :  { %v5557_v17 = vpack.c.bf16 %v2269_v36, %v2268_v27 }
 0x1d5   :  { %5499 = vmatpush3.bf16.msra.mxu1 %v5498_v33  ;;  %v5578_v33 = vpack.c.bf16 %v2252_v3, %v2251_v44 }
 0x1d6   :  { %5532 = vmatprep.subr.bf16.mxu1 %v6218_v31 }
 0x1d8   :  { %2045 = vmatmul.mubr.f32.vlgmr.msra.gmra.mrb[36].mxu1 %v1929_v56 }
 0x1d9   :  { %2049 = vmatprep.mubr.f32.mxu1 %v6695_v20  ;;  %5534 = vmatpush3.bf16.msra.mxu1 %v5533_v7  ;;  %v1953_v20 = vsel %vm1926_vm3, %v1942_v52, %v1952_v34  ;;  %v1961_v52 = vsel %vm1926_vm3, %v1950_v29, %v1960_v4  ;;  %v2243_v29 = vld [vmem:[#allocation8 + $0x10] sm:$0xff]  ;;  %v5560_v7 = vpack.c.bf16 %v2271_v40, %v2270_v62 }
 0x1da   :  { %5535 = vmatprep.subr.bf16.mxu1 %v6218_v31  ;;  %v5566_v45 = vpack.c.bf16 %v2244_v32, %v2243_v29 }
 0x1dc   :  { %2050 = vmatmul.mubr.f32.gmra.mrb[38].mxu1 %v6705_v50  ;;  %v2259_v50 = vld [vmem:[#allocation8 + $0x80] sm:$0xff] }
 0x1dd   :  { %2054 = vmatprep.mubr.f32.mxu1 %v1955_v13  ;;  %5537 = vmatpush3.bf16.msra.mxu1 %v5536_v61  ;;  %v5542_v9 = vpack.c.bf16 %v2259_v50, %v2258_v63 }
 0x1de   :  { %5538 = vmatprep.subr.bf16.mxu1 %v6218_v31 }
 0x1df   :  { %5543 = vmatpush3.bf16.msra.mxu0 %v5542_v9 }
 0x1e0   :  { %2055 = vmatmul.mubr.f32.gmra.mrb[40].mxu1 %v1953_v20  ;;  %5544 = vmatprep.subr.bf16.mxu0 %v6218_v31 }
 0x1e1   :  { %5540 = vmatpush3.bf16.msra.mxu1 %v5539_v47  ;;  %4828 = vmatprep.mubr.msk.f32.mxu1 %vm6219_vm5, %v6217_v0 }
 0x1e2   :  { %5562 = vmatprep.subr.bf16.mxu1 %v6218_v31 }
 0x1e4   :  { %4829 = vmatmul.mubr.msk.f32.vlgmr.msra.gmra.mrb[42].mxu1 %vm1090_vm2, %v1941_v22 }
 0x1e5   :  { %4831 = vmatprep.mubr.msk.f32.mxu1 %vm6219_vm5, %v6217_v0  ;;  %5564 = vmatpush3.bf16.msra.mxu1 %v5563_v49 }
 0x1e6   :  { %5565 = vmatprep.subr.bf16.mxu1 %v6218_v31 }
 0x1e8   :  { %4832 = vmatmul.mubr.msk.f32.gmra.mrb[44].mxu1 %vm1090_vm2, %v6730_v57  ;;  %v2261_v57 = vld [vmem:[#allocation8 + $0x90] sm:$0xff] }
 0x1e9   :  { %4834 = vmatprep.mubr.msk.f32.mxu1 %vm6219_vm5, %v6217_v0  ;;  %v5545_v55 = vpack.c.bf16 %v2261_v57, %v2260_v54  ;;  %5567 = vmatpush3.bf16.msra.mxu1 %v5566_v45 }
 0x1ea   :  { %5568 = vmatprep.subr.bf16.mxu1 %v6218_v31 }
 0x1eb   :  { %5546 = vmatpush3.bf16.msra.mxu0 %v5545_v55 }
 0x1ec   :  { %4835 = vmatmul.mubr.msk.f32.gmra.mrb[46].mxu1 %vm1090_vm2, %v1961_v52  ;;  %5547 = vmatprep.subr.bf16.mxu0 %v6218_v31 }
 0x1ed   :  { %4900 = vmatprep.mubr.msk.f32.mxu1 %vm6219_vm5, %v6217_v0  ;;  %5570 = vmatpush3.bf16.msra.mxu1 %v5569_v58 }
 0x1ee   :  { %5571 = vmatprep.subr.bf16.mxu1 %v6218_v31 }
 0x1ef   :  { %5549 = vmatpush3.bf16.msra.mxu0 %v5548_v24 }
 0x1f0   :  { %5550 = vmatprep.subr.bf16.mxu0 %v6218_v31 }
 0x1f1   :  { %5573 = vmatpush3.bf16.msra.mxu1 %v5572_v25 }
 0x1f2   :  { %5574 = vmatprep.subr.bf16.mxu1 %v6218_v31 }
 0x1f3   :  { %5552 = vmatpush3.bf16.msra.mxu0 %v5551_v18 }
 0x1f4   :  { %5553 = vmatprep.subr.bf16.mxu0 %v6218_v31 }
 0x1f5   :  { %5576 = vmatpush3.bf16.msra.mxu1 %v5575_v5 }
 0x1f6   :  { %5577 = vmatprep.subr.bf16.mxu1 %v6218_v31 }
 0x1f7   :  { %5555 = vmatpush3.bf16.msra.mxu0 %v5554_v39 }
 0x1f8   :  { %5556 = vmatprep.subr.bf16.mxu0 %v6218_v31 }
 0x1f9   :  { %5579 = vmatpush3.bf16.msra.mxu1 %v5578_v33 }
 0x1fa   :  { %5580 = vmatprep.subr.bf16.mxu1 %v6218_v31 }
 0x1fb   :  { %5558 = vmatpush3.bf16.msra.mxu0 %v5557_v17 }
 0x1fc   :  { %5559 = vmatprep.subr.bf16.mxu0 %v6218_v31 }
 0x1fd   :  { %5582 = vmatpush3.bf16.msra.mxu1 %v5581_v35 }
 0x1fe   :  { %4898 = vmatprep.subr.mxu1 %v6217_v0 }
 0x1ff   :  { %5561 = vmatpush3.bf16.msra.mxu0 %v5560_v7 }
 0x200   :  { %4865 = vmatprep.subr.mxu0 %v6217_v0 }
 0x201   :  { %4899 = vmatpush3.msra.mxu1 %v2255_v46 }
 0x202   :  { %5604 = vmatprep.subr.bf16.mxu1 %v6218_v31 }
 0x203   :  { %4866 = vmatpush3.msra.mxu0 %v2272_v51 }
 0x204   :  { %5583 = vmatprep.subr.bf16.mxu0 %v6218_v31 }
 0x24d   :  { %v4286_v56 = vpop.f32.mrb[12].mxu1 }
 0x24e   :  { %v4327_v19 = vpop.f32.mrb[12].mxu0  ;;  %v4287_v61 = vpop.f32.mrb[13].mxu1 }
 0x24f   :  { %v4288_v43 = vadd.f32 %v4287_v61, %v4286_v56  ;;  %v4328_v14 = vpop.f32.mrb[13].mxu0 }
 0x250   :  { %v4329_v34 = vadd.f32 %v4328_v14, %v4327_v19 }
 0x252   :  { %v4330_v13 = vpop.f32.mrb[14].mxu0  ;;  %v4289_v26 = vpop.f32.mrb[14].mxu1  ;;  %v1495_v47 = vadd.f32 %v4329_v34, %v4288_v43 }
 0x253   :  { %v4331_v20 = vpop.f32.mrb[15].mxu0  ;;  %v4290_v15 = vpop.f32.mrb[15].mxu1 }
 0x254   :  { %v4332_v22 = vadd.f32 %v4331_v20, %v4330_v13  ;;  %v4291_v30 = vadd.f32 %v4290_v15, %v4289_v26 }
 0x256   :  { %v1500_v4 = vadd.f32 %v4332_v22, %v4291_v30 }
 0x259   :  { %v4333_v52 = vpop.f32.mrb[16].mxu0 }
 0x25a   :  { %v4334_v63 = vpop.f32.mrb[17].mxu0 }
 0x25b   :  { %v4335_v50 = vadd.f32 %v4334_v63, %v4333_v52  ;;  %v4292_v28 = vpop.f32.mrb[16].mxu1 }
 0x25c   :  { %v4293_v9 = vpop.f32.mrb[17].mxu1 }
 0x25d   :  { %v4294_v10 = vadd.f32 %v4293_v9, %v4292_v28 }
 0x25f   :  { %v1574_v49 = vpop.f32.mrb[18].mxu1  ;;  %v1505_v54 = vadd.f32 %v4335_v50, %v4294_v10 }
 0x260   :  { %v1575_v57 = vadd.f32 %v1574_v49, %v1495_v47  ;;  %v4788_v29 = vpop.f32.mrb[19].mxu1 }
 0x263   :  { %v1579_v55 = vpop.f32.mrb[20].mxu1 }
 0x264   :  { %v1580_v32 = vadd.f32 %v1579_v55, %v1500_v4  ;;  %v4791_v45 = vpop.f32.mrb[21].mxu1 }
 0x267   :  { %v1584_v60 = vpop.f32.mrb[22].mxu1 }
 0x268   :  { %v1585_v11 = vadd.f32 %v1584_v60, %v1505_v54  ;;  %v4794_v6 = vpop.f32.mrb[23].mxu1 }
 0x26e   :  { %v4418_v24 = vpop.f32.mrb[18].mxu0 }
 0x26f   :  { %v4419_v53 = vpop.f32.mrb[19].mxu0 }
 0x270   :  { %v4420_v58 = vadd.f32 %v4419_v53, %v4418_v24 }
 0x272   :  { %v4421_v16 = vpop.f32.mrb[20].mxu0 }
 0x273   :  { %v4422_v2 = vpop.f32.mrb[21].mxu0 }
 0x274   :  { %v4423_v59 = vadd.f32 %v4422_v2, %v4421_v16 }
 0x276   :  { %v4424_v18 = vpop.f32.mrb[22].mxu0 }
 0x277   :  { %v4425_v42 = vpop.f32.mrb[23].mxu0 }
 0x278   :  { %v4426_v25 = vadd.f32 %v4425_v42, %v4424_v18 }
 0x27f   :  { %v4377_v48 = vpop.f32.mrb[24].mxu1 }
 0x280   :  { %v4378_v1 = vpop.f32.mrb[25].mxu1 }
 0x281   :  { %v4379_v23 = vadd.f32 %v4378_v1, %v4377_v48  ;;  %v2421_v1 = vld [vmem:[#allocation8 + $0xf0] sm:$0xff] }
 0x283   :  { %v1662_v39 = vadd.f32 %v4379_v23, %v1575_v57  ;;  %v4380_v12 = vpop.f32.mrb[26].mxu1 }
 0x284   :  { %v4381_v5 = vpop.f32.mrb[27].mxu1 }
 0x285   :  { %v4382_v27 = vadd.f32 %v4381_v5, %v4380_v12  ;;  %v1742_v36 = vadd.f32 %v4420_v58, %v1662_v39  ;;  %v2422_v12 = vld [vmem:[#allocation8 + $0xf8] sm:$0xff]  ;;  %v2512_v5 = vld [vmem:[#allocation8 + $0x168] sm:$0xff] }
 0x287   :  { %v1667_v44 = vadd.f32 %v4382_v27, %v1580_v32  ;;  %v4383_v17 = vpop.f32.mrb[28].mxu1  ;;  %v2513_v27 = vld [vmem:[#allocation8 + $0x170] sm:$0xff] }
 0x288   :  { %v4384_v3 = vpop.f32.mrb[29].mxu1 }
 0x289   :  { %v4385_v33 = vadd.f32 %v4384_v3, %v4383_v17  ;;  %v1747_v62 = vadd.f32 %v4423_v59, %v1667_v44  ;;  %v5584_v44 = vpack.c.bf16 %v2422_v12, %v2421_v1  ;;  %v5605_v17 = vpack.c.bf16 %v2513_v27, %v2512_v5  ;;  %v2423_v3 = vld [vmem:[#allocation8 + $0x100] sm:$0xff] }
 0x28a   :  { %v2607_v27 = vld [vmem:[#allocation8 + $0x200] sm:$0xff] }
 0x28b   :  { %v1672_v40 = vadd.f32 %v4385_v33, %v1585_v11  ;;  %v1821_v8 = vpop.f32.mrb[30].mxu1  ;;  %v4212_v11 = vld [vmem:[%s7088_s5] ss:$0 sm:$0xff] }
 0x28c   :  { %v1822_v7 = vadd.f32 %v1821_v8, %v1742_v36  ;;  %v4809_v21 = vpop.f32.mrb[31].mxu1  ;;  %v2515_v8 = vld [vmem:[#allocation8 + $0x180] sm:$0xff] }
 0x28d   :  { %v1752_v35 = vadd.f32 %v4426_v25, %v1672_v40  ;;  %v2514_v40 = vld [vmem:[#allocation8 + $0x178] sm:$0xff] }
 0x28e   :  { %v4509_v51 = vpop.f32.mrb[24].mxu0 }
 0x28f   :  { %v1826_v56 = vpop.f32.mrb[32].mxu1  ;;  %v4510_v46 = vpop.f32.mrb[25].mxu0 }
 0x290   :  { %v1827_v19 = vadd.f32 %v1826_v56, %v1747_v62  ;;  %v4812_v61 = vpop.f32.mrb[33].mxu1  ;;  %v4511_v43 = vadd.f32 %v4510_v46, %v4509_v51  ;;  %v2424_v62 = vld [vmem:[#allocation8 + $0x108] sm:$0xff]  ;;  %v5608_v51 = vpack.c.bf16 %v2515_v8, %v2514_v40  ;;  %v2425_v56 = vld [vmem:[#allocation8 + $0x110] sm:$0xff]  ;;  %v2426_v46 = vld [vmem:[#allocation8 + $0x118] sm:$0xff] }
 0x291   :  { %v2517_v61 = vld [vmem:[#allocation8 + $0x190] sm:$0xff]  ;;  %v2610_v40 = vld [vmem:[#allocation8 + $0x218] sm:$0xff]  ;;  %v2700_v8 = vld [vmem:[#allocation8 + $0x288] sm:$0xff] }
 0x292   :  { %v4512_v14 = vpop.f32.mrb[26].mxu0 }
 0x293   :  { %v1831_v34 = vpop.f32.mrb[34].mxu1  ;;  %v4513_v13 = vpop.f32.mrb[27].mxu0 }
 0x294   :  { %v1832_v26 = vadd.f32 %v1831_v34, %v1752_v35  ;;  %v4815_v47 = vpop.f32.mrb[35].mxu1  ;;  %v4514_v20 = vadd.f32 %v4513_v13, %v4512_v14  ;;  %v5587_v35 = vpack.c.bf16 %v2424_v62, %v2423_v3  ;;  %v2427_v34 = vld [vmem:[#allocation8 + $0x120] sm:$0xff]  ;;  %v2428_v13 = vld [vmem:[#allocation8 + $0x128] sm:$0xff]  ;;  %v2609_v62 = vld [vmem:[#allocation8 + $0x210] sm:$0xff] }
 0x295   :  { %v2519_v47 = vld [vmem:[#allocation8 + $0x1a0] sm:$0xff] }
 0x296   :  { %v4515_v15 = vpop.f32.mrb[28].mxu0 }
 0x297   :  { %v4516_v22 = vpop.f32.mrb[29].mxu0 }
 0x298   :  { %v4517_v30 = vadd.f32 %v4516_v22, %v4515_v15  ;;  %v2429_v22 = vld [vmem:[#allocation8 + $0x130] sm:$0xff] }
 0x2ab   :  { %v4468_v4 = vpop.f32.mrb[36].mxu1 }
 0x2ac   :  { %v4469_v52 = vpop.f32.mrb[37].mxu1 }
 0x2ad   :  { %v4470_v63 = vadd.f32 %v4469_v52, %v4468_v4  ;;  %v2520_v4 = vld [vmem:[#allocation8 + $0x1a8] sm:$0xff]  ;;  %v2521_v52 = vld [vmem:[#allocation8 + $0x1b0] sm:$0xff] }
 0x2af   :  { %v4471_v50 = vpop.f32.mrb[38].mxu1  ;;  %v2127_v28 = vadd.f32 %v4511_v43, %v4470_v63  ;;  %v5590_v43 = vpack.c.bf16 %v2426_v46, %v2425_v56  ;;  %v2612_v56 = vld [vmem:[#allocation8 + $0x228] sm:$0xff]  ;;  %v2702_v46 = vld [vmem:[#allocation8 + $0x298] sm:$0xff] }
 0x2b0   :  { %v4472_v9 = vpop.f32.mrb[39].mxu1 }
 0x2b1   :  { %v4473_v10 = vadd.f32 %v4472_v9, %v4471_v50  ;;  %v5617_v50 = vpack.c.bf16 %v2521_v52, %v2520_v4  ;;  %v2432_v9 = vld [vmem:[#allocation8 + $0x148] sm:$0xff]  ;;  %v2707_v4 = vld [vmem:[#allocation8 + $0x2c0] sm:$0xff] }
 0x2b3   :  { %v4474_v49 = vpop.f32.mrb[40].mxu1  ;;  %v2132_v54 = vadd.f32 %v4514_v20, %v4473_v10  ;;  %v5593_v20 = vpack.c.bf16 %v2428_v13, %v2427_v34  ;;  %v2522_v10 = vld [vmem:[#allocation8 + $0x1b8] sm:$0xff]  ;;  %v2704_v13 = vld [vmem:[#allocation8 + $0x2a8] sm:$0xff] }
 0x2b4   :  { %v4475_v57 = vpop.f32.mrb[41].mxu1  ;;  %v2614_v34 = vld [vmem:[#allocation8 + $0x238] sm:$0xff] }
 0x2b5   :  { %v4476_v29 = vadd.f32 %v4475_v57, %v4474_v49  ;;  %v2523_v49 = vld [vmem:[#allocation8 + $0x1c0] sm:$0xff] }
 0x2b6   :  { %v5620_v57 = vpack.c.bf16 %v2523_v49, %v2522_v10  ;;  %v2877_v10 = vld [vmem:[#allocation8 + $0x350] sm:$0xff] }
 0x2b7   :  { %v2206_v55 = vpop.f32.mrb[42].mxu1  ;;  %v2137_v32 = vadd.f32 %v4517_v30, %v4476_v29  ;;  %v2430_v30 = vld [vmem:[#allocation8 + $0x138] sm:$0xff]  ;;  %v2433_v29 = vld [vmem:[#allocation8 + $0x150] sm:$0xff] }
 0x2b8   :  { %v2207_v45 = vadd.f32 %v2206_v55, %v2127_v28  ;;  %v4830_v60 = vpop.f32.mrb[43].mxu1  ;;  %v5596_v63 = vpack.c.bf16 %v2430_v30, %v2429_v22  ;;  %v2431_v28 = vld [vmem:[#allocation8 + $0x140] sm:$0xff]  ;;  %v2434_v55 = vld [vmem:[#allocation8 + $0x158] sm:$0xff]  ;;  %v2616_v22 = vld [vmem:[#allocation8 + $0x248] sm:$0xff] }
 0x2b9   :  { %v5602_v60 = vpack.c.bf16 %v2434_v55, %v2433_v29  ;;  %v2706_v30 = vld [vmem:[#allocation8 + $0x2b8] sm:$0xff]  ;;  %v2617_v49 = vld [vmem:[#allocation8 + $0x250] sm:$0xff]  ;;  %v2787_v55 = vld [vmem:[#allocation8 + $0x2e0] sm:$0xff] }
 0x2ba   :  { %v2220_v6 = vadd.f32 %v2207_v45, %v1822_v7  ;;  %v2525_v45 = vld [vmem:[#allocation8 + $0x1d0] sm:$0xff] }
 0x2bb   :  { %v2211_v24 = vpop.f32.mrb[44].mxu1 }
 0x2bc   :  { %v2230_v53 = vadd.f32 %v4212_v11, %v2220_v6  ;;  %v2212_v58 = vadd.f32 %v2211_v24, %v2132_v54  ;;  %v4833_v16 = vpop.f32.mrb[45].mxu1  ;;  %v5599_v54 = vpack.c.bf16 %v2432_v9, %v2431_v28  ;;  %v2603_v6 = vld [vmem:[#allocation8 + $0x1e0] sm:$0xff]  ;;  %v2604_v24 = vld [vmem:[#allocation8 + $0x1e8] sm:$0xff]  ;;  %v2786_v28 = vld [vmem:[#allocation8 + $0x2d8] sm:$0xff] }
 0x2bd   :  { %v2435_v16 = vld [vmem:[#allocation8 + $0x160] sm:$0xff]  ;;  %v2876_v9 = vld [vmem:[#allocation8 + $0x348] sm:$0xff] }
 0x2be   :  { %v2233_v2 = vmax.f32 %v2230_v53, 0.0  ;;  %v2221_v59 = vadd.f32 %v2212_v58, %v1827_v19  ;;  %v2516_v19 = vld [vmem:[#allocation8 + $0x188] sm:$0xff]  ;;  %v2694_v53 = vld [vmem:[#allocation8 + $0x258] sm:$0xff]  ;;  %v2695_v58 = vld [vmem:[#allocation8 + $0x260] sm:$0xff]  ;;  %v5689_v29 = vpack.c.bf16 %v2877_v10, %v2876_v9 }
 0x2bf   :  { %v2216_v18 = vpop.f32.mrb[46].mxu1  ;;  %v5611_v14 = vpack.c.bf16 %v2517_v61, %v2516_v19  ;;  %v2703_v19 = vld [vmem:[#allocation8 + $0x2a0] sm:$0xff] }
 0x2c0   :  { %2237 = vst.msk [vmem:[#allocation3] sm:$0xff] %vm2236_vm6, %v2233_v2  ;;  %v2231_v42 = vadd.f32 %v4212_v11, %v2221_v59  ;;  %v2217_v25 = vadd.f32 %v2216_v18, %v2137_v32  ;;  %v4836_v48 = vpop.f32.mrb[47].mxu1  ;;  %v2524_v32 = vld [vmem:[#allocation8 + $0x1c8] sm:$0xff]  ;;  %v2526_v2 = vld [vmem:[#allocation8 + $0x1d8] sm:$0xff]  ;;  %v5626_v59 = vpack.c.bf16 %v2604_v24, %v2603_v6  ;;  %v5647_v18 = vpack.c.bf16 %v2695_v58, %v2694_v53  ;;  %v2879_v6 = vld [vmem:[#allocation8 + $0x360] sm:$0xff] }
 0x2c1   :  { %v2696_v48 = vld [vmem:[#allocation8 + $0x268] sm:$0xff]  ;;  %v2789_v58 = vld [vmem:[#allocation8 + $0x2f0] sm:$0xff]  ;;  %v2971_v10 = vld [vmem:[#allocation8 + $0x3e0] sm:$0xff] }
 0x2c2   :  { %v2234_v23 = vmax.f32 %v2231_v42, 0.0  ;;  %v2222_v39 = vadd.f32 %v2217_v25, %v1832_v26  ;;  %v2518_v26 = vld [vmem:[#allocation8 + $0x198] sm:$0xff]  ;;  %v2605_v42 = vld [vmem:[#allocation8 + $0x1f0] sm:$0xff] }
 0x2c3   :  { %v5614_v15 = vpack.c.bf16 %v2519_v47, %v2518_v26  ;;  %v2606_v25 = vld [vmem:[#allocation8 + $0x1f8] sm:$0xff]  ;;  %v2705_v26 = vld [vmem:[#allocation8 + $0x2b0] sm:$0xff] }
 0x2c4   :  { %2238 = vst.msk [vmem:[#allocation3 + $0x8] sm:$0xff] %vm2236_vm6, %v2234_v23  ;;  %v2232_v36 = vadd.f32 %v4212_v11, %v2222_v39  ;;  %v5623_v11 = vpack.c.bf16 %v2525_v45, %v2524_v32  ;;  %v2697_v39 = vld [vmem:[#allocation8 + $0x270] sm:$0xff]  ;;  %v5629_v12 = vpack.c.bf16 %v2606_v25, %v2605_v42  ;;  %v2788_v32 = vld [vmem:[#allocation8 + $0x2e8] sm:$0xff]  ;;  %v2878_v45 = vld [vmem:[#allocation8 + $0x358] sm:$0xff] }
 0x2c5   :  { %v5650_v5 = vpack.c.bf16 %v2697_v39, %v2696_v48  ;;  %v5671_v24 = vpack.c.bf16 %v2788_v32, %v2787_v55  ;;  %v5692_v53 = vpack.c.bf16 %v2879_v6, %v2878_v45  ;;  %v2791_v25 = vld [vmem:[#allocation8 + $0x300] sm:$0xff]  ;;  %v2792_v48 = vld [vmem:[#allocation8 + $0x308] sm:$0xff]  ;;  %v2973_v32 = vld [vmem:[#allocation8 + $0x3f0] sm:$0xff] }
 0x2c6   :  { %v2235_v33 = vmax.f32 %v2232_v36, 0.0  ;;  %v2608_v36 = vld [vmem:[#allocation8 + $0x208] sm:$0xff]  ;;  %v5677_v39 = vpack.c.bf16 %v2792_v48, %v2791_v25  ;;  %v2974_v45 = vld [vmem:[#allocation8 + $0x3f8] sm:$0xff] }
 0x2c7   :  { %v2256_v7 = vld [vmem:[#allocation3 + $0x2] sm:$0x3]  ;;  %v2240_v21 = vld [vmem:[#allocation3] sm:$0x3]  ;;  %v2419_v1 = vld [vmem:[#allocation3 + $0x4] sm:$0x3]  ;;  %v5632_v3 = vpack.c.bf16 %v2608_v36, %v2607_v27  ;;  %v5719_v6 = vpack.c.bf16 %v2974_v45, %v2973_v32 }
 0x2c8   :  { %2239 = vst.msk [vmem:[#allocation3 + $0x10] sm:$0xff] %vm2236_vm6, %v2235_v33  ;;  %4868 = vmatmul.mubr.msk.f32.vlgmr.msra.gmra.mrb[30].mxu0 %vm2236_vm6, %v2256_v7  ;;  %4901 = vmatmul.mubr.msk.f32.vlgmr.msra.gmra.mrb[48].mxu1 %vm2236_vm6, %v2240_v21  ;;  %v2510_v23 = vld [vmem:[#allocation3 + $0x6] sm:$0x3]  ;;  %v2701_v7 = vld [vmem:[#allocation8 + $0x290] sm:$0xff]  ;;  %v5635_v21 = vpack.c.bf16 %v2610_v40, %v2609_v62  ;;  %v2794_v27 = vld [vmem:[#allocation8 + $0x318] sm:$0xff] }
 0x2c9   :  { %5585 = vmatpush3.bf16.msra.mxu0 %v5584_v44  ;;  %5606 = vmatpush3.bf16.msra.mxu1 %v5605_v17  ;;  %v2698_v44 = vld [vmem:[#allocation8 + $0x278] sm:$0xff]  ;;  %v2699_v17 = vld [vmem:[#allocation8 + $0x280] sm:$0xff]  ;;  %v2884_v36 = vld [vmem:[#allocation8 + $0x388] sm:$0xff] }
 0x2ca   :  { %5586 = vmatprep.subr.bf16.mxu0 %v6218_v31  ;;  %5607 = vmatprep.subr.bf16.mxu1 %v6218_v31  ;;  %v5653_v33 = vpack.c.bf16 %v2699_v17, %v2698_v44  ;;  %v2885_v44 = vld [vmem:[#allocation8 + $0x390] sm:$0xff]  ;;  %v2796_v62 = vld [vmem:[#allocation8 + $0x328] sm:$0xff]  ;;  %v2886_v40 = vld [vmem:[#allocation8 + $0x398] sm:$0xff] }
 0x2cb   :  { %4933 = vmatprep.mubr.msk.f32.mxu0 %vm6219_vm5, %v6217_v0  ;;  %4966 = vmatprep.mubr.msk.f32.mxu1 %vm6219_vm5, %v6217_v0  ;;  %v2978_v25 = vld [vmem:[#allocation8 + $0x418] sm:$0xff]  ;;  %v3068_v48 = vld [vmem:[#allocation8 + $0x488] sm:$0xff] }
 0x2cc   :  { %v3160_v32 = vld [vmem:[#allocation8 + $0x508] sm:$0xff]  ;;  %v3250_v45 = vld [vmem:[#allocation8 + $0x578] sm:$0xff] }
 0x2cd   :  { %5588 = vmatpush3.bf16.msra.mxu0 %v5587_v35  ;;  %5609 = vmatpush3.bf16.msra.mxu1 %v5608_v51  ;;  %v5656_v35 = vpack.c.bf16 %v2701_v7, %v2700_v8  ;;  %v2611_v51 = vld [vmem:[#allocation8 + $0x220] sm:$0xff] }
 0x2ce   :  { %5589 = vmatprep.subr.bf16.mxu0 %v6218_v31  ;;  %5610 = vmatprep.subr.bf16.mxu1 %v6218_v31  ;;  %v5638_v61 = vpack.c.bf16 %v2612_v56, %v2611_v51  ;;  %v2887_v8 = vld [vmem:[#allocation8 + $0x3a0] sm:$0xff]  ;;  %v2798_v51 = vld [vmem:[#allocation8 + $0x338] sm:$0xff]  ;;  %v2888_v56 = vld [vmem:[#allocation8 + $0x3a8] sm:$0xff] }
 0x2d1   :  { %5591 = vmatpush3.bf16.msra.mxu0 %v5590_v43  ;;  %5612 = vmatpush3.bf16.msra.mxu1 %v5611_v14  ;;  %v5659_v43 = vpack.c.bf16 %v2703_v19, %v2702_v46  ;;  %v2613_v14 = vld [vmem:[#allocation8 + $0x230] sm:$0xff] }
 0x2d2   :  { %5592 = vmatprep.subr.bf16.mxu0 %v6218_v31  ;;  %5613 = vmatprep.subr.bf16.mxu1 %v6218_v31  ;;  %v5641_v47 = vpack.c.bf16 %v2614_v34, %v2613_v14  ;;  %v2889_v46 = vld [vmem:[#allocation8 + $0x3b0] sm:$0xff]  ;;  %v2968_v14 = vld [vmem:[#allocation8 + $0x3c8] sm:$0xff]  ;;  %v3058_v34 = vld [vmem:[#allocation8 + $0x438] sm:$0xff] }
 0x2d5   :  { %5594 = vmatpush3.bf16.msra.mxu0 %v5593_v20  ;;  %5615 = vmatpush3.bf16.msra.mxu1 %v5614_v15  ;;  %v5662_v20 = vpack.c.bf16 %v2705_v26, %v2704_v13  ;;  %v2615_v15 = vld [vmem:[#allocation8 + $0x240] sm:$0xff] }
 0x2d6   :  { %5595 = vmatprep.subr.bf16.mxu0 %v6218_v31  ;;  %5616 = vmatprep.subr.bf16.mxu1 %v6218_v31  ;;  %v5644_v52 = vpack.c.bf16 %v2616_v22, %v2615_v15  ;;  %v3059_v13 = vld [vmem:[#allocation8 + $0x440] sm:$0xff]  ;;  %v2969_v22 = vld [vmem:[#allocation8 + $0x3d0] sm:$0xff] }
 0x2d7   :  { %v2799_v26 = vld [vmem:[#allocation8 + $0x340] sm:$0xff]  ;;  %v5731_v15 = vpack.c.bf16 %v3059_v13, %v3058_v34  ;;  %v3153_v13 = vld [vmem:[#allocation8 + $0x4d0] sm:$0xff] }
 0x2d9   :  { %5597 = vmatpush3.bf16.msra.mxu0 %v5596_v63  ;;  %5618 = vmatpush3.bf16.msra.mxu1 %v5617_v50  ;;  %v5665_v63 = vpack.c.bf16 %v2707_v4, %v2706_v30  ;;  %v2785_v50 = vld [vmem:[#allocation8 + $0x2d0] sm:$0xff]  ;;  %v2970_v30 = vld [vmem:[#allocation8 + $0x3d8] sm:$0xff]  ;;  %v3060_v4 = vld [vmem:[#allocation8 + $0x448] sm:$0xff] }
 0x2da   :  { %5598 = vmatprep.subr.bf16.mxu0 %v6218_v31  ;;  %5619 = vmatprep.subr.bf16.mxu1 %v6218_v31 }
 0x2dd   :  { %5600 = vmatpush3.bf16.msra.mxu0 %v5599_v54  ;;  %5621 = vmatpush3.bf16.msra.mxu1 %v5620_v57  ;;  %v2708_v54 = vld [vmem:[#allocation8 + $0x2c8] sm:$0xff]  ;;  %v5668_v57 = vpack.c.bf16 %v2786_v28, %v2785_v50  ;;  %v3061_v50 = vld [vmem:[#allocation8 + $0x450] sm:$0xff]  ;;  %v5713_v28 = vpack.c.bf16 %v2970_v30, %v2969_v22  ;;  %v3155_v30 = vld [vmem:[#allocation8 + $0x4e0] sm:$0xff] }
 0x2de   :  { %5601 = vmatprep.subr.bf16.mxu0 %v6218_v31  ;;  %5622 = vmatprep.subr.bf16.mxu1 %v6218_v31  ;;  %v5734_v9 = vpack.c.bf16 %v3061_v50, %v3060_v4  ;;  %v3156_v4 = vld [vmem:[#allocation8 + $0x4e8] sm:$0xff] }
 0x2df   :  { %v5761_v50 = vpack.c.bf16 %v3156_v4, %v3155_v30  ;;  %v3352_v30 = vld [vmem:[%s7091_s8 + $0x70] sm:$0xff] }
 0x2e1   :  { %5603 = vmatpush3.bf16.msra.mxu0 %v5602_v60  ;;  %5624 = vmatpush3.bf16.msra.mxu1 %v5623_v11  ;;  %v2601_v60 = vld [vmem:[#allocation3 + $0x8] sm:$0x3]  ;;  %v2692_v11 = vld [vmem:[#allocation3 + $0xa] sm:$0x3] }
 0x2e2   :  { %4931 = vmatprep.subr.mxu0 %v6217_v0  ;;  %4964 = vmatprep.subr.mxu1 %v6217_v0 }
 0x2e5   :  { %4932 = vmatpush3.msra.mxu0 %v2435_v16  ;;  %4965 = vmatpush3.msra.mxu1 %v2526_v2  ;;  %v2790_v16 = vld [vmem:[#allocation8 + $0x2f8] sm:$0xff]  ;;  %v2880_v2 = vld [vmem:[#allocation8 + $0x368] sm:$0xff] }
 0x2e6   :  { %4934 = vmatmul.mubr.msk.f32.vlgmr.msra.gmra.mrb[32].mxu0 %vm2236_vm6, %v2419_v1  ;;  %4967 = vmatmul.mubr.msk.f32.vlgmr.msra.gmra.mrb[50].mxu1 %vm2236_vm6, %v2510_v23  ;;  %v2882_v1 = vld [vmem:[#allocation8 + $0x378] sm:$0xff]  ;;  %v2883_v23 = vld [vmem:[#allocation8 + $0x380] sm:$0xff] }
 0x2e7   :  { %5625 = vmatprep.subr.bf16.mxu0 %v6218_v31  ;;  %5646 = vmatprep.subr.bf16.mxu1 %v6218_v31 }
 0x2e8   :  { %5627 = vmatpush3.bf16.msra.mxu0 %v5626_v59  ;;  %5648 = vmatpush3.bf16.msra.mxu1 %v5647_v18  ;;  %v2881_v59 = vld [vmem:[#allocation8 + $0x370] sm:$0xff]  ;;  %v5674_v18 = vpack.c.bf16 %v2790_v16, %v2789_v58  ;;  %v2976_v58 = vld [vmem:[#allocation8 + $0x408] sm:$0xff]  ;;  %v3066_v16 = vld [vmem:[#allocation8 + $0x478] sm:$0xff] }
 0x2e9   :  { %5628 = vmatprep.subr.bf16.mxu0 %v6218_v31  ;;  %5649 = vmatprep.subr.bf16.mxu1 %v6218_v31  ;;  %v5695_v42 = vpack.c.bf16 %v2881_v59, %v2880_v2  ;;  %v3067_v2 = vld [vmem:[#allocation8 + $0x480] sm:$0xff] }
 0x2ea   :  { %4999 = vmatprep.mubr.msk.f32.mxu0 %vm6219_vm5, %v6217_v0  ;;  %5032 = vmatprep.mubr.msk.f32.mxu1 %vm6219_vm5, %v6217_v0 }
 0x2ec   :  { %5630 = vmatpush3.bf16.msra.mxu0 %v5629_v12  ;;  %5651 = vmatpush3.bf16.msra.mxu1 %v5650_v5  ;;  %v5698_v12 = vpack.c.bf16 %v2883_v23, %v2882_v1  ;;  %v2793_v5 = vld [vmem:[#allocation8 + $0x310] sm:$0xff] }
 0x2ed   :  { %5631 = vmatprep.subr.bf16.mxu0 %v6218_v31  ;;  %5652 = vmatprep.subr.bf16.mxu1 %v6218_v31  ;;  %v5680_v17 = vpack.c.bf16 %v2794_v27, %v2793_v5  ;;  %v3069_v1 = vld [vmem:[#allocation8 + $0x490] sm:$0xff]  ;;  %v2980_v5 = vld [vmem:[#allocation8 + $0x428] sm:$0xff]  ;;  %v3070_v27 = vld [vmem:[#allocation8 + $0x498] sm:$0xff] }
 0x2f0   :  { %5633 = vmatpush3.bf16.msra.mxu0 %v5632_v3  ;;  %5654 = vmatpush3.bf16.msra.mxu1 %v5653_v33  ;;  %v5701_v3 = vpack.c.bf16 %v2885_v44, %v2884_v36  ;;  %v2795_v33 = vld [vmem:[#allocation8 + $0x320] sm:$0xff] }
 0x2f1   :  { %5634 = vmatprep.subr.bf16.mxu0 %v6218_v31  ;;  %5655 = vmatprep.subr.bf16.mxu1 %v6218_v31  ;;  %v5683_v7 = vpack.c.bf16 %v2796_v62, %v2795_v33  ;;  %v3071_v36 = vld [vmem:[#allocation8 + $0x4a0] sm:$0xff]  ;;  %v3150_v33 = vld [vmem:[#allocation8 + $0x4b8] sm:$0xff]  ;;  %v3240_v62 = vld [vmem:[#allocation8 + $0x528] sm:$0xff] }
 0x2f4   :  { %5636 = vmatpush3.bf16.msra.mxu0 %v5635_v21  ;;  %5657 = vmatpush3.bf16.msra.mxu1 %v5656_v35  ;;  %v5704_v21 = vpack.c.bf16 %v2887_v8, %v2886_v40  ;;  %v2797_v35 = vld [vmem:[#allocation8 + $0x330] sm:$0xff] }
 0x2f5   :  { %5637 = vmatprep.subr.bf16.mxu0 %v6218_v31  ;;  %5658 = vmatprep.subr.bf16.mxu1 %v6218_v31  ;;  %v5686_v19 = vpack.c.bf16 %v2798_v51, %v2797_v35  ;;  %v3241_v40 = vld [vmem:[#allocation8 + $0x530] sm:$0xff]  ;;  %v3151_v51 = vld [vmem:[#allocation8 + $0x4c0] sm:$0xff] }
 0x2f6   :  { %v2981_v8 = vld [vmem:[#allocation8 + $0x430] sm:$0xff]  ;;  %v5773_v35 = vpack.c.bf16 %v3241_v40, %v3240_v62  ;;  %v3342_v62 = vld [vmem:[%s7091_s8 + $0x20] sm:$0xff] }
 0x2f7   :  { %v3343_v40 = vld [vmem:[%s7091_s8 + $0x28] sm:$0xff] }
 0x2f8   :  { %5639 = vmatpush3.bf16.msra.mxu0 %v5638_v61  ;;  %5660 = vmatpush3.bf16.msra.mxu1 %v5659_v43  ;;  %v5707_v61 = vpack.c.bf16 %v2889_v46, %v2888_v56  ;;  %v2967_v43 = vld [vmem:[#allocation8 + $0x3c0] sm:$0xff]  ;;  %v3152_v56 = vld [vmem:[#allocation8 + $0x4c8] sm:$0xff]  ;;  %v3242_v46 = vld [vmem:[#allocation8 + $0x538] sm:$0xff] }
 0x2f9   :  { %5640 = vmatprep.subr.bf16.mxu0 %v6218_v31  ;;  %5661 = vmatprep.subr.bf16.mxu1 %v6218_v31 }
 0x2fc   :  { %5642 = vmatpush3.bf16.msra.mxu0 %v5641_v47  ;;  %5663 = vmatpush3.bf16.msra.mxu1 %v5662_v20  ;;  %v2890_v47 = vld [vmem:[#allocation8 + $0x3b8] sm:$0xff]  ;;  %v5710_v20 = vpack.c.bf16 %v2968_v14, %v2967_v43  ;;  %v3243_v43 = vld [vmem:[#allocation8 + $0x540] sm:$0xff]  ;;  %v5755_v14 = vpack.c.bf16 %v3152_v56, %v3151_v51  ;;  %v3346_v51 = vld [vmem:[%s7091_s8 + $0x40] sm:$0xff] }
 0x2fd   :  { %5643 = vmatprep.subr.bf16.mxu0 %v6218_v31  ;;  %5664 = vmatprep.subr.bf16.mxu1 %v6218_v31  ;;  %v5776_v34 = vpack.c.bf16 %v3243_v43, %v3242_v46  ;;  %v3347_v56 = vld [vmem:[%s7091_s8 + $0x48] sm:$0xff] }
 0x2fe   :  { %v5806_v46 = vpack.c.bf16 %v3347_v56, %v3346_v51  ;;  %v3531_v51 = vld [vmem:[%s7095_s12] sm:$0xff]  ;;  %v3532_v56 = vld [vmem:[%s7095_s12 + $0x8] sm:$0xff] }
 0x300   :  { %5645 = vmatpush3.bf16.msra.mxu0 %v5644_v52  ;;  %5666 = vmatpush3.bf16.msra.mxu1 %v5665_v63  ;;  %v2783_v52 = vld [vmem:[#allocation3 + $0xc] sm:$0x3]  ;;  %v2874_v63 = vld [vmem:[#allocation3 + $0xe] sm:$0x3] }
 0x301   :  { %4997 = vmatprep.subr.mxu0 %v6217_v0  ;;  %5030 = vmatprep.subr.mxu1 %v6217_v0 }
 0x304   :  { %4998 = vmatpush3.msra.mxu0 %v2617_v49  ;;  %5031 = vmatpush3.msra.mxu1 %v2708_v54  ;;  %v2972_v49 = vld [vmem:[#allocation8 + $0x3e8] sm:$0xff]  ;;  %v3062_v54 = vld [vmem:[#allocation8 + $0x458] sm:$0xff] }
 0x305   :  { %5000 = vmatmul.mubr.msk.f32.vlgmr.msra.gmra.mrb[34].mxu0 %vm2236_vm6, %v2601_v60  ;;  %5033 = vmatmul.mubr.msk.f32.vlgmr.msra.gmra.mrb[52].mxu1 %vm2236_vm6, %v2692_v11  ;;  %v3064_v60 = vld [vmem:[#allocation8 + $0x468] sm:$0xff]  ;;  %v3065_v11 = vld [vmem:[#allocation8 + $0x470] sm:$0xff] }
 0x306   :  { %5667 = vmatprep.subr.bf16.mxu0 %v6218_v31  ;;  %5688 = vmatprep.subr.bf16.mxu1 %v6218_v31 }
 0x307   :  { %5669 = vmatpush3.bf16.msra.mxu0 %v5668_v57  ;;  %5690 = vmatpush3.bf16.msra.mxu1 %v5689_v29  ;;  %v3063_v57 = vld [vmem:[#allocation8 + $0x460] sm:$0xff]  ;;  %v5716_v29 = vpack.c.bf16 %v2972_v49, %v2971_v10  ;;  %v3158_v10 = vld [vmem:[#allocation8 + $0x4f8] sm:$0xff]  ;;  %v3248_v49 = vld [vmem:[#allocation8 + $0x568] sm:$0xff] }
 0x308   :  { %5670 = vmatprep.subr.bf16.mxu0 %v6218_v31  ;;  %5691 = vmatprep.subr.bf16.mxu1 %v6218_v31  ;;  %v5737_v55 = vpack.c.bf16 %v3063_v57, %v3062_v54  ;;  %v3249_v54 = vld [vmem:[#allocation8 + $0x570] sm:$0xff] }
 0x309   :  { %5065 = vmatprep.mubr.msk.f32.mxu0 %vm6219_vm5, %v6217_v0  ;;  %5098 = vmatprep.mubr.msk.f32.mxu1 %vm6219_vm5, %v6217_v0 }
 0x30b   :  { %5672 = vmatpush3.bf16.msra.mxu0 %v5671_v24  ;;  %5693 = vmatpush3.bf16.msra.mxu1 %v5692_v53  ;;  %v5740_v24 = vpack.c.bf16 %v3065_v11, %v3064_v60  ;;  %v2975_v53 = vld [vmem:[#allocation8 + $0x400] sm:$0xff] }
 0x30c   :  { %5673 = vmatprep.subr.bf16.mxu0 %v6218_v31  ;;  %5694 = vmatprep.subr.bf16.mxu1 %v6218_v31  ;;  %v5722_v59 = vpack.c.bf16 %v2976_v58, %v2975_v53  ;;  %v3251_v60 = vld [vmem:[#allocation8 + $0x580] sm:$0xff]  ;;  %v3162_v53 = vld [vmem:[#allocation8 + $0x518] sm:$0xff]  ;;  %v3252_v58 = vld [vmem:[#allocation8 + $0x588] sm:$0xff] }
 0x30f   :  { %5675 = vmatpush3.bf16.msra.mxu0 %v5674_v18  ;;  %5696 = vmatpush3.bf16.msra.mxu1 %v5695_v42  ;;  %v5743_v18 = vpack.c.bf16 %v3067_v2, %v3066_v16  ;;  %v2977_v42 = vld [vmem:[#allocation8 + $0x410] sm:$0xff] }
 0x310   :  { %5676 = vmatprep.subr.bf16.mxu0 %v6218_v31  ;;  %5697 = vmatprep.subr.bf16.mxu1 %v6218_v31  ;;  %v5725_v23 = vpack.c.bf16 %v2978_v25, %v2977_v42  ;;  %v3253_v16 = vld [vmem:[#allocation8 + $0x590] sm:$0xff]  ;;  %v3254_v42 = vld [vmem:[#allocation8 + $0x598] sm:$0xff] }
 0x311   :  { %v3147_v25 = vld [vmem:[#allocation3 + $0x14] sm:$0x3] }
 0x313   :  { %5678 = vmatpush3.bf16.msra.mxu0 %v5677_v39  ;;  %5699 = vmatpush3.bf16.msra.mxu1 %v5698_v12  ;;  %v5746_v39 = vpack.c.bf16 %v3069_v1, %v3068_v48  ;;  %v2979_v12 = vld [vmem:[#allocation8 + $0x420] sm:$0xff]  ;;  %v3238_v48 = vld [vmem:[#allocation3 + $0x16] sm:$0x3]  ;;  %v3338_v1 = vld [vmem:[%s7091_s8] sm:$0xff] }
 0x314   :  { %5679 = vmatprep.subr.bf16.mxu0 %v6218_v31  ;;  %5700 = vmatprep.subr.bf16.mxu1 %v6218_v31  ;;  %v5728_v44 = vpack.c.bf16 %v2980_v5, %v2979_v12  ;;  %v3341_v5 = vld [vmem:[%s7091_s8 + $0x18] sm:$0xff] }
 0x317   :  { %5681 = vmatpush3.bf16.msra.mxu0 %v5680_v17  ;;  %5702 = vmatpush3.bf16.msra.mxu1 %v5701_v3  ;;  %v5749_v17 = vpack.c.bf16 %v3071_v36, %v3070_v27  ;;  %v3149_v3 = vld [vmem:[#allocation8 + $0x4b0] sm:$0xff] }
 0x318   :  { %5682 = vmatprep.subr.bf16.mxu0 %v6218_v31  ;;  %5703 = vmatprep.subr.bf16.mxu1 %v6218_v31 }
 0x31b   :  { %5684 = vmatpush3.bf16.msra.mxu0 %v5683_v7  ;;  %5705 = vmatpush3.bf16.msra.mxu1 %v5704_v21  ;;  %v3072_v7 = vld [vmem:[#allocation8 + $0x4a8] sm:$0xff]  ;;  %v5752_v21 = vpack.c.bf16 %v3150_v33, %v3149_v3 }
 0x31c   :  { %5685 = vmatprep.subr.bf16.mxu0 %v6218_v31  ;;  %5706 = vmatprep.subr.bf16.mxu1 %v6218_v31 }
 0x31f   :  { %5687 = vmatpush3.bf16.msra.mxu0 %v5686_v19  ;;  %5708 = vmatpush3.bf16.msra.mxu1 %v5707_v61  ;;  %v2965_v19 = vld [vmem:[#allocation3 + $0x10] sm:$0x3]  ;;  %v3056_v61 = vld [vmem:[#allocation3 + $0x12] sm:$0x3] }
 0x320   :  { %5063 = vmatprep.subr.mxu0 %v6217_v0  ;;  %5096 = vmatprep.subr.mxu1 %v6217_v0 }
 0x323   :  { %5064 = vmatpush3.msra.mxu0 %v2799_v26  ;;  %5097 = vmatpush3.msra.mxu1 %v2890_v47  ;;  %v3154_v26 = vld [vmem:[#allocation8 + $0x4d8] sm:$0xff]  ;;  %v3244_v47 = vld [vmem:[#allocation8 + $0x548] sm:$0xff] }
 0x324   :  { %5066 = vmatmul.mubr.msk.f32.vlgmr.msra.gmra.mrb[36].mxu0 %vm2236_vm6, %v2783_v52  ;;  %5099 = vmatmul.mubr.msk.f32.vlgmr.msra.gmra.mrb[54].mxu1 %vm2236_vm6, %v2874_v63  ;;  %v3246_v52 = vld [vmem:[#allocation8 + $0x558] sm:$0xff]  ;;  %v3247_v63 = vld [vmem:[#allocation8 + $0x560] sm:$0xff] }
 0x325   :  { %5709 = vmatprep.subr.bf16.mxu0 %v6218_v31  ;;  %5730 = vmatprep.subr.bf16.mxu1 %v6218_v31 }
 0x326   :  { %5711 = vmatpush3.bf16.msra.mxu0 %v5710_v20  ;;  %5732 = vmatpush3.bf16.msra.mxu1 %v5731_v15  ;;  %v3245_v20 = vld [vmem:[#allocation8 + $0x550] sm:$0xff]  ;;  %v5758_v15 = vpack.c.bf16 %v3154_v26, %v3153_v13 }
 0x327   :  { %5712 = vmatprep.subr.bf16.mxu0 %v6218_v31  ;;  %5733 = vmatprep.subr.bf16.mxu1 %v6218_v31  ;;  %v5779_v22 = vpack.c.bf16 %v3245_v20, %v3244_v47 }
 0x328   :  { %5131 = vmatprep.mubr.msk.f32.mxu0 %vm6219_vm5, %v6217_v0  ;;  %5164 = vmatprep.mubr.msk.f32.mxu1 %vm6219_vm5, %v6217_v0 }
 0x32a   :  { %5714 = vmatpush3.bf16.msra.mxu0 %v5713_v28  ;;  %5735 = vmatpush3.bf16.msra.mxu1 %v5734_v9  ;;  %v5782_v28 = vpack.c.bf16 %v3247_v63, %v3246_v52  ;;  %v3157_v9 = vld [vmem:[#allocation8 + $0x4f0] sm:$0xff]  ;;  %v3353_v52 = vld [vmem:[%s7091_s8 + $0x78] sm:$0xff] }
 0x32b   :  { %5715 = vmatprep.subr.bf16.mxu0 %v6218_v31  ;;  %5736 = vmatprep.subr.bf16.mxu1 %v6218_v31  ;;  %v5764_v57 = vpack.c.bf16 %v3158_v10, %v3157_v9  ;;  %v5815_v63 = vpack.c.bf16 %v3353_v52, %v3352_v30  ;;  %v3633_v30 = vld [vmem:[#allocation9 + $0x78] sm:$0xff]  ;;  %v3628_v52 = vld [vmem:[#allocation9 + $0x50] sm:$0xff] }
 0x32e   :  { %5717 = vmatpush3.bf16.msra.mxu0 %v5716_v29  ;;  %5738 = vmatpush3.bf16.msra.mxu1 %v5737_v55  ;;  %v5785_v29 = vpack.c.bf16 %v3249_v54, %v3248_v49  ;;  %v3159_v55 = vld [vmem:[#allocation8 + $0x500] sm:$0xff] }
 0x32f   :  { %5718 = vmatprep.subr.bf16.mxu0 %v6218_v31  ;;  %5739 = vmatprep.subr.bf16.mxu1 %v6218_v31  ;;  %v5767_v11 = vpack.c.bf16 %v3160_v32, %v3159_v55 }
 0x332   :  { %5720 = vmatpush3.bf16.msra.mxu0 %v5719_v6  ;;  %5741 = vmatpush3.bf16.msra.mxu1 %v5740_v24  ;;  %v5788_v6 = vpack.c.bf16 %v3251_v60, %v3250_v45  ;;  %v3161_v24 = vld [vmem:[#allocation8 + $0x510] sm:$0xff] }
 0x333   :  { %5721 = vmatprep.subr.bf16.mxu0 %v6218_v31  ;;  %5742 = vmatprep.subr.bf16.mxu1 %v6218_v31  ;;  %v5770_v2 = vpack.c.bf16 %v3162_v53, %v3161_v24 }
 0x336   :  { %5723 = vmatpush3.bf16.msra.mxu0 %v5722_v59  ;;  %5744 = vmatpush3.bf16.msra.mxu1 %v5743_v18  ;;  %v5791_v59 = vpack.c.bf16 %v3253_v16, %v3252_v58  ;;  %v3163_v18 = vld [vmem:[#allocation8 + $0x520] sm:$0xff] }
 0x337   :  { %5724 = vmatprep.subr.bf16.mxu0 %v6218_v31  ;;  %5745 = vmatprep.subr.bf16.mxu1 %v6218_v31 }
 0x33a   :  { %5726 = vmatpush3.bf16.msra.mxu0 %v5725_v23  ;;  %5747 = vmatpush3.bf16.msra.mxu1 %v5746_v39  ;;  %v3339_v23 = vld [vmem:[%s7091_s8 + $0x8] sm:$0xff]  ;;  %v3340_v39 = vld [vmem:[%s7091_s8 + $0x10] sm:$0xff] }
 0x33b   :  { %5727 = vmatprep.subr.bf16.mxu0 %v6218_v31  ;;  %5748 = vmatprep.subr.bf16.mxu1 %v6218_v31  ;;  %v5794_v12 = vpack.c.bf16 %v3339_v23, %v3338_v1  ;;  %v5797_v33 = vpack.c.bf16 %v3341_v5, %v3340_v39  ;;  %v3433_v5 = vld [vmem:[%s7093_s10 + $0x8] sm:$0xff] }
 0x33e   :  { %5729 = vmatpush3.bf16.msra.mxu0 %v5728_v44  ;;  %5750 = vmatpush3.bf16.msra.mxu1 %v5749_v17 }
 0x33f   :  { %5129 = vmatprep.subr.mxu0 %v6217_v0  ;;  %5162 = vmatprep.subr.mxu1 %v6217_v0 }
 0x342   :  { %5130 = vmatpush3.msra.mxu0 %v2981_v8  ;;  %5163 = vmatpush3.msra.mxu1 %v3072_v7  ;;  %v5800_v8 = vpack.c.bf16 %v3343_v40, %v3342_v62  ;;  %v3344_v7 = vld [vmem:[%s7091_s8 + $0x30] sm:$0xff]  ;;  %v4227_v40 = vld [vmem:[%s7094_s11] ss:$0 sm:$0xff] }
 0x343   :  { %5132 = vmatmul.mubr.msk.f32.vlgmr.msra.gmra.mrb[38].mxu0 %vm2236_vm6, %v2965_v19  ;;  %5165 = vmatmul.mubr.msk.f32.vlgmr.msra.gmra.mrb[56].mxu1 %vm2236_vm6, %v3056_v61  ;;  %v3348_v19 = vld [vmem:[%s7091_s8 + $0x50] sm:$0xff]  ;;  %v3349_v61 = vld [vmem:[%s7091_s8 + $0x58] sm:$0xff] }
 0x344   :  { %5751 = vmatprep.subr.bf16.mxu0 %v6218_v31  ;;  %5772 = vmatprep.subr.bf16.mxu1 %v6218_v31  ;;  %v5809_v43 = vpack.c.bf16 %v3349_v61, %v3348_v19  ;;  %v3619_v19 = vld [vmem:[#allocation9 + $0x8] sm:$0xff] }
 0x345   :  { %5753 = vmatpush3.bf16.msra.mxu0 %v5752_v21  ;;  %5774 = vmatpush3.bf16.msra.mxu1 %v5773_v35  ;;  %v3345_v21 = vld [vmem:[%s7091_s8 + $0x38] sm:$0xff]  ;;  %v3623_v61 = vld [vmem:[#allocation9 + $0x28] sm:$0xff] }
 0x346   :  { %5754 = vmatprep.subr.bf16.mxu0 %v6218_v31  ;;  %5775 = vmatprep.subr.bf16.mxu1 %v6218_v31  ;;  %v5803_v35 = vpack.c.bf16 %v3345_v21, %v3344_v7 }
 0x347   :  { %5197 = vmatprep.mubr.msk.f32.mxu0 %vm6219_vm5, %v6217_v0  ;;  %5230 = vmatprep.mubr.msk.f32.mxu1 %vm6219_vm5, %v6217_v0 }
 0x349   :  { %5756 = vmatpush3.bf16.msra.mxu0 %v5755_v14  ;;  %5777 = vmatpush3.bf16.msra.mxu1 %v5776_v34 }
 0x34a   :  { %5757 = vmatprep.subr.bf16.mxu0 %v6218_v31  ;;  %5778 = vmatprep.subr.bf16.mxu1 %v6218_v31 }
 0x34d   :  { %5759 = vmatpush3.bf16.msra.mxu0 %v5758_v15  ;;  %5780 = vmatpush3.bf16.msra.mxu1 %v5779_v22  ;;  %v3350_v15 = vld [vmem:[%s7091_s8 + $0x60] sm:$0xff]  ;;  %v3351_v22 = vld [vmem:[%s7091_s8 + $0x68] sm:$0xff] }
 0x34e   :  { %5760 = vmatprep.subr.bf16.mxu0 %v6218_v31  ;;  %5781 = vmatprep.subr.bf16.mxu1 %v6218_v31  ;;  %v5812_v4 = vpack.c.bf16 %v3351_v22, %v3350_v15  ;;  %v3629_v22 = vld [vmem:[#allocation9 + $0x58] sm:$0xff] }
 0x351   :  { %5762 = vmatpush3.bf16.msra.mxu0 %v5761_v50  ;;  %5783 = vmatpush3.bf16.msra.mxu1 %v5782_v28 }
 0x352   :  { %5763 = vmatprep.subr.bf16.mxu0 %v6218_v31  ;;  %5784 = vmatprep.subr.bf16.mxu1 %v6218_v31 }
 0x355   :  { %5765 = vmatpush3.bf16.msra.mxu0 %v5764_v57  ;;  %5786 = vmatpush3.bf16.msra.mxu1 %v5785_v29 }
 0x356   :  { %5766 = vmatprep.subr.bf16.mxu0 %v6218_v31  ;;  %5787 = vmatprep.subr.bf16.mxu1 %v6218_v31 }
 0x359   :  { %5768 = vmatpush3.bf16.msra.mxu0 %v5767_v11  ;;  %5789 = vmatpush3.bf16.msra.mxu1 %v5788_v6 }
 0x35a   :  { %5769 = vmatprep.subr.bf16.mxu0 %v6218_v31  ;;  %5790 = vmatprep.subr.bf16.mxu1 %v6218_v31 }
 0x35d   :  { %5771 = vmatpush3.bf16.msra.mxu0 %v5770_v2  ;;  %5792 = vmatpush3.bf16.msra.mxu1 %v5791_v59 }
 0x35e   :  { %5195 = vmatprep.subr.mxu0 %v6217_v0  ;;  %5228 = vmatprep.subr.mxu1 %v6217_v0 }
 0x361   :  { %5196 = vmatpush3.msra.mxu0 %v3163_v18  ;;  %5229 = vmatpush3.msra.mxu1 %v3254_v42 }
 0x362   :  { %5198 = vmatmul.mubr.msk.f32.vlgmr.msra.gmra.mrb[40].mxu0 %vm2236_vm6, %v3147_v25  ;;  %5231 = vmatmul.mubr.msk.f32.vlgmr.msra.gmra.mrb[58].mxu1 %vm2236_vm6, %v3238_v48  ;;  %v4225_v48 = vld [vmem:[%s7090_s7] ss:$0 sm:$0xff] }
 0x363   :  { %5793 = vmatprep.subr.bf16.mxu0 %v6218_v31  ;;  %5265 = vmatprep.mubr.msk.f32.mxu0 %vm6219_vm5, %v6217_v0 }
 0x364   :  { %5817 = vmatprep.subr.bf16.mxu1 %v6218_v31  ;;  %5274 = vmatprep.mubr.msk.f32.mxu1 %vm6219_vm5, %v6217_v0 }
 0x365   :  { %5795 = vmatpush3.bf16.msra.mxu0 %v5794_v12  ;;  %v3432_v12 = vld [vmem:[%s7093_s10] sm:$0xff] }
 0x366   :  { %5796 = vmatprep.subr.bf16.mxu0 %v6218_v31 }
 0x369   :  { %5798 = vmatpush3.bf16.msra.mxu0 %v5797_v33 }
 0x36a   :  { %5799 = vmatprep.subr.bf16.mxu0 %v6218_v31 }
 0x36d   :  { %5801 = vmatpush3.bf16.msra.mxu0 %v5800_v8 }
 0x36e   :  { %5802 = vmatprep.subr.bf16.mxu0 %v6218_v31 }
 0x371   :  { %5804 = vmatpush3.bf16.msra.mxu0 %v5803_v35 }
 0x372   :  { %5805 = vmatprep.subr.bf16.mxu0 %v6218_v31 }
 0x375   :  { %5807 = vmatpush3.bf16.msra.mxu0 %v5806_v46  ;;  %v5821_v46 = vpack.c.bf16 %v3532_v56, %v3531_v51  ;;  %v3626_v56 = vld [vmem:[#allocation9 + $0x40] sm:$0xff] }
 0x376   :  { %5808 = vmatprep.subr.bf16.mxu0 %v6218_v31 }
 0x379   :  { %5810 = vmatpush3.bf16.msra.mxu0 %v5809_v43  ;;  %v3621_v43 = vld [vmem:[#allocation9 + $0x18] sm:$0xff] }
 0x37a   :  { %5811 = vmatprep.subr.bf16.mxu0 %v6218_v31 }
 0x37d   :  { %5813 = vmatpush3.bf16.msra.mxu0 %v5812_v4  ;;  %v5859_v4 = vpack.c.bf16 %v3633_v30, %v3629_v22  ;;  %v3646_v22 = vld [vmem:[#allocation9 + $0xe0] sm:$0xff]  ;;  %v3651_v30 = vld [vmem:[#allocation9 + $0x108] sm:$0xff] }
 0x37e   :  { %5814 = vmatprep.subr.bf16.mxu0 %v6218_v31 }
 0x381   :  { %5816 = vmatpush3.bf16.msra.mxu0 %v5815_v63  ;;  %v3632_v63 = vld [vmem:[#allocation9 + $0x70] sm:$0xff] }
 0x39b   :  { %v2342_v27 = vpop.f32.mrb[30].mxu0  ;;  %v2415_v36 = vpop.f32.mrb[48].mxu1 }
 0x39c   :  { %v2416_v44 = vadd.f32 %v2415_v36, %v2342_v27  ;;  %v4869_v17 = vpop.f32.mrb[31].mxu0  ;;  %v4902_v3 = vpop.f32.mrb[49].mxu1  ;;  %v5818_v27 = vpack.c.bf16 %v3433_v5, %v3432_v12  ;;  %v3434_v36 = vld [vmem:[%s7093_s10 + $0x10] sm:$0xf] }
 0x39d   :  { %v3673_v12 = vld [vmem:[#allocation9 + $0x1b8] sm:$0xff] }
 0x39e   :  { %5819 = vmatpush3.bf16.msra.mxu1 %v5818_v27  ;;  %v3668_v27 = vld [vmem:[#allocation9 + $0x190] sm:$0xff] }
 0x39f   :  { %5272 = vmatprep.subr.mxu1 %v6217_v0 }
 0x3a2   :  { %5273 = vmatpush3.msk.msra.mxu1 %vm1926_vm3, %v3434_v36  ;;  %v3672_v36 = vld [vmem:[#allocation9 + $0x1b0] sm:$0xff] }
 0x3a3   :  { %5820 = vmatprep.subr.bf16.mxu1 %v6218_v31 }
 0x3b9   :  { %v2505_v14 = vpop.f32.mrb[32].mxu0  ;;  %v2596_v34 = vpop.f32.mrb[50].mxu1 }
 0x3ba   :  { %v2509_v13 = vadd.f32 %v2505_v14, %v2416_v44  ;;  %v4935_v26 = vpop.f32.mrb[33].mxu0  ;;  %v4968_v47 = vpop.f32.mrb[51].mxu1  ;;  %v4226_v44 = vld [vmem:[%s7092_s9] ss:$0 sm:$0xff]  ;;  %v3625_v14 = vld [vmem:[#allocation9 + $0x38] sm:$0xff] }
 0x3bb   :  { %v5855_v26 = vpack.c.bf16 %v3625_v14, %v3621_v43  ;;  %v3620_v47 = vld [vmem:[#allocation9 + $0x10] sm:$0xff] }
 0x3bc   :  { %v2600_v20 = vadd.f32 %v2596_v34, %v2509_v13  ;;  %v3533_v34 = vld [vmem:[%s7095_s12 + $0x10] sm:$0xf]  ;;  %v5823_v13 = vpack.c.bf16 %v3623_v61, %v3619_v19  ;;  %s6220_s12 = smov 108   ;;  %v3635_v19 = vld [vmem:[#allocation9 + $0x88] sm:$0xff] }
 0x3bd   :  { %5856 = vmatprep.subr.bf16.mxu0 %v5855_v26  ;;  %v3639_v61 = vld [vmem:[#allocation9 + $0xa8] sm:$0xff] }
 0x3be   :  { %v5831_v14 = vpack.c.bf16 %v3639_v61, %v3635_v19  ;;  %v3643_v26 = vld [vmem:[#allocation9 + $0xc8] sm:$0xff] }
 0x3d8   :  { %v2687_v50 = vpop.f32.mrb[34].mxu0  ;;  %v2778_v28 = vpop.f32.mrb[52].mxu1 }
 0x3d9   :  { %v2691_v9 = vadd.f32 %v2687_v50, %v2600_v20  ;;  %v5001_v10 = vpop.f32.mrb[35].mxu0  ;;  %v5034_v49 = vpop.f32.mrb[53].mxu1  ;;  %v3624_v20 = vld [vmem:[#allocation9 + $0x30] sm:$0xff]  ;;  %v5861_v50 = vpack.c.bf16 %v3632_v63, %v3628_v52 }
 0x3da   :  { %v5857_v15 = vpack.c.bf16 %v3624_v20, %v3620_v47  ;;  %v3647_v47 = vld [vmem:[#allocation9 + $0xe8] sm:$0xff] }
 0x3db   :  { %v2782_v54 = vadd.f32 %v2778_v28, %v2691_v9  ;;  %v3637_v28 = vld [vmem:[#allocation9 + $0x98] sm:$0xff] }
 0x3dc   :  { %v3641_v9 = vld [vmem:[#allocation9 + $0xb8] sm:$0xff] }
 0x3dd   :  { %v5863_v10 = vpack.c.bf16 %v3641_v9, %v3637_v28  ;;  %v3659_v28 = vld [vmem:[#allocation9 + $0x148] sm:$0xff] }
 0x3de   :  { %v3663_v9 = vld [vmem:[#allocation9 + $0x168] sm:$0xff] }
 0x3f7   :  { %v2869_v57 = vpop.f32.mrb[36].mxu0  ;;  %v2960_v29 = vpop.f32.mrb[54].mxu1 }
 0x3f8   :  { %v2873_v55 = vadd.f32 %v2869_v57, %v2782_v54  ;;  %v5067_v32 = vpop.f32.mrb[37].mxu0  ;;  %v5100_v45 = vpop.f32.mrb[55].mxu1  ;;  %v3636_v54 = vld [vmem:[#allocation9 + $0x90] sm:$0xff] }
 0x3f9   :  { %v3640_v57 = vld [vmem:[#allocation9 + $0xb0] sm:$0xff]  ;;  %v3649_v32 = vld [vmem:[#allocation9 + $0xf8] sm:$0xff] }
 0x3fa   :  { %v2964_v60 = vadd.f32 %v2960_v29, %v2873_v55  ;;  %v5865_v29 = vpack.c.bf16 %v3640_v57, %v3636_v54  ;;  %v3645_v55 = vld [vmem:[#allocation9 + $0xd8] sm:$0xff]  ;;  %v3658_v54 = vld [vmem:[#allocation9 + $0x140] sm:$0xff] }
 0x3fb   :  { %v5867_v45 = vpack.c.bf16 %v3649_v32, %v3645_v55  ;;  %v3662_v57 = vld [vmem:[#allocation9 + $0x160] sm:$0xff]  ;;  %v3671_v55 = vld [vmem:[#allocation9 + $0x1a8] sm:$0xff] }
 0x3fc   :  { %v5845_v32 = vpack.c.bf16 %v3662_v57, %v3658_v54  ;;  %v3865_v54 = vld [vmem:[#allocation11 + $0x78] sm:$0xff]  ;;  %v3927_v57 = vld [vmem:[#allocation11 + $0x268] sm:$0xff] }
 0x416   :  { %v3051_v11 = vpop.f32.mrb[38].mxu0  ;;  %v3142_v6 = vpop.f32.mrb[56].mxu1 }
 0x417   :  { %v3055_v24 = vadd.f32 %v3051_v11, %v2964_v60  ;;  %v5133_v53 = vpop.f32.mrb[39].mxu0  ;;  %v5166_v58 = vpop.f32.mrb[57].mxu1  ;;  %v3644_v60 = vld [vmem:[#allocation9 + $0xd0] sm:$0xff] }
 0x418   :  { %v3648_v11 = vld [vmem:[#allocation9 + $0xf0] sm:$0xff]  ;;  %v3657_v53 = vld [vmem:[#allocation9 + $0x138] sm:$0xff] }
 0x419   :  { %v3146_v16 = vadd.f32 %v3142_v6, %v3055_v24  ;;  %v5869_v6 = vpack.c.bf16 %v3648_v11, %v3644_v60  ;;  %v3653_v24 = vld [vmem:[#allocation9 + $0x118] sm:$0xff]  ;;  %v3666_v60 = vld [vmem:[#allocation9 + $0x180] sm:$0xff] }
 0x41a   :  { %v5871_v58 = vpack.c.bf16 %v3657_v53, %v3653_v24  ;;  %v3670_v11 = vld [vmem:[#allocation9 + $0x1a0] sm:$0xff]  ;;  %v3675_v24 = vld [vmem:[#allocation9 + $0x1c8] sm:$0xff] }
 0x41b   :  { %v3679_v53 = vld [vmem:[#allocation9 + $0x1e8] sm:$0xff] }
 0x435   :  { %v3233_v2 = vpop.f32.mrb[40].mxu0  ;;  %v3324_v59 = vpop.f32.mrb[58].mxu1 }
 0x436   :  { %v3237_v18 = vadd.f32 %v3233_v2, %v3146_v16  ;;  %v5199_v42 = vpop.f32.mrb[41].mxu0  ;;  %v5232_v25 = vpop.f32.mrb[59].mxu1  ;;  %v3652_v16 = vld [vmem:[#allocation9 + $0x110] sm:$0xff] }
 0x437   :  { %v3656_v2 = vld [vmem:[#allocation9 + $0x130] sm:$0xff]  ;;  %v3665_v42 = vld [vmem:[#allocation9 + $0x178] sm:$0xff] }
 0x438   :  { %v3328_v1 = vadd.f32 %v3324_v59, %v3237_v18  ;;  %v5873_v59 = vpack.c.bf16 %v3656_v2, %v3652_v16  ;;  %v3661_v18 = vld [vmem:[#allocation9 + $0x158] sm:$0xff]  ;;  %v5851_v16 = vpack.c.bf16 %v3679_v53, %v3675_v24  ;;  %v3926_v24 = vld [vmem:[#allocation11 + $0x260] sm:$0xff]  ;;  %v3928_v53 = vld [vmem:[#allocation11 + $0x270] sm:$0xff] }
 0x439   :  { %v5875_v25 = vpack.c.bf16 %v3665_v42, %v3661_v18  ;;  %v3681_v2 = vld [vmem:[#allocation9 + $0x1f8] sm:$0xff]  ;;  %v3678_v18 = vld [vmem:[#allocation9 + $0x1e0] sm:$0xff] }
 0x43a   :  { %v3336_v23 = vadd.f32 %v4225_v48, %v3328_v1  ;;  %v3660_v48 = vld [vmem:[#allocation9 + $0x150] sm:$0xff] }
 0x43b   :  { %v3664_v1 = vld [vmem:[#allocation9 + $0x170] sm:$0xff] }
 0x43c   :  { %v3337_v39 = vmax.f32 %v3336_v23, 0.0  ;;  %v5877_v23 = vpack.c.bf16 %v3664_v1, %v3660_v48  ;;  %v3676_v48 = vld [vmem:[#allocation9 + $0x1d0] sm:$0xff] }
 0x43d   :  { %v3680_v1 = vld [vmem:[#allocation9 + $0x1f0] sm:$0xff] }
 0x43e   :  { %5266 = vmatmul.mubr.f32.vlgmr.msra.gmra.mrb[42].mxu0 %v3337_v39  ;;  %v3669_v39 = vld [vmem:[#allocation9 + $0x198] sm:$0xff] }
 0x43f   :  { %3839 = vmatprep.mubr.f32.mxu0 %v6217_v0  ;;  %5858 = vmatpush1.bf16.msra.mxu0 %v5857_v15  ;;  %v5879_v5 = vpack.c.bf16 %v3673_v12, %v3669_v39  ;;  %v3642_v15 = vld [vmem:[#allocation9 + $0xc0] sm:$0xff]  ;;  %v5885_v39 = vpack.c.bf16 %v3680_v1, %v3676_v48  ;;  %v3853_v12 = vld [vmem:[#allocation11 + $0x18] sm:$0xff]  ;;  %v3868_v48 = vld [vmem:[#allocation11 + $0x90] sm:$0xff] }
 0x440   :  { %5860 = vmatprep.subr.bf16.mxu0 %v5859_v4  ;;  %v3655_v4 = vld [vmem:[#allocation9 + $0x128] sm:$0xff]  ;;  %v5837_v52 = vpack.c.bf16 %v3646_v22, %v3642_v15  ;;  %v3861_v15 = vld [vmem:[#allocation11 + $0x58] sm:$0xff] }
 0x441   :  { %v5839_v63 = vpack.c.bf16 %v3655_v4, %v3651_v30  ;;  %v3923_v22 = vld [vmem:[#allocation11 + $0x248] sm:$0xff]  ;;  %v3925_v30 = vld [vmem:[#allocation11 + $0x258] sm:$0xff] }
 0x443   :  { %5862 = vmatpush1.bf16.msra.mxu0 %v5861_v50  ;;  %v3650_v50 = vld [vmem:[#allocation9 + $0x100] sm:$0xff] }
 0x444   :  { %5864 = vmatprep.subr.bf16.mxu0 %v5863_v10 }
 0x447   :  { %5866 = vmatpush1.bf16.msra.mxu0 %v5865_v29  ;;  %v3667_v29 = vld [vmem:[#allocation9 + $0x188] sm:$0xff] }
 0x448   :  { %5868 = vmatprep.subr.bf16.mxu0 %v5867_v45  ;;  %v5847_v45 = vpack.c.bf16 %v3671_v55, %v3667_v29  ;;  %v3929_v29 = vld [vmem:[#allocation11 + $0x278] sm:$0xff] }
 0x44b   :  { %5870 = vmatpush1.bf16.msra.mxu0 %v5869_v6  ;;  %v5849_v6 = vpack.c.bf16 %v3670_v11, %v3666_v60  ;;  %v3864_v60 = vld [vmem:[#allocation11 + $0x70] sm:$0xff] }
 0x44c   :  { %5872 = vmatprep.subr.bf16.mxu0 %v5871_v58  ;;  %v3677_v58 = vld [vmem:[#allocation9 + $0x1d8] sm:$0xff] }
 0x44d   :  { %v5883_v42 = vpack.c.bf16 %v3681_v2, %v3677_v58  ;;  %v3867_v58 = vld [vmem:[#allocation11 + $0x88] sm:$0xff] }
 0x44e   :  { %v3931_v2 = vld [vmem:[#allocation11 + $0x288] sm:$0xff] }
 0x44f   :  { %5874 = vmatpush1.bf16.msra.mxu0 %v5873_v59  ;;  %v3674_v59 = vld [vmem:[#allocation9 + $0x1c0] sm:$0xff] }
 0x450   :  { %5876 = vmatprep.subr.bf16.mxu0 %v5875_v25  ;;  %v5853_v25 = vpack.c.bf16 %v3678_v18, %v3674_v59  ;;  %v3933_v59 = vld [vmem:[#allocation11 + $0x298] sm:$0xff] }
 0x453   :  { %5878 = vmatpush1.bf16.msra.mxu0 %v5877_v23  ;;  %v3851_v23 = vld [vmem:[#allocation11 + $0x8] sm:$0xff] }
 0x454   :  { %5880 = vmatprep.subr.bf16.mxu0 %v5879_v5  ;;  %v3915_v5 = vld [vmem:[#allocation11 + $0x208] sm:$0xff] }
 0x511   :  { %v3427_v17 = vpop.f32.mrb[42].mxu0 }
 0x512   :  { %v3428_v3 = vadd.f32 %v4226_v44, %v3427_v17  ;;  %v5267_v33 = vpop.f32.mrb[43].mxu0  ;;  %v5881_v44 = vpack.c.bf16 %v3672_v36, %v3668_v27  ;;  %v3521_v17 = vld [vmem:[%s7118_s25] sm:$0x3]  ;;  %v3917_v27 = vld [vmem:[#allocation11 + $0x218] sm:$0xff]  ;;  %v5887_v36 = vpack.c.bf16 %v3853_v12, %v3851_v23  ;;  %v5967_v23 = vpack.c.bf16 %v3933_v59, %v3931_v2  ;;  %v3932_v12 = vld [vmem:[#allocation11 + $0x290] sm:$0xff] }
 0x513   :  { %v3622_v33 = vld [vmem:[#allocation9 + $0x20] sm:$0xff]  ;;  %v3953_v2 = vld [vmem:[#allocation11 + $0x338] sm:$0xff] }
 0x514   :  { %v3431_v62 = vmax.f32 %v3428_v3, 0.0  ;;  %5882 = vmatpush1.bf16.msra.mxu0 %v5881_v44  ;;  %v3618_v3 = vld [vmem:[#allocation9] sm:$0xff]  ;;  %v5951_v44 = vpack.c.bf16 %v3917_v27, %v3915_v5  ;;  %v3871_v5 = vld [vmem:[#allocation11 + $0xa8] sm:$0xff]  ;;  %v3873_v27 = vld [vmem:[#allocation11 + $0xb8] sm:$0xff] }
 0x515   :  { %5884 = vmatprep.subr.bf16.mxu0 %v5883_v42  ;;  %v5965_v42 = vpack.c.bf16 %v3928_v53, %v3926_v24  ;;  %v3948_v24 = vld [vmem:[#allocation11 + $0x310] sm:$0xff]  ;;  %v3887_v53 = vld [vmem:[#allocation11 + $0x128] sm:$0xff] }
 0x516   :  { %5275 = vmatmul.mubr.msk.f32.vlgmr.msra.gmra.mrb[60].mxu1 %vm3442_vm7, %v3431_v62 }
 0x517   :  { %5283 = vmatprep.mubr.msk.f32.mxu1 %vm6219_vm5, %v6217_v0  ;;  %5822 = vmatpush3.bf16.msra.mxu1 %v5821_v46  ;;  %v3630_v46 = vld [vmem:[#allocation9 + $0x60] sm:$0xff] }
 0x518   :  { %5281 = vmatprep.subr.mxu1 %v6217_v0  ;;  %v5829_v43 = vpack.c.bf16 %v3630_v46, %v3626_v56  ;;  %5886 = vmatpush1.bf16.msra.mxu0 %v5885_v39  ;;  %v3930_v39 = vld [vmem:[#allocation11 + $0x280] sm:$0xff] }
 0x519   :  { %5888 = vmatprep.subr.bf16.mxu0 %v5887_v36  ;;  %v3935_v36 = vld [vmem:[#allocation11 + $0x2a8] sm:$0xff] }
 0x51b   :  { %5282 = vmatpush3.msk.msra.mxu1 %vm1926_vm3, %v3533_v34  ;;  %v3634_v34 = vld [vmem:[#allocation9 + $0x80] sm:$0xff] }
 0x51c   :  { %5824 = vmatprep.subr.bf16.mxu1 %v5823_v13  ;;  %v3638_v13 = vld [vmem:[#allocation9 + $0xa0] sm:$0xff] }
 0x51d   :  { %v5833_v20 = vpack.c.bf16 %v3638_v13, %v3634_v34 }
 0x5e9   :  { %v3515_v8 = vpop.f32.mrb[60].mxu1 }
 0x5ea   :  { %v7039_v31 = vadd.f32 %v4227_v40, %v3515_v8  ;;  %v5276_v7 = vpop.f32.mrb[61].mxu1  ;;  %v3627_v40 = vld [vmem:[#allocation9 + $0x48] sm:$0xff] }
 0x5eb   :  { %v3631_v8 = vld [vmem:[#allocation9 + $0x68] sm:$0xff] }
 0x5ec   :  { %3520 = vst.msk [vmem:[%s7102_s19] sm:$0x3] %vm3519_vm8, %v7039_v31  ;;  %v3522_v21 = vmul.f32 0.5, %v7039_v31  ;;  %v5827_v51 = vpack.c.bf16 %v3631_v8, %v3627_v40  ;;  %v3916_v40 = vld [vmem:[#allocation11 + $0x210] sm:$0xff]  ;;  %v3855_v8 = vld [vmem:[#allocation11 + $0x28] sm:$0xff] }
 0x5ee   :  { %v3523_v35 = vmul.f32 1.442695, %v3522_v21  ;;  %v5825_v21 = vpack.c.bf16 %v3622_v33, %v3618_v3  ;;  %v3850_v3 = vld [vmem:[#allocation11] sm:$0xff]  ;;  %v3852_v33 = vld [vmem:[#allocation11 + $0x10] sm:$0xff] }
 0x5ef   :  { %v5889_v19 = vpack.c.bf16 %v3852_v33, %v3850_v3  ;;  %v5969_v3 = vpack.c.bf16 %v3932_v12, %v3930_v39  ;;  %v3870_v33 = vld [vmem:[#allocation11 + $0xa0] sm:$0xff]  ;;  %v3952_v39 = vld [vmem:[#allocation11 + $0x330] sm:$0xff]  ;;  %v3891_v12 = vld [vmem:[#allocation11 + $0x148] sm:$0xff] }
 0x5f0   :  { %6078 = vpow2.f32 %v3523_v35 }
 0x5fa   :  { %v6079_v49 = vpop.eup %6078 }
 0x5fb   :  { %3526 = vrot.lane.b32.xlu0 %v6079_v49, %s6220_s12  ;;  %v5843_v49 = vpack.c.bf16 %v3663_v9, %v3659_v28  ;;  %v5959_v28 = vpack.c.bf16 %v3925_v30, %v3923_v22  ;;  %v3922_v9 = vld [vmem:[#allocation11 + $0x240] sm:$0xff]  ;;  %v3945_v22 = vld [vmem:[#allocation11 + $0x2f8] sm:$0xff] }
 0x66d   :  { %v3527_v62 = vpop.permute.xlu0 %3526 }
 0x66e   :  { %v3529_v7 = vmul.f32 %v3527_v62, %v3521_v17  ;;  %v4230_v17 = vld [vmem:[%s7096_s13] ss:$0 sm:$0xff]  ;;  %v3914_v62 = vld [vmem:[#allocation11 + $0x200] sm:$0xff] }
 0x66f   :  { %v5953_v61 = vpack.c.bf16 %v3916_v40, %v3914_v62  ;;  %v3872_v62 = vld [vmem:[#allocation11 + $0xb0] sm:$0xff]  ;;  %v5907_v40 = vpack.c.bf16 %v3873_v27, %v3871_v5  ;;  %v3893_v5 = vld [vmem:[#allocation11 + $0x158] sm:$0xff]  ;;  %v3955_v27 = vld [vmem:[#allocation11 + $0x348] sm:$0xff] }
 0x670   :  { %v3530_v35 = vadd.f32 %v3529_v7, %v7039_v31  ;;  %v5835_v31 = vpack.c.bf16 %v3647_v47, %v3643_v26  ;;  %v3918_v47 = vld [vmem:[#allocation11 + $0x220] sm:$0xff] }
 0x672   :  { %5284 = vmatmul.mubr.msk.f32.vlgmr.msra.gmra.mrb[62].mxu1 %vm3442_vm7, %v3530_v35  ;;  %v3919_v35 = vld [vmem:[#allocation11 + $0x228] sm:$0xff] }
 0x673   :  { %5826 = vmatpush1.bf16.msra.mxu1 %v5825_v21  ;;  %3768 = vmatprep.mubr.f32.mxu1 %v6217_v0  ;;  %v3654_v0 = vld [vmem:[#allocation9 + $0x120] sm:$0xff]  ;;  %v3857_v21 = vld [vmem:[#allocation11 + $0x38] sm:$0xff] }
 0x674   :  { %5828 = vmatprep.subr.bf16.mxu1 %v5827_v51  ;;  %v5841_v10 = vpack.c.bf16 %v3654_v0, %v3650_v50  ;;  %v3921_v51 = vld [vmem:[#allocation11 + $0x238] sm:$0xff]  ;;  %v5891_v13 = vpack.c.bf16 %v3857_v21, %v3855_v8  ;;  %v3860_v50 = vld [vmem:[#allocation11 + $0x50] sm:$0xff] }
 0x675   :  { %v5955_v26 = vpack.c.bf16 %v3921_v51, %v3919_v35  ;;  %v3936_v21 = vld [vmem:[#allocation11 + $0x2b0] sm:$0xff]  ;;  %v3875_v35 = vld [vmem:[#allocation11 + $0xc8] sm:$0xff]  ;;  %v3877_v51 = vld [vmem:[#allocation11 + $0xd8] sm:$0xff] }
 0x677   :  { %5830 = vmatpush1.bf16.msra.mxu1 %v5829_v43  ;;  %v3854_v43 = vld [vmem:[#allocation11 + $0x20] sm:$0xff] }
 0x678   :  { %5832 = vmatprep.subr.bf16.mxu1 %v5831_v14  ;;  %v3856_v14 = vld [vmem:[#allocation11 + $0x30] sm:$0xff] }
 0x679   :  { %v5893_v4 = vpack.c.bf16 %v3856_v14, %v3854_v43  ;;  %v3874_v43 = vld [vmem:[#allocation11 + $0xc0] sm:$0xff]  ;;  %v3876_v14 = vld [vmem:[#allocation11 + $0xd0] sm:$0xff] }
 0x67a   :  { %v5913_v30 = vpack.c.bf16 %v3876_v14, %v3874_v43  ;;  %v3896_v43 = vld [vmem:[#allocation11 + $0x170] sm:$0xff] }
 0x67b   :  { %5834 = vmatpush1.bf16.msra.mxu1 %v5833_v20  ;;  %v3920_v20 = vld [vmem:[#allocation11 + $0x230] sm:$0xff] }
 0x67c   :  { %5836 = vmatprep.subr.bf16.mxu1 %v5835_v31  ;;  %v3859_v31 = vld [vmem:[#allocation11 + $0x48] sm:$0xff] }
 0x67d   :  { %v5895_v0 = vpack.c.bf16 %v3861_v15, %v3859_v31  ;;  %v3881_v31 = vld [vmem:[#allocation11 + $0xf8] sm:$0xff]  ;;  %v3943_v15 = vld [vmem:[#allocation11 + $0x2e8] sm:$0xff] }
 0x67f   :  { %5838 = vmatpush1.bf16.msra.mxu1 %v5837_v52  ;;  %v5957_v52 = vpack.c.bf16 %v3920_v20, %v3918_v47  ;;  %v3940_v47 = vld [vmem:[#allocation11 + $0x2d0] sm:$0xff]  ;;  %v3879_v20 = vld [vmem:[#allocation11 + $0xe8] sm:$0xff] }
 0x680   :  { %5840 = vmatprep.subr.bf16.mxu1 %v5839_v63  ;;  %v3858_v63 = vld [vmem:[#allocation11 + $0x40] sm:$0xff] }
 0x681   :  { %v5897_v55 = vpack.c.bf16 %v3860_v50, %v3858_v63  ;;  %v3880_v63 = vld [vmem:[#allocation11 + $0xf0] sm:$0xff]  ;;  %v5915_v50 = vpack.c.bf16 %v3881_v31, %v3879_v20  ;;  %v3901_v20 = vld [vmem:[#allocation11 + $0x198] sm:$0xff]  ;;  %v3963_v31 = vld [vmem:[#allocation11 + $0x388] sm:$0xff] }
 0x683   :  { %5842 = vmatpush1.bf16.msra.mxu1 %v5841_v10  ;;  %v3924_v10 = vld [vmem:[#allocation11 + $0x250] sm:$0xff] }
 0x684   :  { %5844 = vmatprep.subr.bf16.mxu1 %v5843_v49  ;;  %v3863_v49 = vld [vmem:[#allocation11 + $0x68] sm:$0xff] }
 0x685   :  { %v5899_v11 = vpack.c.bf16 %v3865_v54, %v3863_v49  ;;  %v3885_v49 = vld [vmem:[#allocation11 + $0x118] sm:$0xff]  ;;  %v3947_v54 = vld [vmem:[#allocation11 + $0x308] sm:$0xff] }
 0x687   :  { %5846 = vmatpush1.bf16.msra.mxu1 %v5845_v32  ;;  %v5961_v32 = vpack.c.bf16 %v3924_v10, %v3922_v9  ;;  %v3944_v9 = vld [vmem:[#allocation11 + $0x2f0] sm:$0xff]  ;;  %v3883_v10 = vld [vmem:[#allocation11 + $0x108] sm:$0xff] }
 0x688   :  { %5848 = vmatprep.subr.bf16.mxu1 %v5847_v45  ;;  %v3862_v45 = vld [vmem:[#allocation11 + $0x60] sm:$0xff] }
 0x689   :  { %v5901_v18 = vpack.c.bf16 %v3864_v60, %v3862_v45  ;;  %v3884_v45 = vld [vmem:[#allocation11 + $0x110] sm:$0xff]  ;;  %v5919_v60 = vpack.c.bf16 %v3885_v49, %v3883_v10  ;;  %v3905_v10 = vld [vmem:[#allocation11 + $0x1b8] sm:$0xff]  ;;  %v3967_v49 = vld [vmem:[#allocation11 + $0x3a8] sm:$0xff] }
 0x68b   :  { %5850 = vmatpush1.bf16.msra.mxu1 %v5849_v6  ;;  %v5963_v6 = vpack.c.bf16 %v3929_v29, %v3927_v57  ;;  %v3949_v57 = vld [vmem:[#allocation11 + $0x318] sm:$0xff] }
 0x68c   :  { %5852 = vmatprep.subr.bf16.mxu1 %v5851_v16  ;;  %v3869_v16 = vld [vmem:[#allocation11 + $0x98] sm:$0xff] }
 0x68d   :  { %v5903_v1 = vpack.c.bf16 %v3869_v16, %v3867_v58  ;;  %v3889_v58 = vld [vmem:[#allocation11 + $0x138] sm:$0xff]  ;;  %v3951_v16 = vld [vmem:[#allocation11 + $0x328] sm:$0xff] }
 0x68f   :  { %5854 = vmatpush1.bf16.msra.mxu1 %v5853_v25  ;;  %v3866_v25 = vld [vmem:[#allocation11 + $0x80] sm:$0xff] }
 0x690   :  { %5952 = vmatprep.subr.bf16.mxu1 %v5951_v44  ;;  %v3937_v44 = vld [vmem:[#allocation11 + $0x2b8] sm:$0xff] }
 0x691   :  { %v5971_v8 = vpack.c.bf16 %v3937_v44, %v3935_v36  ;;  %v3957_v36 = vld [vmem:[#allocation11 + $0x358] sm:$0xff] }
 0x745   :  { %v3613_v7 = vpop.f32.mrb[62].mxu1 }
 0x746   :  { %v3614_v56 = vadd.f32 %v4230_v17, %v3613_v7  ;;  %v5285_v46 = vpop.f32.mrb[63].mxu1  ;;  %v5905_v17 = vpack.c.bf16 %v3868_v48, %v3866_v25  ;;  %v3934_v7 = vld [vmem:[#allocation11 + $0x2a0] sm:$0xff]  ;;  %v3888_v25 = vld [vmem:[#allocation11 + $0x130] sm:$0xff]  ;;  %v5923_v48 = vpack.c.bf16 %v3889_v58, %v3887_v53  ;;  %v3909_v53 = vld [vmem:[#allocation11 + $0x1d8] sm:$0xff] }
 0x747   :  { %v3941_v46 = vld [vmem:[#allocation11 + $0x2d8] sm:$0xff]  ;;  %v3971_v58 = vld [vmem:[#allocation11 + $0x3c8] sm:$0xff] }
 0x748   :  { %v3617_v34 = vmax.f32 %v3614_v56, 0.0  ;;  %v3939_v56 = vld [vmem:[#allocation11 + $0x2c8] sm:$0xff] }
 0x74a   :  { %3769 = vmatmul.mubr.f32.vlgmr.msra.gmra.mrb[64].mxu1 %v3617_v34  ;;  %3840 = vmatmul.mubr.f32.vlgmr.msra.gmra.mrb[44].mxu0 %v3617_v34  ;;  %v5911_v34 = vpack.c.bf16 %v3877_v51, %v3875_v35  ;;  %v3897_v35 = vld [vmem:[#allocation11 + $0x178] sm:$0xff]  ;;  %v3959_v51 = vld [vmem:[#allocation11 + $0x368] sm:$0xff] }
 0x74b   :  { %5890 = vmatpush1.bf16.msra.mxu0 %v5889_v19  ;;  %5954 = vmatpush1.bf16.msra.mxu1 %v5953_v61  ;;  %v5909_v19 = vpack.c.bf16 %v3872_v62, %v3870_v33  ;;  %v5973_v61 = vpack.c.bf16 %v3936_v21, %v3934_v7  ;;  %v3892_v33 = vld [vmem:[#allocation11 + $0x150] sm:$0xff]  ;;  %v5927_v62 = vpack.c.bf16 %v3893_v5, %v3891_v12  ;;  %v3895_v21 = vld [vmem:[#allocation11 + $0x168] sm:$0xff]  ;;  %v3913_v5 = vld [vmem:[#allocation11 + $0x1f8] sm:$0xff] }
 0x74c   :  { %5892 = vmatprep.subr.bf16.mxu0 %v5891_v13  ;;  %5956 = vmatprep.subr.bf16.mxu1 %v5955_v26  ;;  %v5975_v13 = vpack.c.bf16 %v3941_v46, %v3939_v56  ;;  %v3938_v26 = vld [vmem:[#allocation11 + $0x2c0] sm:$0xff]  ;;  %v3956_v7 = vld [vmem:[#allocation11 + $0x350] sm:$0xff]  ;;  %v3961_v56 = vld [vmem:[#allocation11 + $0x378] sm:$0xff]  ;;  %v5931_v14 = vpack.c.bf16 %v3897_v35, %v3895_v21 }
 0x74d   :  { %v3911_v12 = vld [vmem:[#allocation11 + $0x1e8] sm:$0xff] }
 0x74e   :  { %v3682_v35 = vld [vmem:[%s7098_s15] sm:$0xf] }
 0x74f   :  { %5894 = vmatpush1.bf16.msra.mxu0 %v5893_v4  ;;  %5958 = vmatpush1.bf16.msra.mxu1 %v5957_v52  ;;  %v5977_v4 = vpack.c.bf16 %v3940_v47, %v3938_v26  ;;  %v3878_v52 = vld [vmem:[#allocation11 + $0xe0] sm:$0xff]  ;;  %v3960_v26 = vld [vmem:[#allocation11 + $0x370] sm:$0xff]  ;;  %v3899_v47 = vld [vmem:[#allocation11 + $0x188] sm:$0xff] }
 0x750   :  { %5896 = vmatprep.subr.bf16.mxu0 %v5895_v0  ;;  %5960 = vmatprep.subr.bf16.mxu1 %v5959_v28  ;;  %v5979_v0 = vpack.c.bf16 %v3945_v22, %v3943_v15  ;;  %v3942_v28 = vld [vmem:[#allocation11 + $0x2e0] sm:$0xff]  ;;  %v5917_v29 = vpack.c.bf16 %v3880_v63, %v3878_v52  ;;  %v3965_v15 = vld [vmem:[#allocation11 + $0x398] sm:$0xff]  ;;  %v3900_v52 = vld [vmem:[#allocation11 + $0x190] sm:$0xff]  ;;  %v5935_v63 = vpack.c.bf16 %v3901_v20, %v3899_v47 }
 0x753   :  { %5898 = vmatpush1.bf16.msra.mxu0 %v5897_v55  ;;  %5962 = vmatpush1.bf16.msra.mxu1 %v5961_v32  ;;  %v5981_v55 = vpack.c.bf16 %v3944_v9, %v3942_v28  ;;  %v3882_v32 = vld [vmem:[#allocation11 + $0x100] sm:$0xff]  ;;  %v3964_v28 = vld [vmem:[#allocation11 + $0x390] sm:$0xff]  ;;  %v3903_v9 = vld [vmem:[#allocation11 + $0x1a8] sm:$0xff] }
 0x754   :  { %5900 = vmatprep.subr.bf16.mxu0 %v5899_v11  ;;  %5964 = vmatprep.subr.bf16.mxu1 %v5963_v6  ;;  %v5983_v11 = vpack.c.bf16 %v3949_v57, %v3947_v54  ;;  %v3946_v6 = vld [vmem:[#allocation11 + $0x300] sm:$0xff]  ;;  %v5921_v59 = vpack.c.bf16 %v3884_v45, %v3882_v32  ;;  %v3969_v54 = vld [vmem:[#allocation11 + $0x3b8] sm:$0xff]  ;;  %v3904_v32 = vld [vmem:[#allocation11 + $0x1b0] sm:$0xff]  ;;  %v5939_v45 = vpack.c.bf16 %v3905_v10, %v3903_v9 }
 0x757   :  { %5902 = vmatpush1.bf16.msra.mxu0 %v5901_v18  ;;  %5966 = vmatpush1.bf16.msra.mxu1 %v5965_v42  ;;  %v5985_v18 = vpack.c.bf16 %v3948_v24, %v3946_v6  ;;  %v3886_v42 = vld [vmem:[#allocation11 + $0x120] sm:$0xff]  ;;  %v3968_v6 = vld [vmem:[#allocation11 + $0x3b0] sm:$0xff]  ;;  %v3907_v24 = vld [vmem:[#allocation11 + $0x1c8] sm:$0xff] }
 0x758   :  { %5904 = vmatprep.subr.bf16.mxu0 %v5903_v1  ;;  %5968 = vmatprep.subr.bf16.mxu1 %v5967_v23  ;;  %v5987_v1 = vpack.c.bf16 %v3953_v2, %v3951_v16  ;;  %v3950_v23 = vld [vmem:[#allocation11 + $0x320] sm:$0xff]  ;;  %v5925_v44 = vpack.c.bf16 %v3888_v25, %v3886_v42  ;;  %v3973_v16 = vld [vmem:[#allocation11 + $0x3d8] sm:$0xff] }
 0x759   :  { %v6007_v42 = vpack.c.bf16 %v3973_v16, %v3971_v58  ;;  %v3906_v25 = vld [vmem:[#allocation11 + $0x1c0] sm:$0xff] }
 0x75b   :  { %5906 = vmatpush1.bf16.msra.mxu0 %v5905_v17  ;;  %5970 = vmatpush1.bf16.msra.mxu1 %v5969_v3  ;;  %v5989_v17 = vpack.c.bf16 %v3952_v39, %v3950_v23  ;;  %v3890_v3 = vld [vmem:[#allocation11 + $0x140] sm:$0xff]  ;;  %v3972_v39 = vld [vmem:[#allocation11 + $0x3d0] sm:$0xff] }
 0x75c   :  { %5908 = vmatprep.subr.bf16.mxu0 %v5907_v40  ;;  %5972 = vmatprep.subr.bf16.mxu1 %v5971_v8  ;;  %v5991_v40 = vpack.c.bf16 %v3957_v36, %v3955_v27  ;;  %v3954_v8 = vld [vmem:[#allocation11 + $0x340] sm:$0xff]  ;;  %v5929_v46 = vpack.c.bf16 %v3892_v33, %v3890_v3  ;;  %v5947_v36 = vpack.c.bf16 %v3913_v5, %v3911_v12 }
 0x75d   :  { %v3910_v3 = vld [vmem:[#allocation11 + $0x1e0] sm:$0xff] }
 0x75f   :  { %5910 = vmatpush1.bf16.msra.mxu0 %v5909_v19  ;;  %5974 = vmatpush1.bf16.msra.mxu1 %v5973_v61  ;;  %v5993_v19 = vpack.c.bf16 %v3956_v7, %v3954_v8  ;;  %v3894_v61 = vld [vmem:[#allocation11 + $0x160] sm:$0xff]  ;;  %v3976_v8 = vld [vmem:[#allocation11 + $0x3f0] sm:$0xff] }
 0x760   :  { %5912 = vmatprep.subr.bf16.mxu0 %v5911_v34  ;;  %5976 = vmatprep.subr.bf16.mxu1 %v5975_v13  ;;  %v5995_v34 = vpack.c.bf16 %v3961_v56, %v3959_v51  ;;  %v3958_v13 = vld [vmem:[#allocation11 + $0x360] sm:$0xff]  ;;  %v5933_v22 = vpack.c.bf16 %v3896_v43, %v3894_v61  ;;  %v3687_v51 = vrot.slane %v3682_v35, %v6493_v38  ;;  %v7119_v56 = vsub.s32 2, %v6490_v37 }
 0x761   :  { %v7120_v61 = vsub.s32 3, %v6490_v37  ;;  %v3978_v37 = vld [vmem:[%s7100_s17] sm:$0x3] }
 0x763   :  { %5914 = vmatpush1.bf16.msra.mxu0 %v5913_v30  ;;  %5978 = vmatpush1.bf16.msra.mxu1 %v5977_v4  ;;  %v5997_v30 = vpack.c.bf16 %v3960_v26, %v3958_v13  ;;  %v3898_v4 = vld [vmem:[#allocation11 + $0x180] sm:$0xff]  ;;  %v3699_v43 = vrot.slane %v3682_v35, %v7120_v61 }
 0x764   :  { %5916 = vmatprep.subr.bf16.mxu0 %v5915_v50  ;;  %5980 = vmatprep.subr.bf16.mxu1 %v5979_v0  ;;  %v5999_v50 = vpack.c.bf16 %v3965_v15, %v3963_v31  ;;  %v3962_v0 = vld [vmem:[#allocation11 + $0x380] sm:$0xff]  ;;  %v5937_v57 = vpack.c.bf16 %v3900_v52, %v3898_v4 }
 0x767   :  { %5918 = vmatpush1.bf16.msra.mxu0 %v5917_v29  ;;  %5982 = vmatpush1.bf16.msra.mxu1 %v5981_v55  ;;  %v6001_v29 = vpack.c.bf16 %v3964_v28, %v3962_v0  ;;  %v3902_v55 = vld [vmem:[#allocation11 + $0x1a0] sm:$0xff] }
 0x768   :  { %5920 = vmatprep.subr.bf16.mxu0 %v5919_v60  ;;  %5984 = vmatprep.subr.bf16.mxu1 %v5983_v11  ;;  %v6003_v60 = vpack.c.bf16 %v3969_v54, %v3967_v49  ;;  %v3966_v11 = vld [vmem:[#allocation11 + $0x3a0] sm:$0xff]  ;;  %v5941_v2 = vpack.c.bf16 %v3904_v32, %v3902_v55 }
 0x76b   :  { %5922 = vmatpush1.bf16.msra.mxu0 %v5921_v59  ;;  %5986 = vmatpush1.bf16.msra.mxu1 %v5985_v18  ;;  %v6005_v59 = vpack.c.bf16 %v3968_v6, %v3966_v11  ;;  %v5943_v18 = vpack.c.bf16 %v3909_v53, %v3907_v24 }
 0x76c   :  { %5924 = vmatprep.subr.bf16.mxu0 %v5923_v48  ;;  %5988 = vmatprep.subr.bf16.mxu1 %v5987_v1  ;;  %v3908_v48 = vld [vmem:[#allocation11 + $0x1d0] sm:$0xff]  ;;  %v3970_v1 = vld [vmem:[#allocation11 + $0x3c0] sm:$0xff] }
 0x76d   :  { %v5945_v23 = vpack.c.bf16 %v3908_v48, %v3906_v25  ;;  %v6009_v27 = vpack.c.bf16 %v3972_v39, %v3970_v1 }
 0x76f   :  { %5926 = vmatpush1.bf16.msra.mxu0 %v5925_v44  ;;  %5990 = vmatpush1.bf16.msra.mxu1 %v5989_v17  ;;  %v3975_v44 = vld [vmem:[#allocation11 + $0x3e8] sm:$0xff]  ;;  %v3977_v17 = vld [vmem:[#allocation11 + $0x3f8] sm:$0xff] }
 0x770   :  { %5928 = vmatprep.subr.bf16.mxu0 %v5927_v62  ;;  %5992 = vmatprep.subr.bf16.mxu1 %v5991_v40  ;;  %v6011_v33 = vpack.c.bf16 %v3977_v17, %v3975_v44  ;;  %v3912_v62 = vld [vmem:[#allocation11 + $0x1f0] sm:$0xff]  ;;  %v3974_v40 = vld [vmem:[#allocation11 + $0x3e0] sm:$0xff] }
 0x771   :  { %v5949_v7 = vpack.c.bf16 %v3912_v62, %v3910_v3  ;;  %v6013_v21 = vpack.c.bf16 %v3976_v8, %v3974_v40 }
 0x773   :  { %5930 = vmatpush1.bf16.msra.mxu0 %v5929_v46  ;;  %5994 = vmatpush1.bf16.msra.mxu1 %v5993_v19  ;;  %v3695_v46 = vrot.slane %v3682_v35, %v7119_v56  ;;  %v3691_v19 = vrot.slane %v3682_v35, %v6500_v41 }
 0x774   :  { %5932 = vmatprep.subr.bf16.mxu0 %v5931_v14  ;;  %5996 = vmatprep.subr.bf16.mxu1 %v5995_v34 }
 0x777   :  { %5934 = vmatpush1.bf16.msra.mxu0 %v5933_v22  ;;  %5998 = vmatpush1.bf16.msra.mxu1 %v5997_v30 }
 0x778   :  { %5936 = vmatprep.subr.bf16.mxu0 %v5935_v63  ;;  %6000 = vmatprep.subr.bf16.mxu1 %v5999_v50  ;;  %v3983_v63 = vrot.slane %v3978_v37, %v6493_v38  ;;  %v3987_v50 = vrot.slane %v3978_v37, %v6500_v41 }
 0x77b   :  { %5938 = vmatpush1.bf16.msra.mxu0 %v5937_v57  ;;  %6002 = vmatpush1.bf16.msra.mxu1 %v6001_v29 }
 0x77c   :  { %5940 = vmatprep.subr.bf16.mxu0 %v5939_v45  ;;  %6004 = vmatprep.subr.bf16.mxu1 %v6003_v60 }
 0x77f   :  { %5942 = vmatpush1.bf16.msra.mxu0 %v5941_v2  ;;  %6006 = vmatpush1.bf16.msra.mxu1 %v6005_v59 }
 0x780   :  { %5944 = vmatprep.subr.bf16.mxu0 %v5943_v18  ;;  %6008 = vmatprep.subr.bf16.mxu1 %v6007_v42 }
 0x783   :  { %5946 = vmatpush1.bf16.msra.mxu0 %v5945_v23  ;;  %6010 = vmatpush1.bf16.msra.mxu1 %v6009_v27 }
 0x784   :  { %5948 = vmatprep.subr.bf16.mxu0 %v5947_v36  ;;  %6012 = vmatprep.subr.bf16.mxu1 %v6011_v33 }
 0x787   :  { %5950 = vmatpush1.bf16.msra.mxu0 %v5949_v7  ;;  %6014 = vmatpush1.bf16.msra.mxu1 %v6013_v21 }
 0x81d   :  { %v3770_v14 = vpop.f32.mrb[64].mxu1  ;;  %v3841_v34 = vpop.f32.mrb[44].mxu0 }
 0x81e   :  { %v3771_v13 = vadd.f32 %v3770_v14, %v3687_v51  ;;  %v3842_v26 = vadd.f32 %v3841_v34, %v3695_v46  ;;  %v3772_v47 = vpop.f32.mrb[65].mxu1  ;;  %v3843_v20 = vpop.f32.mrb[45].mxu0 }
 0x81f   :  { %v3773_v31 = vadd.f32 %v3772_v47, %v3691_v19  ;;  %v3844_v15 = vadd.f32 %v3843_v20, %v3699_v43 }
 0x820   :  { %v3846_v4 = vmax.f32 %v3771_v13, 0.0  ;;  %v3848_v52 = vmax.f32 %v3842_v26, 0.0 }
 0x821   :  { %v3847_v22 = vmax.f32 %v3773_v31, 0.0  ;;  %v3849_v30 = vmax.f32 %v3844_v15, 0.0 }
 0x823   :  { %4054 = vmatprep.mubr.f32.mxu0 %v3847_v22  ;;  %4125 = vmatprep.mubr.f32.mxu1 %v3849_v30 }
 0x824   :  { %4055 = vmatmul.mubr.f32.vlgmr.msra.gmra.mrb[46].mxu0 %v3846_v4  ;;  %4126 = vmatmul.mubr.f32.vlgmr.msra.gmra.mrb[66].mxu1 %v3848_v52 }
 0x8f7   :  { %v4056_v0 = vpop.f32.mrb[46].mxu0  ;;  %v4127_v28 = vpop.f32.mrb[66].mxu1 }
 0x8f8   :  { %v4057_v9 = vadd.f32 %v4056_v0, %v3983_v63  ;;  %v4058_v10 = vpop.f32.mrb[47].mxu0  ;;  %v4129_v49 = vpop.f32.mrb[67].mxu1 }
 0x8f9   :  { %v4059_v54 = vadd.f32 %v4058_v10, %v3987_v50 }
 0x8fa   :  { %v4128_v57 = vadd.f32 %v4127_v28, %v4057_v9 }
 0x8fb   :  { %v4130_v29 = vadd.f32 %v4129_v49, %v4059_v54 }
 0x8fc   :  { %v4233_v55 = vmul.f32 -1.442695, %v4128_v57 }
 0x8fd   :  { %v4234_v32 = vmul.f32 -1.442695, %v4130_v29 }
 0x8fe   :  { %6080 = vpow2.f32 %v4233_v55 }
 0x8ff   :  { %6082 = vpow2.f32 %v4234_v32 }
 0x908   :  { %v6081_v45 = vpop.eup %6080 }
 0x909   :  { %v6083_v60 = vpop.eup %6082  ;;  %v4138_v11 = vadd.f32 1.0, %v6081_v45 }
 0x90a   :  { %v4139_v6 = vadd.f32 1.0, %v6083_v60 }
 0x90b   :  { %6084 = vrcp.f32 %v4138_v11 }
 0x90c   :  { %6086 = vrcp.f32 %v4139_v6 }
 0x915   :  { %v6085_v38 = vpop.eup %6084 }
 0x916   :  { %v6087_v41 = vpop.eup %6086 }
 0x917   :  { %v4146_v24 = vcombine.low %v6085_v38, %v6087_v41 }
 0x919   :  { %4235 = vst.sshfl [vmem:[%s7101_s18] sm:$0x33 pattern:$0x76325410] %v4146_v24 }
 0x91a   :  { %4164 = vsyncpa [#allocation5], 1 }
 0x91b   :  { %4165 = vsyncpa [#allocation7], 1 }
 0x91c   :  { %4166 = vsyncpa [#allocation10], 1 }

</bundles_post_ra>
